<compile_context>
chip_gen: v5e
topology: v5e:2x2
jax: 0.10.0
libtpu: 0.0.40
codegen_flags: <defaults>
</compile_context>

<pallas_src>
import functools

import jax
import jax.numpy as jnp
from jax import lax
from jax.experimental import pallas as pl
from jax.experimental.pallas import tpu as pltpu


# ----------------------------------------------------------------------------
# Whole-Block fused kernel (one batch image per grid step)
# ----------------------------------------------------------------------------
def _block_kernel(*refs, ops_meta):
    """Runs every inverted-residual op of a Block for one image, in VMEM.

    refs = [x_ref, <per-op weight refs...>, o_ref, <per-op padded scratch>]
    Per-op weights (in order): [w_exp, b_exp]? , w_dw, b_dw, w_proj, b_proj.
    """
    n_w = sum(6 if m["has_expand"] else 4 for m in ops_meta)
    x_ref = refs[0]
    w_refs = refs[1:1 + n_w]
    o_ref = refs[1 + n_w]
    exp_refs = refs[2 + n_w:]

    m0 = ops_meta[0]
    H0, W0, Cin0 = m0["H"], m0["W"], m0["cin"]
    # Activation is carried as a flat (H*W, C) f32 value between ops.
    act = x_ref[0].reshape(H0 * W0, Cin0).astype(jnp.float32)

    widx = 0
    for oi, m in enumerate(ops_meta):
        k, s, d, pad = m["k"], m["stride"], m["dilation"], m["pad"]
        Hh, Ww, Ho, Wo = m["H"], m["W"], m["Ho"], m["Wo"]
        Cexp, Cout = m["cexp"], m["cout"]
        Hp, Wp = Hh + 2 * pad, Ww + 2 * pad
        exp_ref = exp_refs[oi]

        residual = act if m["residual"] else None

        # ---- 1x1 expand conv (bf16 MXU, f32 accumulation) + bias + ReLU6.
        if m["has_expand"]:
            w_exp, b_exp = w_refs[widx], w_refs[widx + 1]
            widx += 2
            h = jnp.dot(act.astype(jnp.bfloat16), w_exp[...],
                        preferred_element_type=jnp.float32)
            h = jnp.clip(h + b_exp[...], 0.0, 6.0)
        else:
            h = act
        w_dw, b_dw = w_refs[widx], w_refs[widx + 1]
        w_proj, b_proj = w_refs[widx + 2], w_refs[widx + 3]
        widx += 4

        # ---- Zero only the halo strips (not the full scratch), then write
        #      the interior.  Re-zeroing every step keeps this correct no
        #      matter how a parallel grid axis is split across TensorCores.
        if pad > 0:
            zrow = jnp.zeros((pad, Wp, Cexp), jnp.float32)
            zcol = jnp.zeros((Hh, pad, Cexp), jnp.float32)
            exp_ref[0:pad, :, :] = zrow
            exp_ref[pad + Hh:pad + Hh + pad, :, :] = zrow
            exp_ref[pad:pad + Hh, 0:pad, :] = zcol
            exp_ref[pad:pad + Hh, pad + Ww:pad + Ww + pad, :] = zcol
        exp_ref[pad:pad + Hh, pad:pad + Ww, :] = h.reshape(Hh, Ww, Cexp)

        # ---- KxK depthwise conv (f32 VPU).  Accumulator lives in registers;
        #      only the strided outputs are read; per-tap weights hoisted.
        taps = [[w_dw[ki, kj:kj + 1, :].astype(jnp.float32)   # (1, Cexp)
                 for kj in range(k)] for ki in range(k)]
        acc = None
        for ki in range(k):
            hi = ki * d
            for kj in range(k):
                wj = kj * d
                if s == 1:
                    patch = exp_ref[hi:hi + Ho, wj:wj + Wo, :]
                else:
                    # TODO(synk): de-interleave columns by stride phase once
                    # instead of k^2 strided sublane reads.
                    patch = exp_ref[pl.ds(hi, Ho, stride=s),
                                    pl.ds(wj, Wo, stride=s), :]
                term = patch * taps[ki][kj]
                acc = term if acc is None else acc + term
        dw = jnp.clip(acc + b_dw[...], 0.0, 6.0)              # (Ho, Wo, Cexp)

        # ---- 1x1 project conv (bf16 MXU) + bias (+ fused residual).
        out = jnp.dot(dw.reshape(Ho * Wo, Cexp).astype(jnp.bfloat16),
                      w_proj[...], preferred_element_type=jnp.float32)
        out = out + b_proj[...]
        if residual is not None:
            out = out + residual
        act = out                                             # (Ho*Wo, Cout)

    mf = ops_meta[-1]
    o_ref[0] = act.reshape(mf["Ho"], mf["Wo"], mf["cout"]).astype(o_ref.dtype)


def block_fused(x, layers):
    """Run a whole Block (list of mbconv descriptors) as ONE pallas_call.

    x: NHWC activation.  layers: list of (params, cin, cout, stride, dilation).
    """
    N, H, W, Cin0 = x.shape
    ops_meta = []
    args = [x]
    in_specs = [pl.BlockSpec((1, H, W, Cin0), lambda n: (n, 0, 0, 0))]
    scratch_shapes = []
    curH, curW = H, W
    flops = 0
    bytes_acc = x.size * x.dtype.itemsize

    for params, cin, cout, s, d in layers:
        k = int(params["w_dw"].shape[0])
        cexp = int(params["w_dw"].shape[-1])
        pad = (k // 2) * d
        Hp, Wp = curH + 2 * pad, curW + 2 * pad
        Ho = (Hp - d * (k - 1) - 1) // s + 1      # PyTorch conv formula
        Wo = (Wp - d * (k - 1) - 1) // s + 1
        has_expand = "w_exp" in params
        ops_meta.append(dict(k=k, stride=s, dilation=d, pad=pad,
                             H=curH, W=curW, Ho=Ho, Wo=Wo,
                             cin=cin, cexp=cexp, cout=cout,
                             has_expand=has_expand,
                             residual=(s == 1 and cin == cout)))
        if has_expand:
            args += [params["w_exp"], params["b_exp"].reshape(1, -1)]
            in_specs += [pl.BlockSpec((cin, cexp), lambda n: (0, 0)),
                         pl.BlockSpec((1, cexp), lambda n: (0, 0))]
            flops += 2 * curH * curW * cin * cexp
        args += [params["w_dw"], params["b_dw"].reshape(1, -1),
                 params["w_proj"], params["b_proj"].reshape(1, -1)]
        in_specs += [pl.BlockSpec((k, k, cexp), lambda n: (0, 0, 0)),
                     pl.BlockSpec((1, cexp), lambda n: (0, 0)),
                     pl.BlockSpec((cexp, cout), lambda n: (0, 0)),
                     pl.BlockSpec((1, cout), lambda n: (0, 0))]
        scratch_shapes.append(pltpu.VMEM((Hp, Wp, cexp), jnp.float32))
        flops += 2 * k * k * Ho * Wo * cexp + 2 * Ho * Wo * cexp * cout
        for v in params.values():
            bytes_acc += v.size * v.dtype.itemsize
        curH, curW = Ho, Wo

    cout_f = layers[-1][2]
    out_shape = jax.ShapeDtypeStruct((N, curH, curW, cout_f), x.dtype)
    bytes_acc += N * curH * curW * cout_f * x.dtype.itemsize
    flops *= N

    kern = functools.partial(_block_kernel, ops_meta=ops_meta)
    return pl.pallas_call(
        kern,
        grid=(N,),
        in_specs=in_specs,
        out_specs=pl.BlockSpec((1, curH, curW, cout_f), lambda n: (n, 0, 0, 0)),
        out_shape=out_shape,
        scratch_shapes=scratch_shapes,
        compiler_params=pltpu.CompilerParams(
            dimension_semantics=("parallel",)),
        cost_estimate=pl.CostEstimate(flops=int(flops), transcendentals=0,
                                      bytes_accessed=int(bytes_acc)),
    )(*args)


# ----------------------------------------------------------------------------
# Deterministic parameter construction (eval-mode BN folded: scale -> weights,
# bias kept separate).  1x1 conv weights are stored bf16 (MXU inputs).
# ----------------------------------------------------------------------------
def _bn_fold(key, c, dtype=jnp.float32, eps=1e-5):
    gk, bk, mk, vk = jax.random.split(key, 4)
    gamma = 1.0 + 0.1 * jax.random.normal(gk, (c,), dtype)
    beta = 0.1 * jax.random.normal(bk, (c,), dtype)
    mean = 0.1 * jax.random.normal(mk, (c,), dtype)
    var = jnp.abs(1.0 + 0.1 * jax.random.normal(vk, (c,), dtype))
    scale = gamma / jnp.sqrt(var + eps)
    bias = beta - mean * scale
    return scale, bias


def make_op_params(key, in_ch, out_ch, kernel, expansion, dtype=jnp.float32):
    mid = in_ch * expansion
    k_exp, k_dw, k_proj, kb1, kb2, kb3 = jax.random.split(key, 6)
    params = {}
    if expansion != 1:
        w = (jax.random.normal(k_exp, (in_ch, mid), dtype)
             / jnp.sqrt(jnp.asarray(in_ch, dtype)))
        s, b = _bn_fold(kb1, mid, dtype)
        params["w_exp"] = (w * s[None, :]).astype(jnp.bfloat16)
        params["b_exp"] = b
    else:
        mid = in_ch
    w = (jax.random.normal(k_dw, (kernel, kernel, mid), dtype)
         / jnp.asarray(kernel, dtype))
    s, b = _bn_fold(kb2, mid, dtype)
    params["w_dw"] = w * s[None, None, :]                 # f32 (VPU path)
    params["b_dw"] = b
    w = (jax.random.normal(k_proj, (mid, out_ch), dtype)
         / jnp.sqrt(jnp.asarray(mid, dtype)))
    s, b = _bn_fold(kb3, out_ch, dtype)
    params["w_proj"] = (w * s[None, :]).astype(jnp.bfloat16)
    params["b_proj"] = b
    return params


def _parse_op(op):
    # OPS keys in derive_blocks look like 'k3_e3', 'k5_e6', ... or 'skip'.
    if op == "skip":
        return None
    k_part, e_part = op.split("_")
    return int(k_part[1:]), int(e_part[1:])


# ----------------------------------------------------------------------------
# Block (mirrors the PyTorch module's constructor logic & forward)
# ----------------------------------------------------------------------------
class BlockPallas:
    def __init__(self, key, in_ch, block_ch, ops, stride, dilation=1,
                 use_se=False, bn_params=(True, True)):
        # use_se / bn_params accepted for signature parity; BN is folded into
        # the weights/bias (eval-mode, affine + tracked-stats semantics).
        del use_se, bn_params
        self.layers = []
        keys = jax.random.split(key, len(ops))
        for i, op in enumerate(ops):
            block_stride = stride if i == 0 else 1
            block_in_ch = in_ch if i == 0 else block_ch
            parsed = _parse_op(op)
            if parsed is None:
                # Identity is only shape-correct when it preserves the shape.
                assert block_stride == 1 and block_in_ch == block_ch, (
                    "'skip' op requires stride==1 and in_ch==out_ch")
                continue
            k, e = parsed
            params = make_op_params(keys[i], block_in_ch, block_ch, k, e)
            self.layers.append((params, block_in_ch, block_ch, block_stride,
                                dilation))

    def __call__(self, x, *, channels_last=False):
        if not channels_last:
            x = jnp.transpose(x, (0, 2, 3, 1))   # NCHW -> NHWC
        if self.layers:
            x = block_fused(x, self.layers)       # one pallas_call per Block
        if not channels_last:
            x = jnp.transpose(x, (0, 3, 1, 2))   # NHWC -> NCHW
        return x

    # ---- pure-JAX reference (correctness check only).  mxu_bf16=True models
    # ---- the kernel's bf16 MXU inputs; False keeps f32 activations.
    def reference(self, x_nchw, *, mxu_bf16=True):
        x = jnp.transpose(x_nchw, (0, 2, 3, 1))
        for params, cin, cout, s, d in self.layers:
            inp = x
            h = x
            if "w_exp" in params:
                a = h.astype(jnp.bfloat16) if mxu_bf16 else h
                h = jnp.einsum("nhwc,cd->nhwd", a, params["w_exp"],
                               preferred_element_type=jnp.float32,
                               precision=lax.Precision.HIGHEST)
                h = jnp.clip(h + params["b_exp"], 0.0, 6.0)
            C = h.shape[-1]
            k = params["w_dw"].shape[0]
            pad = (k // 2) * d
            wk = params["w_dw"].reshape(k, k, 1, C)
            h = lax.conv_general_dilated(
                h, wk, window_strides=(s, s),
                padding=[(pad, pad), (pad, pad)], rhs_dilation=(d, d),
                dimension_numbers=("NHWC", "HWIO", "NHWC"),
                feature_group_count=C, precision=lax.Precision.HIGHEST)
            h = jnp.clip(h + params["b_dw"], 0.0, 6.0)
            a = h.astype(jnp.bfloat16) if mxu_bf16 else h
            h = jnp.einsum("nhwc,cd->nhwd", a, params["w_proj"],
                           preferred_element_type=jnp.float32,
                           precision=lax.Precision.HIGHEST)
            h = h + params["b_proj"]
            if s == 1 and cin == cout:
                h = h + inp
            x = h
        return jnp.transpose(x, (0, 3, 1, 2))


# ----------------------------------------------------------------------------
if __name__ == "__main__":
    key = jax.random.PRNGKey(0)
    kx, kp1, kp2 = jax.random.split(key, 3)

    N, C, H, W = 2, 16, 16, 16
    x = jax.random.normal(kx, (N, C, H, W), jnp.float32)

    # Block 1: stride 1, residual path exercised in both ops.
    block1 = BlockPallas(kp1, in_ch=16, block_ch=16, ops=["k3_e3", "k3_e6"],
                         stride=1, dilation=1)
    # Block 2: stride-2 downsample + channel change, kernel 5 (strided dw path).
    block2 = BlockPallas(kp2, in_ch=16, block_ch=24, ops=["k5_e6", "k3_e3"],
                         stride=2, dilation=1)

    # Activations stay NHWC between Blocks; transpose only at the boundary.
    x_nhwc = jnp.transpose(x, (0, 2, 3, 1))
    y1_nhwc = block1(x_nhwc, channels_last=True)
    y2_nhwc = block2(y1_nhwc, channels_last=True)
    y1 = jnp.transpose(y1_nhwc, (0, 3, 1, 2))
    y2 = jnp.transpose(y2_nhwc, (0, 3, 1, 2))
    jax.block_until_ready(y2)

    assert y1.shape == (N, 16, H, W), y1.shape
    assert y2.shape == (N, 24, H // 2, W // 2), y2.shape

    # Reference that mirrors the kernel's bf16 MXU inputs (tight tolerance).
    y1_ref = block1.reference(x, mxu_bf16=True)
    y2_ref = block2.reference(y1_ref, mxu_bf16=True)
    assert jnp.allclose(y1, y1_ref, atol=3e-2, rtol=3e-2)
    assert jnp.allclose(y2, y2_ref, atol=3e-2, rtol=3e-2)

    # Full-f32-activation reference as a gross-error check (bf16 MXU inputs in
    # the kernel widen the deviation, so the bound here is loose by design).
    y1_f32 = block1.reference(x, mxu_bf16=False)
    y2_f32 = block2.reference(y1_f32, mxu_bf16=False)
    assert jnp.allclose(y2, y2_f32, atol=2e-1, rtol=2e-1)

    print("KERNEL_OK")
</pallas_src>

<mosaic_0001>
module attributes {stable_mosaic.version = 11 : i64} {
  func.func @_block_kernel(%arg0: i32, %arg1: memref<1x16x16x16xf32, #tpu.memory_space<vmem>>, %arg2: memref<16x48xbf16, #tpu.memory_space<vmem>>, %arg3: memref<1x48xf32, #tpu.memory_space<vmem>>, %arg4: memref<3x3x48xf32, #tpu.memory_space<vmem>>, %arg5: memref<1x48xf32, #tpu.memory_space<vmem>>, %arg6: memref<48x16xbf16, #tpu.memory_space<vmem>>, %arg7: memref<1x16xf32, #tpu.memory_space<vmem>>, %arg8: memref<16x96xbf16, #tpu.memory_space<vmem>>, %arg9: memref<1x96xf32, #tpu.memory_space<vmem>>, %arg10: memref<3x3x96xf32, #tpu.memory_space<vmem>>, %arg11: memref<1x96xf32, #tpu.memory_space<vmem>>, %arg12: memref<96x16xbf16, #tpu.memory_space<vmem>>, %arg13: memref<1x16xf32, #tpu.memory_space<vmem>>, %arg14: memref<1x16x16x16xf32, #tpu.memory_space<vmem>>, %arg15: memref<18x18x48xf32, #tpu.memory_space<vmem>>, %arg16: memref<18x18x96xf32, #tpu.memory_space<vmem>>) attributes {dimension_semantics = [#tpu.dimension_semantics<parallel>], iteration_bounds = array<i64: 2>, scalar_prefetch = 0 : i64, scratch_operands = 2 : i64, tpu.core_type = #tpu.core_type<tc>, window_params = [{transform_indices = @transform_0, window_bounds = array<i64: 1, 16, 16, 16>}, {pipeline_mode = #tpu.pipeline_mode<synchronous>, transform_indices = @transform_1, window_bounds = array<i64: 16, 48>}, {pipeline_mode = #tpu.pipeline_mode<synchronous>, transform_indices = @transform_2, window_bounds = array<i64: 1, 48>}, {pipeline_mode = #tpu.pipeline_mode<synchronous>, transform_indices = @transform_3, window_bounds = array<i64: 3, 3, 48>}, {pipeline_mode = #tpu.pipeline_mode<synchronous>, transform_indices = @transform_4, window_bounds = array<i64: 1, 48>}, {pipeline_mode = #tpu.pipeline_mode<synchronous>, transform_indices = @transform_5, window_bounds = array<i64: 48, 16>}, {pipeline_mode = #tpu.pipeline_mode<synchronous>, transform_indices = @transform_6, window_bounds = array<i64: 1, 16>}, {pipeline_mode = #tpu.pipeline_mode<synchronous>, transform_indices = @transform_7, window_bounds = array<i64: 16, 96>}, {pipeline_mode = #tpu.pipeline_mode<synchronous>, transform_indices = @transform_8, window_bounds = array<i64: 1, 96>}, {pipeline_mode = #tpu.pipeline_mode<synchronous>, transform_indices = @transform_9, window_bounds = array<i64: 3, 3, 96>}, {pipeline_mode = #tpu.pipeline_mode<synchronous>, transform_indices = @transform_10, window_bounds = array<i64: 1, 96>}, {pipeline_mode = #tpu.pipeline_mode<synchronous>, transform_indices = @transform_11, window_bounds = array<i64: 96, 16>}, {pipeline_mode = #tpu.pipeline_mode<synchronous>, transform_indices = @transform_12, window_bounds = array<i64: 1, 16>}, {transform_indices = @transform_13, window_bounds = array<i64: 1, 16, 16, 16>}]} {
    %c0 = arith.constant 0 : index
    %c0_0 = arith.constant 0 : index
    %c0_1 = arith.constant 0 : index
    %c0_2 = arith.constant 0 : index
    %0 = vector.load %arg1[%c0, %c0_0, %c0_1, %c0_2] : memref<1x16x16x16xf32, #tpu.memory_space<vmem>>, vector<1x16x16x16xf32>
    %1 = vector.shape_cast %0 : vector<1x16x16x16xf32> to vector<16x16x16xf32>
    %2 = vector.shape_cast %1 : vector<16x16x16xf32> to vector<256x16xf32>
    %3 = arith.truncf %2 : vector<256x16xf32> to vector<256x16xbf16>
    %c0_3 = arith.constant 0 : index
    %c0_4 = arith.constant 0 : index
    %4 = vector.load %arg2[%c0_3, %c0_4] : memref<16x48xbf16, #tpu.memory_space<vmem>>, vector<16x48xbf16>
    %cst = arith.constant dense<0.000000e+00> : vector<256x48xf32>
    %5 = tpu.matmul %3, %4, %cst {dimension_numbers = #tpu.dot_dimension_numbers<[1], [0], [0], [1], [0, 0, 1, 1], [], []>} : vector<256x16xbf16>, vector<16x48xbf16>, vector<256x48xf32> -> vector<256x48xf32>
    %c0_5 = arith.constant 0 : index
    %c0_6 = arith.constant 0 : index
    %6 = vector.load %arg3[%c0_5, %c0_6] : memref<1x48xf32, #tpu.memory_space<vmem>>, vector<1x48xf32>
    %7 = vector.broadcast %6 : vector<1x48xf32> to vector<256x48xf32>
    %8 = arith.addf %5, %7 : vector<256x48xf32>
    %cst_7 = arith.constant 0.000000e+00 : f32
    %cst_8 = arith.constant 6.000000e+00 : f32
    %9 = vector.broadcast %cst_7 : f32 to vector<256x48xf32>
    %10 = arith.maximumf %9, %8 : vector<256x48xf32>
    %11 = vector.broadcast %cst_8 : f32 to vector<256x48xf32>
    %12 = arith.minimumf %11, %10 : vector<256x48xf32>
    %cst_9 = arith.constant 0.000000e+00 : f32
    %13 = vector.broadcast %cst_9 : f32 to vector<1x18x48xf32>
    %cst_10 = arith.constant 0.000000e+00 : f32
    %14 = vector.broadcast %cst_10 : f32 to vector<16x1x48xf32>
    %c0_11 = arith.constant 0 : index
    %c0_12 = arith.constant 0 : index
    %c0_13 = arith.constant 0 : index
    %15 = vector.load %arg15[%c0_11, %c0_12, %c0_13] : memref<18x18x48xf32, #tpu.memory_space<vmem>>, vector<1x18x48xf32>
    tpu.vector_store %arg15[%c0_11, %c0_12, %c0_13], %13 {strides = array<i32>} : memref<18x18x48xf32, #tpu.memory_space<vmem>>, vector<1x18x48xf32>,
    %c17 = arith.constant 17 : index
    %c0_14 = arith.constant 0 : index
    %c0_15 = arith.constant 0 : index
    %16 = vector.load %arg15[%c17, %c0_14, %c0_15] : memref<18x18x48xf32, #tpu.memory_space<vmem>>, vector<1x18x48xf32>
    tpu.vector_store %arg15[%c17, %c0_14, %c0_15], %13 {strides = array<i32>} : memref<18x18x48xf32, #tpu.memory_space<vmem>>, vector<1x18x48xf32>,
    %c1 = arith.constant 1 : index
    %c0_16 = arith.constant 0 : index
    %c0_17 = arith.constant 0 : index
    %17 = vector.load %arg15[%c1, %c0_16, %c0_17] : memref<18x18x48xf32, #tpu.memory_space<vmem>>, vector<16x1x48xf32>
    tpu.vector_store %arg15[%c1, %c0_16, %c0_17], %14 {strides = array<i32>} : memref<18x18x48xf32, #tpu.memory_space<vmem>>, vector<16x1x48xf32>,
    %c1_18 = arith.constant 1 : index
    %c17_19 = arith.constant 17 : index
    %c0_20 = arith.constant 0 : index
    %18 = vector.load %arg15[%c1_18, %c17_19, %c0_20] : memref<18x18x48xf32, #tpu.memory_space<vmem>>, vector<16x1x48xf32>
    tpu.vector_store %arg15[%c1_18, %c17_19, %c0_20], %14 {strides = array<i32>} : memref<18x18x48xf32, #tpu.memory_space<vmem>>, vector<16x1x48xf32>,
    %19 = vector.shape_cast %12 : vector<256x48xf32> to vector<16x16x48xf32>
    %c1_21 = arith.constant 1 : index
    %c1_22 = arith.constant 1 : index
    %c0_23 = arith.constant 0 : index
    %20 = vector.load %arg15[%c1_21, %c1_22, %c0_23] : memref<18x18x48xf32, #tpu.memory_space<vmem>>, vector<16x16x48xf32>
    tpu.vector_store %arg15[%c1_21, %c1_22, %c0_23], %19 {strides = array<i32>} : memref<18x18x48xf32, #tpu.memory_space<vmem>>, vector<16x16x48xf32>,
    %c0_24 = arith.constant 0 : index
    %c0_25 = arith.constant 0 : index
    %c0_26 = arith.constant 0 : index
    %21 = vector.load %arg4[%c0_24, %c0_25, %c0_26] : memref<3x3x48xf32, #tpu.memory_space<vmem>>, vector<1x1x48xf32>
    %22 = vector.shape_cast %21 : vector<1x1x48xf32> to vector<1x48xf32>
    %c0_27 = arith.constant 0 : index
    %c1_28 = arith.constant 1 : index
    %c0_29 = arith.constant 0 : index
    %23 = vector.load %arg4[%c0_27, %c1_28, %c0_29] : memref<3x3x48xf32, #tpu.memory_space<vmem>>, vector<1x1x48xf32>
    %24 = vector.shape_cast %23 : vector<1x1x48xf32> to vector<1x48xf32>
    %c0_30 = arith.constant 0 : index
    %c2 = arith.constant 2 : index
    %c0_31 = arith.constant 0 : index
    %25 = vector.load %arg4[%c0_30, %c2, %c0_31] : memref<3x3x48xf32, #tpu.memory_space<vmem>>, vector<1x1x48xf32>
    %26 = vector.shape_cast %25 : vector<1x1x48xf32> to vector<1x48xf32>
    %c1_32 = arith.constant 1 : index
    %c0_33 = arith.constant 0 : index
    %c0_34 = arith.constant 0 : index
    %27 = vector.load %arg4[%c1_32, %c0_33, %c0_34] : memref<3x3x48xf32, #tpu.memory_space<vmem>>, vector<1x1x48xf32>
    %28 = vector.shape_cast %27 : vector<1x1x48xf32> to vector<1x48xf32>
    %c1_35 = arith.constant 1 : index
    %c1_36 = arith.constant 1 : index
    %c0_37 = arith.constant 0 : index
    %29 = vector.load %arg4[%c1_35, %c1_36, %c0_37] : memref<3x3x48xf32, #tpu.memory_space<vmem>>, vector<1x1x48xf32>
    %30 = vector.shape_cast %29 : vector<1x1x48xf32> to vector<1x48xf32>
    %c1_38 = arith.constant 1 : index
    %c2_39 = arith.constant 2 : index
    %c0_40 = arith.constant 0 : index
    %31 = vector.load %arg4[%c1_38, %c2_39, %c0_40] : memref<3x3x48xf32, #tpu.memory_space<vmem>>, vector<1x1x48xf32>
    %32 = vector.shape_cast %31 : vector<1x1x48xf32> to vector<1x48xf32>
    %c2_41 = arith.constant 2 : index
    %c0_42 = arith.constant 0 : index
    %c0_43 = arith.constant 0 : index
    %33 = vector.load %arg4[%c2_41, %c0_42, %c0_43] : memref<3x3x48xf32, #tpu.memory_space<vmem>>, vector<1x1x48xf32>
    %34 = vector.shape_cast %33 : vector<1x1x48xf32> to vector<1x48xf32>
    %c2_44 = arith.constant 2 : index
    %c1_45 = arith.constant 1 : index
    %c0_46 = arith.constant 0 : index
    %35 = vector.load %arg4[%c2_44, %c1_45, %c0_46] : memref<3x3x48xf32, #tpu.memory_space<vmem>>, vector<1x1x48xf32>
    %36 = vector.shape_cast %35 : vector<1x1x48xf32> to vector<1x48xf32>
    %c2_47 = arith.constant 2 : index
    %c2_48 = arith.constant 2 : index
    %c0_49 = arith.constant 0 : index
    %37 = vector.load %arg4[%c2_47, %c2_48, %c0_49] : memref<3x3x48xf32, #tpu.memory_space<vmem>>, vector<1x1x48xf32>
    %38 = vector.shape_cast %37 : vector<1x1x48xf32> to vector<1x48xf32>
    %c0_50 = arith.constant 0 : index
    %c0_51 = arith.constant 0 : index
    %c0_52 = arith.constant 0 : index
    %39 = vector.load %arg15[%c0_50, %c0_51, %c0_52] : memref<18x18x48xf32, #tpu.memory_space<vmem>>, vector<16x16x48xf32>
    %40 = vector.shape_cast %22 : vector<1x48xf32> to vector<1x1x48xf32>
    %41 = vector.broadcast %40 : vector<1x1x48xf32> to vector<16x16x48xf32>
    %42 = arith.mulf %39, %41 : vector<16x16x48xf32>
    %c0_53 = arith.constant 0 : index
    %c1_54 = arith.constant 1 : index
    %c0_55 = arith.constant 0 : index
    %43 = vector.load %arg15[%c0_53, %c1_54, %c0_55] : memref<18x18x48xf32, #tpu.memory_space<vmem>>, vector<16x16x48xf32>
    %44 = vector.shape_cast %24 : vector<1x48xf32> to vector<1x1x48xf32>
    %45 = vector.broadcast %44 : vector<1x1x48xf32> to vector<16x16x48xf32>
    %46 = arith.mulf %43, %45 : vector<16x16x48xf32>
    %47 = arith.addf %42, %46 : vector<16x16x48xf32>
    %c0_56 = arith.constant 0 : index
    %c2_57 = arith.constant 2 : index
    %c0_58 = arith.constant 0 : index
    %48 = vector.load %arg15[%c0_56, %c2_57, %c0_58] : memref<18x18x48xf32, #tpu.memory_space<vmem>>, vector<16x16x48xf32>
    %49 = vector.shape_cast %26 : vector<1x48xf32> to vector<1x1x48xf32>
    %50 = vector.broadcast %49 : vector<1x1x48xf32> to vector<16x16x48xf32>
    %51 = arith.mulf %48, %50 : vector<16x16x48xf32>
    %52 = arith.addf %47, %51 : vector<16x16x48xf32>
    %c1_59 = arith.constant 1 : index
    %c0_60 = arith.constant 0 : index
    %c0_61 = arith.constant 0 : index
    %53 = vector.load %arg15[%c1_59, %c0_60, %c0_61] : memref<18x18x48xf32, #tpu.memory_space<vmem>>, vector<16x16x48xf32>
    %54 = vector.shape_cast %28 : vector<1x48xf32> to vector<1x1x48xf32>
    %55 = vector.broadcast %54 : vector<1x1x48xf32> to vector<16x16x48xf32>
    %56 = arith.mulf %53, %55 : vector<16x16x48xf32>
    %57 = arith.addf %52, %56 : vector<16x16x48xf32>
    %c1_62 = arith.constant 1 : index
    %c1_63 = arith.constant 1 : index
    %c0_64 = arith.constant 0 : index
    %58 = vector.load %arg15[%c1_62, %c1_63, %c0_64] : memref<18x18x48xf32, #tpu.memory_space<vmem>>, vector<16x16x48xf32>
    %59 = vector.shape_cast %30 : vector<1x48xf32> to vector<1x1x48xf32>
    %60 = vector.broadcast %59 : vector<1x1x48xf32> to vector<16x16x48xf32>
    %61 = arith.mulf %58, %60 : vector<16x16x48xf32>
    %62 = arith.addf %57, %61 : vector<16x16x48xf32>
    %c1_65 = arith.constant 1 : index
    %c2_66 = arith.constant 2 : index
    %c0_67 = arith.constant 0 : index
    %63 = vector.load %arg15[%c1_65, %c2_66, %c0_67] : memref<18x18x48xf32, #tpu.memory_space<vmem>>, vector<16x16x48xf32>
    %64 = vector.shape_cast %32 : vector<1x48xf32> to vector<1x1x48xf32>
    %65 = vector.broadcast %64 : vector<1x1x48xf32> to vector<16x16x48xf32>
    %66 = arith.mulf %63, %65 : vector<16x16x48xf32>
    %67 = arith.addf %62, %66 : vector<16x16x48xf32>
    %c2_68 = arith.constant 2 : index
    %c0_69 = arith.constant 0 : index
    %c0_70 = arith.constant 0 : index
    %68 = vector.load %arg15[%c2_68, %c0_69, %c0_70] : memref<18x18x48xf32, #tpu.memory_space<vmem>>, vector<16x16x48xf32>
    %69 = vector.shape_cast %34 : vector<1x48xf32> to vector<1x1x48xf32>
    %70 = vector.broadcast %69 : vector<1x1x48xf32> to vector<16x16x48xf32>
    %71 = arith.mulf %68, %70 : vector<16x16x48xf32>
    %72 = arith.addf %67, %71 : vector<16x16x48xf32>
    %c2_71 = arith.constant 2 : index
    %c1_72 = arith.constant 1 : index
    %c0_73 = arith.constant 0 : index
    %73 = vector.load %arg15[%c2_71, %c1_72, %c0_73] : memref<18x18x48xf32, #tpu.memory_space<vmem>>, vector<16x16x48xf32>
    %74 = vector.shape_cast %36 : vector<1x48xf32> to vector<1x1x48xf32>
    %75 = vector.broadcast %74 : vector<1x1x48xf32> to vector<16x16x48xf32>
    %76 = arith.mulf %73, %75 : vector<16x16x48xf32>
    %77 = arith.addf %72, %76 : vector<16x16x48xf32>
    %c2_74 = arith.constant 2 : index
    %c2_75 = arith.constant 2 : index
    %c0_76 = arith.constant 0 : index
    %78 = vector.load %arg15[%c2_74, %c2_75, %c0_76] : memref<18x18x48xf32, #tpu.memory_space<vmem>>, vector<16x16x48xf32>
    %79 = vector.shape_cast %38 : vector<1x48xf32> to vector<1x1x48xf32>
    %80 = vector.broadcast %79 : vector<1x1x48xf32> to vector<16x16x48xf32>
    %81 = arith.mulf %78, %80 : vector<16x16x48xf32>
    %82 = arith.addf %77, %81 : vector<16x16x48xf32>
    %c0_77 = arith.constant 0 : index
    %c0_78 = arith.constant 0 : index
    %83 = vector.load %arg5[%c0_77, %c0_78] : memref<1x48xf32, #tpu.memory_space<vmem>>, vector<1x48xf32>
    %84 = vector.shape_cast %83 : vector<1x48xf32> to vector<1x1x48xf32>
    %85 = vector.broadcast %84 : vector<1x1x48xf32> to vector<16x16x48xf32>
    %86 = arith.addf %82, %85 : vector<16x16x48xf32>
    %cst_79 = arith.constant 0.000000e+00 : f32
    %cst_80 = arith.constant 6.000000e+00 : f32
    %87 = vector.broadcast %cst_79 : f32 to vector<16x16x48xf32>
    %88 = arith.maximumf %87, %86 : vector<16x16x48xf32>
    %89 = vector.broadcast %cst_80 : f32 to vector<16x16x48xf32>
    %90 = arith.minimumf %89, %88 : vector<16x16x48xf32>
    %91 = vector.shape_cast %90 : vector<16x16x48xf32> to vector<256x48xf32>
    %92 = arith.truncf %91 : vector<256x48xf32> to vector<256x48xbf16>
    %c0_81 = arith.constant 0 : index
    %c0_82 = arith.constant 0 : index
    %93 = vector.load %arg6[%c0_81, %c0_82] : memref<48x16xbf16, #tpu.memory_space<vmem>>, vector<48x16xbf16>
    %cst_83 = arith.constant dense<0.000000e+00> : vector<256x16xf32>
    %94 = tpu.matmul %92, %93, %cst_83 {dimension_numbers = #tpu.dot_dimension_numbers<[1], [0], [0], [1], [0, 0, 1, 1], [], []>} : vector<256x48xbf16>, vector<48x16xbf16>, vector<256x16xf32> -> vector<256x16xf32>
    %c0_84 = arith.constant 0 : index
    %c0_85 = arith.constant 0 : index
    %95 = vector.load %arg7[%c0_84, %c0_85] : memref<1x16xf32, #tpu.memory_space<vmem>>, vector<1x16xf32>
    %96 = vector.broadcast %95 : vector<1x16xf32> to vector<256x16xf32>
    %97 = arith.addf %94, %96 : vector<256x16xf32>
    %98 = arith.addf %97, %2 : vector<256x16xf32>
    %99 = arith.truncf %98 : vector<256x16xf32> to vector<256x16xbf16>
    %c0_86 = arith.constant 0 : index
    %c0_87 = arith.constant 0 : index
    %100 = vector.load %arg8[%c0_86, %c0_87] : memref<16x96xbf16, #tpu.memory_space<vmem>>, vector<16x96xbf16>
    %cst_88 = arith.constant dense<0.000000e+00> : vector<256x96xf32>
    %101 = tpu.matmul %99, %100, %cst_88 {dimension_numbers = #tpu.dot_dimension_numbers<[1], [0], [0], [1], [0, 0, 1, 1], [], []>} : vector<256x16xbf16>, vector<16x96xbf16>, vector<256x96xf32> -> vector<256x96xf32>
    %c0_89 = arith.constant 0 : index
    %c0_90 = arith.constant 0 : index
    %102 = vector.load %arg9[%c0_89, %c0_90] : memref<1x96xf32, #tpu.memory_space<vmem>>, vector<1x96xf32>
    %103 = vector.broadcast %102 : vector<1x96xf32> to vector<256x96xf32>
    %104 = arith.addf %101, %103 : vector<256x96xf32>
    %cst_91 = arith.constant 0.000000e+00 : f32
    %cst_92 = arith.constant 6.000000e+00 : f32
    %105 = vector.broadcast %cst_91 : f32 to vector<256x96xf32>
    %106 = arith.maximumf %105, %104 : vector<256x96xf32>
    %107 = vector.broadcast %cst_92 : f32 to vector<256x96xf32>
    %108 = arith.minimumf %107, %106 : vector<256x96xf32>
    %cst_93 = arith.constant 0.000000e+00 : f32
    %109 = vector.broadcast %cst_93 : f32 to vector<1x18x96xf32>
    %cst_94 = arith.constant 0.000000e+00 : f32
    %110 = vector.broadcast %cst_94 : f32 to vector<16x1x96xf32>
    %c0_95 = arith.constant 0 : index
    %c0_96 = arith.constant 0 : index
    %c0_97 = arith.constant 0 : index
    %111 = vector.load %arg16[%c0_95, %c0_96, %c0_97] : memref<18x18x96xf32, #tpu.memory_space<vmem>>, vector<1x18x96xf32>
    tpu.vector_store %arg16[%c0_95, %c0_96, %c0_97], %109 {strides = array<i32>} : memref<18x18x96xf32, #tpu.memory_space<vmem>>, vector<1x18x96xf32>,
    %c17_98 = arith.constant 17 : index
    %c0_99 = arith.constant 0 : index
    %c0_100 = arith.constant 0 : index
    %112 = vector.load %arg16[%c17_98, %c0_99, %c0_100] : memref<18x18x96xf32, #tpu.memory_space<vmem>>, vector<1x18x96xf32>
    tpu.vector_store %arg16[%c17_98, %c0_99, %c0_100], %109 {strides = array<i32>} : memref<18x18x96xf32, #tpu.memory_space<vmem>>, vector<1x18x96xf32>,
    %c1_101 = arith.constant 1 : index
    %c0_102 = arith.constant 0 : index
    %c0_103 = arith.constant 0 : index
    %113 = vector.load %arg16[%c1_101, %c0_102, %c0_103] : memref<18x18x96xf32, #tpu.memory_space<vmem>>, vector<16x1x96xf32>
    tpu.vector_store %arg16[%c1_101, %c0_102, %c0_103], %110 {strides = array<i32>} : memref<18x18x96xf32, #tpu.memory_space<vmem>>, vector<16x1x96xf32>,
    %c1_104 = arith.constant 1 : index
    %c17_105 = arith.constant 17 : index
    %c0_106 = arith.constant 0 : index
    %114 = vector.load %arg16[%c1_104, %c17_105, %c0_106] : memref<18x18x96xf32, #tpu.memory_space<vmem>>, vector<16x1x96xf32>
    tpu.vector_store %arg16[%c1_104, %c17_105, %c0_106], %110 {strides = array<i32>} : memref<18x18x96xf32, #tpu.memory_space<vmem>>, vector<16x1x96xf32>,
    %115 = vector.shape_cast %108 : vector<256x96xf32> to vector<16x16x96xf32>
    %c1_107 = arith.constant 1 : index
    %c1_108 = arith.constant 1 : index
    %c0_109 = arith.constant 0 : index
    %116 = vector.load %arg16[%c1_107, %c1_108, %c0_109] : memref<18x18x96xf32, #tpu.memory_space<vmem>>, vector<16x16x96xf32>
    tpu.vector_store %arg16[%c1_107, %c1_108, %c0_109], %115 {strides = array<i32>} : memref<18x18x96xf32, #tpu.memory_space<vmem>>, vector<16x16x96xf32>,
    %c0_110 = arith.constant 0 : index
    %c0_111 = arith.constant 0 : index
    %c0_112 = arith.constant 0 : index
    %117 = vector.load %arg10[%c0_110, %c0_111, %c0_112] : memref<3x3x96xf32, #tpu.memory_space<vmem>>, vector<1x1x96xf32>
    %118 = vector.shape_cast %117 : vector<1x1x96xf32> to vector<1x96xf32>
    %c0_113 = arith.constant 0 : index
    %c1_114 = arith.constant 1 : index
    %c0_115 = arith.constant 0 : index
    %119 = vector.load %arg10[%c0_113, %c1_114, %c0_115] : memref<3x3x96xf32, #tpu.memory_space<vmem>>, vector<1x1x96xf32>
    %120 = vector.shape_cast %119 : vector<1x1x96xf32> to vector<1x96xf32>
    %c0_116 = arith.constant 0 : index
    %c2_117 = arith.constant 2 : index
    %c0_118 = arith.constant 0 : index
    %121 = vector.load %arg10[%c0_116, %c2_117, %c0_118] : memref<3x3x96xf32, #tpu.memory_space<vmem>>, vector<1x1x96xf32>
    %122 = vector.shape_cast %121 : vector<1x1x96xf32> to vector<1x96xf32>
    %c1_119 = arith.constant 1 : index
    %c0_120 = arith.constant 0 : index
    %c0_121 = arith.constant 0 : index
    %123 = vector.load %arg10[%c1_119, %c0_120, %c0_121] : memref<3x3x96xf32, #tpu.memory_space<vmem>>, vector<1x1x96xf32>
    %124 = vector.shape_cast %123 : vector<1x1x96xf32> to vector<1x96xf32>
    %c1_122 = arith.constant 1 : index
    %c1_123 = arith.constant 1 : index
    %c0_124 = arith.constant 0 : index
    %125 = vector.load %arg10[%c1_122, %c1_123, %c0_124] : memref<3x3x96xf32, #tpu.memory_space<vmem>>, vector<1x1x96xf32>
    %126 = vector.shape_cast %125 : vector<1x1x96xf32> to vector<1x96xf32>
    %c1_125 = arith.constant 1 : index
    %c2_126 = arith.constant 2 : index
    %c0_127 = arith.constant 0 : index
    %127 = vector.load %arg10[%c1_125, %c2_126, %c0_127] : memref<3x3x96xf32, #tpu.memory_space<vmem>>, vector<1x1x96xf32>
    %128 = vector.shape_cast %127 : vector<1x1x96xf32> to vector<1x96xf32>
    %c2_128 = arith.constant 2 : index
    %c0_129 = arith.constant 0 : index
    %c0_130 = arith.constant 0 : index
    %129 = vector.load %arg10[%c2_128, %c0_129, %c0_130] : memref<3x3x96xf32, #tpu.memory_space<vmem>>, vector<1x1x96xf32>
    %130 = vector.shape_cast %129 : vector<1x1x96xf32> to vector<1x96xf32>
    %c2_131 = arith.constant 2 : index
    %c1_132 = arith.constant 1 : index
    %c0_133 = arith.constant 0 : index
    %131 = vector.load %arg10[%c2_131, %c1_132, %c0_133] : memref<3x3x96xf32, #tpu.memory_space<vmem>>, vector<1x1x96xf32>
    %132 = vector.shape_cast %131 : vector<1x1x96xf32> to vector<1x96xf32>
    %c2_134 = arith.constant 2 : index
    %c2_135 = arith.constant 2 : index
    %c0_136 = arith.constant 0 : index
    %133 = vector.load %arg10[%c2_134, %c2_135, %c0_136] : memref<3x3x96xf32, #tpu.memory_space<vmem>>, vector<1x1x96xf32>
    %134 = vector.shape_cast %133 : vector<1x1x96xf32> to vector<1x96xf32>
    %c0_137 = arith.constant 0 : index
    %c0_138 = arith.constant 0 : index
    %c0_139 = arith.constant 0 : index
    %135 = vector.load %arg16[%c0_137, %c0_138, %c0_139] : memref<18x18x96xf32, #tpu.memory_space<vmem>>, vector<16x16x96xf32>
    %136 = vector.shape_cast %118 : vector<1x96xf32> to vector<1x1x96xf32>
    %137 = vector.broadcast %136 : vector<1x1x96xf32> to vector<16x16x96xf32>
    %138 = arith.mulf %135, %137 : vector<16x16x96xf32>
    %c0_140 = arith.constant 0 : index
    %c1_141 = arith.constant 1 : index
    %c0_142 = arith.constant 0 : index
    %139 = vector.load %arg16[%c0_140, %c1_141, %c0_142] : memref<18x18x96xf32, #tpu.memory_space<vmem>>, vector<16x16x96xf32>
    %140 = vector.shape_cast %120 : vector<1x96xf32> to vector<1x1x96xf32>
    %141 = vector.broadcast %140 : vector<1x1x96xf32> to vector<16x16x96xf32>
    %142 = arith.mulf %139, %141 : vector<16x16x96xf32>
    %143 = arith.addf %138, %142 : vector<16x16x96xf32>
    %c0_143 = arith.constant 0 : index
    %c2_144 = arith.constant 2 : index
    %c0_145 = arith.constant 0 : index
    %144 = vector.load %arg16[%c0_143, %c2_144, %c0_145] : memref<18x18x96xf32, #tpu.memory_space<vmem>>, vector<16x16x96xf32>
    %145 = vector.shape_cast %122 : vector<1x96xf32> to vector<1x1x96xf32>
    %146 = vector.broadcast %145 : vector<1x1x96xf32> to vector<16x16x96xf32>
    %147 = arith.mulf %144, %146 : vector<16x16x96xf32>
    %148 = arith.addf %143, %147 : vector<16x16x96xf32>
    %c1_146 = arith.constant 1 : index
    %c0_147 = arith.constant 0 : index
    %c0_148 = arith.constant 0 : index
    %149 = vector.load %arg16[%c1_146, %c0_147, %c0_148] : memref<18x18x96xf32, #tpu.memory_space<vmem>>, vector<16x16x96xf32>
    %150 = vector.shape_cast %124 : vector<1x96xf32> to vector<1x1x96xf32>
    %151 = vector.broadcast %150 : vector<1x1x96xf32> to vector<16x16x96xf32>
    %152 = arith.mulf %149, %151 : vector<16x16x96xf32>
    %153 = arith.addf %148, %152 : vector<16x16x96xf32>
    %c1_149 = arith.constant 1 : index
    %c1_150 = arith.constant 1 : index
    %c0_151 = arith.constant 0 : index
    %154 = vector.load %arg16[%c1_149, %c1_150, %c0_151] : memref<18x18x96xf32, #tpu.memory_space<vmem>>, vector<16x16x96xf32>
    %155 = vector.shape_cast %126 : vector<1x96xf32> to vector<1x1x96xf32>
    %156 = vector.broadcast %155 : vector<1x1x96xf32> to vector<16x16x96xf32>
    %157 = arith.mulf %154, %156 : vector<16x16x96xf32>
    %158 = arith.addf %153, %157 : vector<16x16x96xf32>
    %c1_152 = arith.constant 1 : index
    %c2_153 = arith.constant 2 : index
    %c0_154 = arith.constant 0 : index
    %159 = vector.load %arg16[%c1_152, %c2_153, %c0_154] : memref<18x18x96xf32, #tpu.memory_space<vmem>>, vector<16x16x96xf32>
    %160 = vector.shape_cast %128 : vector<1x96xf32> to vector<1x1x96xf32>
    %161 = vector.broadcast %160 : vector<1x1x96xf32> to vector<16x16x96xf32>
    %162 = arith.mulf %159, %161 : vector<16x16x96xf32>
    %163 = arith.addf %158, %162 : vector<16x16x96xf32>
    %c2_155 = arith.constant 2 : index
    %c0_156 = arith.constant 0 : index
    %c0_157 = arith.constant 0 : index
    %164 = vector.load %arg16[%c2_155, %c0_156, %c0_157] : memref<18x18x96xf32, #tpu.memory_space<vmem>>, vector<16x16x96xf32>
    %165 = vector.shape_cast %130 : vector<1x96xf32> to vector<1x1x96xf32>
    %166 = vector.broadcast %165 : vector<1x1x96xf32> to vector<16x16x96xf32>
    %167 = arith.mulf %164, %166 : vector<16x16x96xf32>
    %168 = arith.addf %163, %167 : vector<16x16x96xf32>
    %c2_158 = arith.constant 2 : index
    %c1_159 = arith.constant 1 : index
    %c0_160 = arith.constant 0 : index
    %169 = vector.load %arg16[%c2_158, %c1_159, %c0_160] : memref<18x18x96xf32, #tpu.memory_space<vmem>>, vector<16x16x96xf32>
    %170 = vector.shape_cast %132 : vector<1x96xf32> to vector<1x1x96xf32>
    %171 = vector.broadcast %170 : vector<1x1x96xf32> to vector<16x16x96xf32>
    %172 = arith.mulf %169, %171 : vector<16x16x96xf32>
    %173 = arith.addf %168, %172 : vector<16x16x96xf32>
    %c2_161 = arith.constant 2 : index
    %c2_162 = arith.constant 2 : index
    %c0_163 = arith.constant 0 : index
    %174 = vector.load %arg16[%c2_161, %c2_162, %c0_163] : memref<18x18x96xf32, #tpu.memory_space<vmem>>, vector<16x16x96xf32>
    %175 = vector.shape_cast %134 : vector<1x96xf32> to vector<1x1x96xf32>
    %176 = vector.broadcast %175 : vector<1x1x96xf32> to vector<16x16x96xf32>
    %177 = arith.mulf %174, %176 : vector<16x16x96xf32>
    %178 = arith.addf %173, %177 : vector<16x16x96xf32>
    %c0_164 = arith.constant 0 : index
    %c0_165 = arith.constant 0 : index
    %179 = vector.load %arg11[%c0_164, %c0_165] : memref<1x96xf32, #tpu.memory_space<vmem>>, vector<1x96xf32>
    %180 = vector.shape_cast %179 : vector<1x96xf32> to vector<1x1x96xf32>
    %181 = vector.broadcast %180 : vector<1x1x96xf32> to vector<16x16x96xf32>
    %182 = arith.addf %178, %181 : vector<16x16x96xf32>
    %cst_166 = arith.constant 0.000000e+00 : f32
    %cst_167 = arith.constant 6.000000e+00 : f32
    %183 = vector.broadcast %cst_166 : f32 to vector<16x16x96xf32>
    %184 = arith.maximumf %183, %182 : vector<16x16x96xf32>
    %185 = vector.broadcast %cst_167 : f32 to vector<16x16x96xf32>
    %186 = arith.minimumf %185, %184 : vector<16x16x96xf32>
    %187 = vector.shape_cast %186 : vector<16x16x96xf32> to vector<256x96xf32>
    %188 = arith.truncf %187 : vector<256x96xf32> to vector<256x96xbf16>
    %c0_168 = arith.constant 0 : index
    %c0_169 = arith.constant 0 : index
    %189 = vector.load %arg12[%c0_168, %c0_169] : memref<96x16xbf16, #tpu.memory_space<vmem>>, vector<96x16xbf16>
    %cst_170 = arith.constant dense<0.000000e+00> : vector<256x16xf32>
    %190 = tpu.matmul %188, %189, %cst_170 {dimension_numbers = #tpu.dot_dimension_numbers<[1], [0], [0], [1], [0, 0, 1, 1], [], []>} : vector<256x96xbf16>, vector<96x16xbf16>, vector<256x16xf32> -> vector<256x16xf32>
    %c0_171 = arith.constant 0 : index
    %c0_172 = arith.constant 0 : index
    %191 = vector.load %arg13[%c0_171, %c0_172] : memref<1x16xf32, #tpu.memory_space<vmem>>, vector<1x16xf32>
    %192 = vector.broadcast %191 : vector<1x16xf32> to vector<256x16xf32>
    %193 = arith.addf %190, %192 : vector<256x16xf32>
    %194 = arith.addf %193, %98 : vector<256x16xf32>
    %195 = vector.shape_cast %194 : vector<256x16xf32> to vector<16x16x16xf32>
    %c0_173 = arith.constant 0 : index
    %c0_174 = arith.constant 0 : index
    %c0_175 = arith.constant 0 : index
    %c0_176 = arith.constant 0 : index
    %196 = vector.load %arg14[%c0_173, %c0_174, %c0_175, %c0_176] : memref<1x16x16x16xf32, #tpu.memory_space<vmem>>, vector<1x16x16x16xf32>
    %197 = vector.shape_cast %196 : vector<1x16x16x16xf32> to vector<16x16x16xf32>
    %198 = vector.shape_cast %195 : vector<16x16x16xf32> to vector<1x16x16x16xf32>
    tpu.vector_store %arg14[%c0_173, %c0_174, %c0_175, %c0_176], %198 {strides = array<i32>} : memref<1x16x16x16xf32, #tpu.memory_space<vmem>>, vector<1x16x16x16xf32>,
    return
  }
  func.func @transform_0(%arg0: i32) -> (i32, i32, i32, i32) {
    %c0_i32 = arith.constant 0 : i32
    %c0_i32_0 = arith.constant 0 : i32
    %c0_i32_1 = arith.constant 0 : i32
    %c0_i32_2 = arith.constant 0 : i32
    return %arg0, %c0_i32, %c0_i32_0, %c0_i32_1 : i32, i32, i32, i32
  }
  func.func @transform_1(%arg0: i32) -> (i32, i32) {
    %c0_i32 = arith.constant 0 : i32
    %c0_i32_0 = arith.constant 0 : i32
    %c0_i32_1 = arith.constant 0 : i32
    return %c0_i32, %c0_i32_0 : i32, i32
  }
  func.func @transform_2(%arg0: i32) -> (i32, i32) {
    %c0_i32 = arith.constant 0 : i32
    %c0_i32_0 = arith.constant 0 : i32
    %c0_i32_1 = arith.constant 0 : i32
    return %c0_i32, %c0_i32_0 : i32, i32
  }
  func.func @transform_3(%arg0: i32) -> (i32, i32, i32) {
    %c0_i32 = arith.constant 0 : i32
    %c0_i32_0 = arith.constant 0 : i32
    %c0_i32_1 = arith.constant 0 : i32
    %c0_i32_2 = arith.constant 0 : i32
    return %c0_i32, %c0_i32_0, %c0_i32_1 : i32, i32, i32
  }
  func.func @transform_4(%arg0: i32) -> (i32, i32) {
    %c0_i32 = arith.constant 0 : i32
    %c0_i32_0 = arith.constant 0 : i32
    %c0_i32_1 = arith.constant 0 : i32
    return %c0_i32, %c0_i32_0 : i32, i32
  }
  func.func @transform_5(%arg0: i32) -> (i32, i32) {
    %c0_i32 = arith.constant 0 : i32
    %c0_i32_0 = arith.constant 0 : i32
    %c0_i32_1 = arith.constant 0 : i32
    return %c0_i32, %c0_i32_0 : i32, i32
  }
  func.func @transform_6(%arg0: i32) -> (i32, i32) {
    %c0_i32 = arith.constant 0 : i32
    %c0_i32_0 = arith.constant 0 : i32
    %c0_i32_1 = arith.constant 0 : i32
    return %c0_i32, %c0_i32_0 : i32, i32
  }
  func.func @transform_7(%arg0: i32) -> (i32, i32) {
    %c0_i32 = arith.constant 0 : i32
    %c0_i32_0 = arith.constant 0 : i32
    %c0_i32_1 = arith.constant 0 : i32
    return %c0_i32, %c0_i32_0 : i32, i32
  }
  func.func @transform_8(%arg0: i32) -> (i32, i32) {
    %c0_i32 = arith.constant 0 : i32
    %c0_i32_0 = arith.constant 0 : i32
    %c0_i32_1 = arith.constant 0 : i32
    return %c0_i32, %c0_i32_0 : i32, i32
  }
  func.func @transform_9(%arg0: i32) -> (i32, i32, i32) {
    %c0_i32 = arith.constant 0 : i32
    %c0_i32_0 = arith.constant 0 : i32
    %c0_i32_1 = arith.constant 0 : i32
    %c0_i32_2 = arith.constant 0 : i32
    return %c0_i32, %c0_i32_0, %c0_i32_1 : i32, i32, i32
  }
  func.func @transform_10(%arg0: i32) -> (i32, i32) {
    %c0_i32 = arith.constant 0 : i32
    %c0_i32_0 = arith.constant 0 : i32
    %c0_i32_1 = arith.constant 0 : i32
    return %c0_i32, %c0_i32_0 : i32, i32
  }
  func.func @transform_11(%arg0: i32) -> (i32, i32) {
    %c0_i32 = arith.constant 0 : i32
    %c0_i32_0 = arith.constant 0 : i32
    %c0_i32_1 = arith.constant 0 : i32
    return %c0_i32, %c0_i32_0 : i32, i32
  }
  func.func @transform_12(%arg0: i32) -> (i32, i32) {
    %c0_i32 = arith.constant 0 : i32
    %c0_i32_0 = arith.constant 0 : i32
    %c0_i32_1 = arith.constant 0 : i32
    return %c0_i32, %c0_i32_0 : i32, i32
  }
  func.func @transform_13(%arg0: i32) -> (i32, i32, i32, i32) {
    %c0_i32 = arith.constant 0 : i32
    %c0_i32_0 = arith.constant 0 : i32
    %c0_i32_1 = arith.constant 0 : i32
    %c0_i32_2 = arith.constant 0 : i32
    return %arg0, %c0_i32, %c0_i32_0, %c0_i32_1 : i32, i32, i32, i32
  }
}

</mosaic_0001>

<bundles_post_ra>
// kernel: tpu_custom_call.1
= control target key start
LH: loop header
LB: loop body
LE: loop exit
PB: predicated region body
PF: predicated region fallthrough
CT: control target
= control target key end

     0   :  { %s6179_s0 = inlined_call_operand.hbm [shape: f32[2,16,16,16], index: 0, kind: input, shape index: {}]   ;;  %s6180_s1 = inlined_call_operand.vmem [shape: bf16[16,48], index: 1, kind: input, shape index: {}]   ;;  %s6181_s2 = inlined_call_operand.vmem [shape: f32[1,48], index: 2, kind: input, shape index: {}]   ;;  %s6182_s3 = inlined_call_operand.vmem [shape: f32[3,3,48], index: 3, kind: input, shape index: {}]   ;;  %s6183_s4 = inlined_call_operand.vmem [shape: f32[1,48], index: 4, kind: input, shape index: {}]   ;;  %s6184_s5 = inlined_call_operand.vmem [shape: bf16[48,16], index: 5, kind: input, shape index: {}]   ;;  %s6185_s6 = inlined_call_operand.vmem [shape: f32[1,16], index: 6, kind: input, shape index: {}]   ;;  %s6186_s7 = inlined_call_operand.vmem [shape: bf16[16,96], index: 7, kind: input, shape index: {}]   ;;  %s6187_s8 = inlined_call_operand.vmem [shape: f32[1,96], index: 8, kind: input, shape index: {}]   ;;  %s6188_s9 = inlined_call_operand.vmem [shape: f32[3,3,96], index: 9, kind: input, shape index: {}]   ;;  %s6189_s10 = inlined_call_operand.vmem [shape: f32[1,96], index: 10, kind: input, shape index: {}]   ;;  %s6190_s11 = inlined_call_operand.vmem [shape: bf16[96,16], index: 11, kind: input, shape index: {}]   ;;  %s6191_s12 = inlined_call_operand.vmem [shape: f32[1,16], index: 12, kind: input, shape index: {}]   ;;  %s6192_s13 = inlined_call_operand.hbm [shape: f32[2,16,16,16], index: 13, kind: output, shape index: {}]  }
   0x1   :  { %6211 = sst [smem:[#allocation26_spill]] %s6179_s0 }
   0x2   :  { %6212 = sst [smem:[#allocation27_spill]] %s6192_s13 }
   0x3   :  { %18 = vsyncpa [#allocation5], 0 }
   0x4   :  { %20 = vsyncpa [#allocation5 + $0x1], 0 }
   0x5   :  { %21 = vsyncpa [#allocation6], 0 }
   0x6   :  { %23 = vsyncpa [#allocation6 + $0x1], 0  ;;  %s4030_s25 = smov 0   ;;  %s4032_s26 = smov 0  }
   0x7   :  { %s4034_s27 = smov 0   ;;  %s4036_s28 = smov 0  }
   0x8 LB: > { %6213 = sst [smem:[#allocation10_spill]] %s3941_s25  ;;  %s4051_s29 = sadd.s32 4294967295, %s3953_s28   ;;  %s3953_s28 = sphi %s4036_s28, %s6250_s28   ;;  %s3949_s27 = sphi %s4034_s27, %s6255_s27   ;;  %s3945_s26 = sphi %s4032_s26, %s6254_s26   ;;  %s3941_s25 = sphi %s4030_s25, %s6253_s25  }
   0x9   : > { %6214 = sst [smem:[#allocation11_spill]] %s3949_s27  ;;  %s3580_s30 = sadd.s32 4294967294, %s3953_s28  }
   0xa   : > { %s4055_s14 = sadd.s32 1, %s3953_s28   ;;  %s36_s15 = sadd.s32 1, %s3949_s27 }
   0xb   : > { %6215 = sst [smem:[#allocation12_spill]] %s4055_s14  ;;  %s33_s16 = ssub.s32 %s3953_s28, %s4055_s14 }
   0xc   : > { %p43_p0 = scmp.ne.s32.totalorder %s3949_s27, %s3945_s26  ;;  %p34_p1 = scmp.eq.s32.totalorder %s33_s16, 0 }
   0xd   : > { %p44_p2 = scmp.eq.s32.totalorder %s3953_s28, 0  ;;  %p49_p3 = scmp.ne.s32.totalorder %s3945_s26, %s3941_s25 }
   0xe   : > { %p50_p4 = scmp.eq.s32.totalorder %s4051_s29, 0  ;;  %p325_p7 = scmp.eq.s32.totalorder %s4051_s29, 1 }
   0xf   : > { %s4067_s17 = scalar_select %p34_p1, %s3949_s27, %s36_s15  }
  0x10   : > { %p4069_p5 = por %p44_p2, %p43_p0  ;;  %p4073_p6 = por %p50_p4, %p49_p3 }
  0x11   : > { %6216 = sst [smem:[#allocation13_spill]] %s4067_s17  ;;  %p331_p8 = scmp.eq.s32.totalorder %s3580_s30, 1 }
  0x12   : > { %p3739_p10 = scmp.lt.s32.totalorder %s3953_s28, 2  ;;  %p4080_p11 = por %p325_p7, %p43_p0 }
  0x13   : > { %p4084_p12 = por %p331_p8, %p49_p3  ;;  %s387_s22 = sand.u32 1, %s3949_s27  }
  0x14   : > { %s6219_s20 = scalar_select %p4080_p11, 1, 0 }
  0x15   : > { %s6221_s21 = scalar_select %p4084_p12, 1, 0 }
  0x16   : > { %6220 = sst [smem:[#allocation14_spill]] %s6219_s20  ;;  %s3714_s23 = sshll.u32 %s3953_s28, 8 }
  0x17   : > { %6222 = sst [smem:[#allocation15_spill]] %s6221_s21  ;;  %s3583_s24 = sshll.u32 %s387_s22, 8 }
  0x18   : > { %s6223_s0 = sld [smem:[#allocation26_spill]]  ;;  %s391_s30 = scalar_lea.vmem [#allocation4], %s3583_s24 }
  0x19   : > { %s399_s25 = sshll.u32 %s391_s30, 4  ;;  %p4095_p13 = pnand %p3739_p10, %p4069_p5  ;;  %s400_s25 = int_to_ptr.vmem [resolvable:$true] %s399_s25 }
  0x1a   : > { %p3586_p0 = scmp.ge.s32.totalorder %s3953_s28, 1  ;;  %p407_p1 = scmp.lt.s32.totalorder %s3953_s28, 3 }
  0x1b   : > { %s388_s27 = scalar_lea.sflag [#allocation5], %s387_s22  ;;  %p3861_p3 = pneg %p4095_p13 }
  0x1e   : > { %s396_s17 = scalar_lea.hbm %s6223_s0, %s3714_s23  ;;  %s3864_s18 = scalar_lea.hbm %s6223_s0, 512 }
  0x1f   : > { %s397_s14 = sshll.u32 %s396_s17, 4  ;;  %s398_s14 = int_to_ptr.hbm [resolvable:$true] %s397_s14 }
  0x20   : > { %s3857_s21 = sshra.s32 %s398_s14, 4  ;;  %s3858_s21 = int_to_ptr.hbm [resolvable:$true] %s3857_s21 }
  0x21   : > { %s3859_s20 = scalar_lea.hbm %s3858_s21, 256  ;;  %p3865_p5 = scmp.lt.s32.totalorder %s3858_s21, %s6223_s0 }
  0x22   : > { %p3860_p2 = scmp.ne.s32.totalorder %s3858_s21, %s3859_s20  ;;  %p3866_p8 = scmp.lt.s32.totalorder %s3864_s18, %s3859_s20 }
  0x24   : > { %p3862_p4 = pnand %p3861_p3, %p3860_p2  ;;  %p3867_p10 = por %p3866_p8, %p3865_p5 }
  0x26   : > { %p3863_p7 = pneg %p3862_p4 }
  0x28   : > { %p3868_p9 = pnand %p3867_p10, %p3863_p7 }
  0x2a   : > { %3871 = shalt.err (!%p3868_p9)
}
  0x2b   : > { %s3955_s22 = smov 128   ;;  %s3956_s16 = smov 8  }
  0x2c   : > { %3734 = dma.hbm_to_vmem [thread:$0]  (!%p4095_p13), %s398_s14, 4096, %s400_s25, %s388_s27, %s3955_s22, %s3955_s22, %s3956_s16  }
  0x2d   : > { %p408_p2 = pnand %p3586_p0, %p407_p1 }
  0x2f   : > { %411 = sbr.rel (%p408_p2) target bundleno = 954 (0x3ba), region = 72 }
  0x34   : > { %s4116_s30 = sand.u32 1, %s3945_s26  }
  0x35   : > { %s3587_s20 = sshll.u32 %s4116_s30, 8  ;;  %s414_s21 = scalar_lea.sflag [#allocation5], %s4116_s30 }
  0x36   : > { %s4122_s17 = scalar_lea.vmem [#allocation4], %s3587_s20 }
  0x37   : > { %3932 = dma.done.wait (%p4073_p6), %s414_s21, 4096  }
  0x38   : > { %3934 = vsyncadd (%p4073_p6), %s414_s21, 4294963200  ;;  %v3715_v0 = vld [vmem:[%s6180_s1] sm:$0xff]  ;;  %v463_v2 = vld [vmem:[%s4122_s17 + $0x8] sm:$0xff]  ;;  %vm522_vm0 = vcmask 130048   ;;  %vm724_vm1 = vcmask 392192   ;;  %v3957_v22 = vmov 0.0  }
  0x39   : > { %v462_v1 = vld [vmem:[%s4122_s17] sm:$0xff]  ;;  %578 = vmatpush.bf16.msra.mxu0 %v3715_v0  ;;  %v464_v4 = vld [vmem:[%s4122_s17 + $0x10] sm:$0xff]  ;;  %v465_v5 = vld [vmem:[%s4122_s17 + $0x18] sm:$0xff]  ;;  %725 = vst.msk [vmem:[#allocation2] sm:$0xff] %vm724_vm1, %v3957_v22  ;;  %vm734_vm2 = vcmask 385024   ;;  %vm727_vm3 = vcmask 386048  }
  0x3a   : > { %v494_v3 = vpack.c.bf16 %v463_v2, %v462_v1  ;;  %v495_v6 = vpack.c.bf16 %v465_v5, %v464_v4  ;;  %v466_v7 = vld [vmem:[%s4122_s17 + $0x20] sm:$0xff]  ;;  %v467_v8 = vld [vmem:[%s4122_s17 + $0x28] sm:$0xff]  ;;  %v468_v10 = vld [vmem:[%s4122_s17 + $0x30] sm:$0xff]  ;;  %726 = vst.msk [vmem:[#allocation2 + $0x8] sm:$0xff] %vm724_vm1, %v3957_v22  ;;  %vm2194_vm4 = vcmask 785408   ;;  %vm2204_vm5 = vcmask 778240  }
  0x3b   : > { %v496_v9 = vpack.c.bf16 %v467_v8, %v466_v7  ;;  %v469_v11 = vld [vmem:[%s4122_s17 + $0x38] sm:$0xff]  ;;  %v470_v13 = vld [vmem:[%s4122_s17 + $0x40] sm:$0xff]  ;;  %v471_v14 = vld [vmem:[%s4122_s17 + $0x48] sm:$0xff]  ;;  %730 = vst.msk [vmem:[#allocation2 + $0x198] sm:$0xff] %vm724_vm1, %v3957_v22  ;;  %vm2197_vm6 = vcmask 779264   ;;  %s5839_s18 = scalar_lea.vmem [#allocation7], %s3587_s20 }
  0x3c   : > { %3593 = vmatmul.msk.bf16.vlgmr.msra.gmra.mxu0 %vm522_vm0, %v494_v3  ;;  %v497_v12 = vpack.c.bf16 %v469_v11, %v468_v10  ;;  %v498_v15 = vpack.c.bf16 %v471_v14, %v470_v13  ;;  %v472_v16 = vld [vmem:[%s4122_s17 + $0x50] sm:$0xff]  ;;  %v473_v17 = vld [vmem:[%s4122_s17 + $0x58] sm:$0xff]  ;;  %v474_v19 = vld [vmem:[%s4122_s17 + $0x60] sm:$0xff]  ;;  %731 = vst.msk [vmem:[#allocation2 + $0x1a0] sm:$0xff] %vm724_vm1, %v3957_v22  ;;  %s3726_s20 = sshll.u32 %s4051_s29, 8  ;;  %s6244_s15 = sld [smem:[#allocation27_spill]] }
  0x3d   : > { %v499_v18 = vpack.c.bf16 %v473_v17, %v472_v16  ;;  %v475_v20 = vld [vmem:[%s4122_s17 + $0x68] sm:$0xff]  ;;  %735 = vst.msk [vmem:[#allocation2 + $0x18] sm:$0x1] %vm734_vm2, %v3957_v22  ;;  %v476_v23 = vld [vmem:[%s4122_s17 + $0x70] sm:$0xff]  ;;  %v477_v24 = vld [vmem:[%s4122_s17 + $0x78] sm:$0xff]  ;;  %s3504_s21 = sshll.u32 %s5839_s18, 4  ;;  %s3505_s21 = int_to_ptr.vmem [resolvable:$true] %s3504_s21 }
  0x3e   : > { %v500_v21 = vpack.c.bf16 %v475_v20, %v474_v19  ;;  %736 = vst.msk [vmem:[#allocation2 + $0x30] sm:$0x1] %vm734_vm2, %v3957_v22  ;;  %v501_v25 = vpack.c.bf16 %v477_v24, %v476_v23  ;;  %v478_v26 = vld [vmem:[%s4122_s17 + $0x80] sm:$0xff]  ;;  %v479_v27 = vld [vmem:[%s4122_s17 + $0x88] sm:$0xff]  ;;  %v3718_v36 = vld [vmem:[%s6184_s5 + $0x10] sm:$0xff]  ;;  %s3492_s29 = scalar_lea.sflag [#allocation6], %s4116_s30 }
  0x3f   : > { %751 = vst.msk [vmem:[#allocation2 + $0x29] sm:$0x1] %vm734_vm2, %v3957_v22  ;;  %v4210_v28 = vld [vmem:[%s6181_s2] ss:$0 sm:$0xff]  ;;  %v502_v29 = vpack.c.bf16 %v479_v27, %v478_v26  ;;  %v4251_v40 = vld [vmem:[%s6182_s3 + $0x1] ss:$0 sm:$0xff]  ;;  %1849 = vmatpush.bf16.msra.mxu1 %v3718_v36 }
  0x40   : > { %752 = vst.msk [vmem:[#allocation2 + $0x41] sm:$0x1] %vm734_vm2, %v3957_v22  ;;  %v810_v38 = vld [vmem:[#allocation2] sm:$0xff]  ;;  %v480_v41 = vld [vmem:[%s4122_s17 + $0x90] sm:$0xff]  ;;  %v481_v42 = vld [vmem:[%s4122_s17 + $0x98] sm:$0xff] }
  0x41   : > { %728 = vst.msk [vmem:[#allocation2 + $0x10] sm:$0x3] %vm727_vm3, %v3957_v22  ;;  %v4246_v39 = vld [vmem:[%s6182_s3] ss:$0 sm:$0xff]  ;;  %v875_v43 = vld [vmem:[#allocation2 + $0x1] sm:$0xff]  ;;  %v503_v47 = vpack.c.bf16 %v481_v42, %v480_v41 }
  0x42   : > { %732 = vst.msk [vmem:[#allocation2 + $0x1a8] sm:$0x3] %vm727_vm3, %v3957_v22  ;;  %v3717_v45 = vld [vmem:[%s6184_s5 + $0x8] sm:$0xff]  ;;  %v4261_v46 = vld [vmem:[%s6182_s3 + $0x2] ss:$0 sm:$0xff]  ;;  %v843_v48 = vmul.f32 %v4246_v39, %v810_v38  ;;  %v908_v49 = vmul.f32 %v4251_v40, %v875_v43  ;;  %s3503_s16 = scalar_lea.hbm %s6244_s15, %s3726_s20  ;;  %s3907_s23 = scalar_lea.hbm %s6244_s15, 512 }
  0x43   : > { %737 = vst.msk [vmem:[#allocation2 + $0x48] sm:$0x1] %vm734_vm2, %v3957_v22  ;;  %v972_v50 = vld [vmem:[#allocation2 + $0x2] sm:$0xff]  ;;  %1850 = vmatpush.bf16.msra.mxu1 %v3717_v45  ;;  %s3506_s13 = sshll.u32 %s3503_s16, 4  ;;  %s3507_s13 = int_to_ptr.hbm [resolvable:$true] %s3506_s13 }
  0x44   : > { %738 = vst.msk [vmem:[#allocation2 + $0x60] sm:$0x1] %vm734_vm2, %v3957_v22  ;;  %v811_v52 = vld [vmem:[#allocation2 + $0x8] sm:$0xff]  ;;  %v3716_v55 = vld [vmem:[%s6184_s5] sm:$0xff]  ;;  %v1005_v56 = vmul.f32 %v4261_v46, %v972_v50  ;;  %v940_v60 = vadd.f32 %v908_v49, %v843_v48  ;;  %s3901_s25 = sshra.s32 %s3507_s13, 4  ;;  %s3902_s25 = int_to_ptr.hbm [resolvable:$true] %s3901_s25 }
  0x45   : > { %739 = vst.msk [vmem:[#allocation2 + $0x78] sm:$0x1] %vm734_vm2, %v3957_v22  ;;  %v844_v58 = vmul.f32 %v4246_v39, %v811_v52  ;;  %v4277_v61 = vld [vmem:[%s6182_s3 + $0x4] ss:$0 sm:$0xff]  ;;  %v4286_v8 = vld [vmem:[%s6182_s3 + $0x5] ss:$0 sm:$0xff]  ;;  %p3908_p0 = scmp.lt.s32.totalorder %s3902_s25, %s6244_s15 }
  0x46   : > { %740 = vst.msk [vmem:[#allocation2 + $0x90] sm:$0x1] %vm734_vm2, %v3957_v22  ;;  %v1037_v3 = vadd.f32 %v1005_v56, %v940_v60  ;;  %v4297_v16 = vld [vmem:[%s6182_s3 + $0x8] ss:$0 sm:$0xff]  ;;  %v482_v17 = vld [vmem:[%s4122_s17 + $0xa0] sm:$0xff]  ;;  %s3903_s27 = scalar_lea.hbm %s3902_s25, 256 }
  0x47   : > { %741 = vst.msk [vmem:[#allocation2 + $0xa8] sm:$0x1] %vm734_vm2, %v3957_v22  ;;  %1851 = vmatpush.bf16.msra.mxu1 %v3716_v55  ;;  %p3904_p6 = scmp.ne.s32.totalorder %s3902_s25, %s3903_s27  ;;  %p3909_p1 = scmp.lt.s32.totalorder %s3907_s23, %s3903_s27 }
  0x48   : > { %742 = vst.msk [vmem:[#allocation2 + $0xc0] sm:$0x1] %vm734_vm2, %v3957_v22  ;;  %v876_v53 = vld [vmem:[#allocation2 + $0x9] sm:$0xff] }
  0x49   : > { %743 = vst.msk [vmem:[#allocation2 + $0xd8] sm:$0x1] %vm734_vm2, %v3957_v22  ;;  %v909_v59 = vmul.f32 %v4251_v40, %v876_v53  ;;  %v973_v62 = vld [vmem:[#allocation2 + $0xa] sm:$0xff]  ;;  %p3905_p9 = pnand %p3904_p6, %p4080_p11  ;;  %p3910_p3 = por %p3909_p1, %p3908_p0 }
  0x4a   : > { %744 = vst.msk [vmem:[#allocation2 + $0xf0] sm:$0x1] %vm734_vm2, %v3957_v22  ;;  %v1006_v2 = vmul.f32 %v4261_v46, %v973_v62  ;;  %v4339_v62 = vld [vmem:[%s6183_s4] ss:$0 sm:$0xff] }
  0x4b   : > { %745 = vst.msk [vmem:[#allocation2 + $0x108] sm:$0x1] %vm734_vm2, %v3957_v22  ;;  %v941_v1 = vadd.f32 %v909_v59, %v844_v58  ;;  %p3906_p13 = pneg %p3905_p9 }
  0x4c   : > { %3594 = vmatmul.msk.bf16.gmra.mxu0 %vm522_vm0, %v495_v6  ;;  %746 = vst.msk [vmem:[#allocation2 + $0x120] sm:$0x1] %vm734_vm2, %v3957_v22 }
  0x4d   : > { %747 = vst.msk [vmem:[#allocation2 + $0x138] sm:$0x1] %vm734_vm2, %v3957_v22  ;;  %v1038_v13 = vadd.f32 %v1006_v2, %v941_v1  ;;  %p3911_p4 = pnand %p3910_p3, %p3906_p13 }
  0x4e   : > { %748 = vst.msk [vmem:[#allocation2 + $0x150] sm:$0x1] %vm734_vm2, %v3957_v22 }
  0x4f   : > { %749 = vst.msk [vmem:[#allocation2 + $0x168] sm:$0x1] %vm734_vm2, %v3957_v22 }
  0x50   : > { %750 = vst.msk [vmem:[#allocation2 + $0x180] sm:$0x1] %vm734_vm2, %v3957_v22 }
  0x51   : > { %753 = vst.msk [vmem:[#allocation2 + $0x59] sm:$0x1] %vm734_vm2, %v3957_v22 }
  0x52   : > { %754 = vst.msk [vmem:[#allocation2 + $0x71] sm:$0x1] %vm734_vm2, %v3957_v22 }
  0x53   : > { %755 = vst.msk [vmem:[#allocation2 + $0x89] sm:$0x1] %vm734_vm2, %v3957_v22 }
  0x54   : > { %756 = vst.msk [vmem:[#allocation2 + $0xa1] sm:$0x1] %vm734_vm2, %v3957_v22 }
  0x55   : > { %757 = vst.msk [vmem:[#allocation2 + $0xb9] sm:$0x1] %vm734_vm2, %v3957_v22 }
  0x56   : > { %758 = vst.msk [vmem:[#allocation2 + $0xd1] sm:$0x1] %vm734_vm2, %v3957_v22 }
  0x57   : > { %759 = vst.msk [vmem:[#allocation2 + $0xe9] sm:$0x1] %vm734_vm2, %v3957_v22 }
  0x58   : > { %760 = vst.msk [vmem:[#allocation2 + $0x101] sm:$0x1] %vm734_vm2, %v3957_v22 }
  0x59   : > { %761 = vst.msk [vmem:[#allocation2 + $0x119] sm:$0x1] %vm734_vm2, %v3957_v22 }
  0x5a   : > { %762 = vst.msk [vmem:[#allocation2 + $0x131] sm:$0x1] %vm734_vm2, %v3957_v22 }
  0x5b   : > { %763 = vst.msk [vmem:[#allocation2 + $0x149] sm:$0x1] %vm734_vm2, %v3957_v22 }
  0x5c   : > { %3595 = vmatmul.msk.bf16.gmra.mxu0 %vm522_vm0, %v496_v9  ;;  %764 = vst.msk [vmem:[#allocation2 + $0x161] sm:$0x1] %vm734_vm2, %v3957_v22  ;;  %v4291_v9 = vld [vmem:[%s6182_s3 + $0x6] ss:$0 sm:$0xff] }
  0x5d   : > { %765 = vst.msk [vmem:[#allocation2 + $0x179] sm:$0x1] %vm734_vm2, %v3957_v22 }
  0x5e   : > { %766 = vst.msk [vmem:[#allocation2 + $0x191] sm:$0x1] %vm734_vm2, %v3957_v22 }
  0x5f   : > { %2195 = vst.msk [vmem:[#allocation3] sm:$0xff] %vm2194_vm4, %v3957_v22 }
  0x60   : > { %2196 = vst.msk [vmem:[#allocation3 + $0x8] sm:$0xff] %vm2194_vm4, %v3957_v22 }
  0x61   : > { %2200 = vst.msk [vmem:[#allocation3 + $0x198] sm:$0xff] %vm2194_vm4, %v3957_v22 }
  0x62   : > { %2201 = vst.msk [vmem:[#allocation3 + $0x1a0] sm:$0xff] %vm2194_vm4, %v3957_v22 }
  0x63   : > { %2205 = vst.msk [vmem:[#allocation3 + $0x18] sm:$0x1] %vm2204_vm5, %v3957_v22 }
  0x64   : > { %2206 = vst.msk [vmem:[#allocation3 + $0x30] sm:$0x1] %vm2204_vm5, %v3957_v22 }
  0x65   : > { %2221 = vst.msk [vmem:[#allocation3 + $0x29] sm:$0x1] %vm2204_vm5, %v3957_v22 }
  0x66   : > { %2222 = vst.msk [vmem:[#allocation3 + $0x41] sm:$0x1] %vm2204_vm5, %v3957_v22 }
  0x67   : > { %2198 = vst.msk [vmem:[#allocation3 + $0x10] sm:$0x3] %vm2197_vm6, %v3957_v22 }
  0x68   : > { %2202 = vst.msk [vmem:[#allocation3 + $0x1a8] sm:$0x3] %vm2197_vm6, %v3957_v22 }
  0x69   : > { %2207 = vst.msk [vmem:[#allocation3 + $0x48] sm:$0x1] %vm2204_vm5, %v3957_v22 }
  0x6a   : > { %2208 = vst.msk [vmem:[#allocation3 + $0x60] sm:$0x1] %vm2204_vm5, %v3957_v22 }
  0x6b   : > { %2209 = vst.msk [vmem:[#allocation3 + $0x78] sm:$0x1] %vm2204_vm5, %v3957_v22 }
  0x6c   : > { %3596 = vmatmul.msk.bf16.gmra.mxu0 %vm522_vm0, %v497_v12  ;;  %2210 = vst.msk [vmem:[#allocation3 + $0x90] sm:$0x1] %vm2204_vm5, %v3957_v22 }
  0x6d   : > { %2211 = vst.msk [vmem:[#allocation3 + $0xa8] sm:$0x1] %vm2204_vm5, %v3957_v22 }
  0x6e   : > { %2212 = vst.msk [vmem:[#allocation3 + $0xc0] sm:$0x1] %vm2204_vm5, %v3957_v22 }
  0x6f   : > { %2213 = vst.msk [vmem:[#allocation3 + $0xd8] sm:$0x1] %vm2204_vm5, %v3957_v22 }
  0x70   : > { %2214 = vst.msk [vmem:[#allocation3 + $0xf0] sm:$0x1] %vm2204_vm5, %v3957_v22 }
  0x71   : > { %2215 = vst.msk [vmem:[#allocation3 + $0x108] sm:$0x1] %vm2204_vm5, %v3957_v22 }
  0x72   : > { %2216 = vst.msk [vmem:[#allocation3 + $0x120] sm:$0x1] %vm2204_vm5, %v3957_v22 }
  0x73   : > { %2217 = vst.msk [vmem:[#allocation3 + $0x138] sm:$0x1] %vm2204_vm5, %v3957_v22 }
  0x74   : > { %2218 = vst.msk [vmem:[#allocation3 + $0x150] sm:$0x1] %vm2204_vm5, %v3957_v22 }
  0x75   : > { %2219 = vst.msk [vmem:[#allocation3 + $0x168] sm:$0x1] %vm2204_vm5, %v3957_v22 }
  0x76   : > { %2220 = vst.msk [vmem:[#allocation3 + $0x180] sm:$0x1] %vm2204_vm5, %v3957_v22 }
  0x77   : > { %2223 = vst.msk [vmem:[#allocation3 + $0x59] sm:$0x1] %vm2204_vm5, %v3957_v22 }
  0x78   : > { %2224 = vst.msk [vmem:[#allocation3 + $0x71] sm:$0x1] %vm2204_vm5, %v3957_v22 }
  0x79   : > { %2225 = vst.msk [vmem:[#allocation3 + $0x89] sm:$0x1] %vm2204_vm5, %v3957_v22 }
  0x7a   : > { %2226 = vst.msk [vmem:[#allocation3 + $0xa1] sm:$0x1] %vm2204_vm5, %v3957_v22 }
  0x7b   : > { %2227 = vst.msk [vmem:[#allocation3 + $0xb9] sm:$0x1] %vm2204_vm5, %v3957_v22 }
  0x7c   : > { %3597 = vmatmul.msk.bf16.gmra.mxu0 %vm522_vm0, %v498_v15  ;;  %2228 = vst.msk [vmem:[#allocation3 + $0xd1] sm:$0x1] %vm2204_vm5, %v3957_v22 }
  0x7d   : > { %2229 = vst.msk [vmem:[#allocation3 + $0xe9] sm:$0x1] %vm2204_vm5, %v3957_v22 }
  0x7e   : > { %2230 = vst.msk [vmem:[#allocation3 + $0x101] sm:$0x1] %vm2204_vm5, %v3957_v22 }
  0x7f   : > { %2231 = vst.msk [vmem:[#allocation3 + $0x119] sm:$0x1] %vm2204_vm5, %v3957_v22 }
  0x80   : > { %2232 = vst.msk [vmem:[#allocation3 + $0x131] sm:$0x1] %vm2204_vm5, %v3957_v22 }
  0x81   : > { %2233 = vst.msk [vmem:[#allocation3 + $0x149] sm:$0x1] %vm2204_vm5, %v3957_v22 }
  0x82   : > { %2234 = vst.msk [vmem:[#allocation3 + $0x161] sm:$0x1] %vm2204_vm5, %v3957_v22 }
  0x83   : > { %2235 = vst.msk [vmem:[#allocation3 + $0x179] sm:$0x1] %vm2204_vm5, %v3957_v22 }
  0x84   : > { %2236 = vst.msk [vmem:[#allocation3 + $0x191] sm:$0x1] %vm2204_vm5, %v3957_v22 }
  0x8c   : > { %3598 = vmatmul.msk.bf16.gmra.mxu0 %vm522_vm0, %v499_v18  ;;  %v483_v18 = vld [vmem:[%s4122_s17 + $0xa8] sm:$0xff] }
  0x9c   : > { %3599 = vmatmul.msk.bf16.gmra.mxu0 %vm522_vm0, %v500_v21 }
  0xac   : > { %3600 = vmatmul.msk.bf16.gmra.mxu0 %vm522_vm0, %v501_v25  ;;  %v504_v25 = vpack.c.bf16 %v483_v18, %v482_v17 }
  0xb9   : > { %v580_v30 = vpop.f32.mrf.mxu0 }
  0xba   : > { %v581_v31 = vadd.f32 %v4210_v28, %v580_v30 }
  0xbc   : > { %v660_v32 = vmax.f32 %v581_v31, 0.0  ;;  %3601 = vmatmul.msk.bf16.gmra.mxu0 %vm522_vm0, %v502_v29 }
  0xbe   : > { %v692_v33 = vmin.f32 %v660_v32, 6.0 }
  0xc0   : > { %767 = vst.msk [vmem:[#allocation2 + $0x19] sm:$0xff] %vm724_vm1, %v692_v33 }
  0xc1   : > { %v582_v34 = vpop.f32.mrf.mxu0 }
  0xc2   : > { %v583_v35 = vadd.f32 %v4210_v28, %v582_v34  ;;  %v4313_v34 = vld [vmem:[%s6182_s3 + $0x9] ss:$0 sm:$0xff] }
  0xc4   : > { %v661_v37 = vmax.f32 %v583_v35, 0.0 }
  0xc6   : > { %v693_v44 = vmin.f32 %v661_v37, 6.0 }
  0xc7   : > { %v1069_v63 = vld [vmem:[#allocation2 + $0x18] sm:$0xff] }
  0xc8   : > { %768 = vst.msk [vmem:[#allocation2 + $0x21] sm:$0xff] %vm724_vm1, %v693_v44  ;;  %v1102_v4 = vmul.f32 %v4277_v61, %v1069_v63  ;;  %v1166_v10 = vld [vmem:[#allocation2 + $0x19] sm:$0xff]  ;;  %v845_v37 = vmul.f32 %v4246_v39, %v1069_v63  ;;  %v4323_v44 = vld [vmem:[%s6182_s3 + $0xa] ss:$0 sm:$0xff] }
  0xc9   : > { %v585_v51 = vpop.f32.mrf.mxu0  ;;  %v1199_v20 = vmul.f32 %v4286_v8, %v1166_v10  ;;  %v910_v38 = vmul.f32 %v4251_v40, %v1166_v10 }
  0xca   : > { %v586_v54 = vadd.f32 %v4210_v28, %v585_v51  ;;  %v1134_v15 = vadd.f32 %v1102_v4, %v1037_v3 }
  0xcb   : > { %v942_v55 = vadd.f32 %v910_v38, %v845_v37 }
  0xcc   : > { %v662_v57 = vmax.f32 %v586_v54, 0.0  ;;  %3602 = vmatmul.msk.bf16.gmra.mxu0 %vm522_vm0, %v503_v47  ;;  %v1231_v27 = vadd.f32 %v1199_v20, %v1134_v15 }
  0xce   : > { %v694_v0 = vmin.f32 %v662_v57, 6.0 }
  0xcf   : > { %v1070_v6 = vld [vmem:[#allocation2 + $0x20] sm:$0xff] }
  0xd0   : > { %769 = vst.msk [vmem:[#allocation2 + $0x31] sm:$0xff] %vm724_vm1, %v694_v0  ;;  %v1263_v11 = vld [vmem:[#allocation2 + $0x1a] sm:$0xff]  ;;  %v1103_v14 = vmul.f32 %v4277_v61, %v1070_v6  ;;  %v1264_v35 = vld [vmem:[#allocation2 + $0x22] sm:$0xff]  ;;  %v846_v45 = vmul.f32 %v4246_v39, %v1070_v6 }
  0xd1   : > { %v587_v5 = vpop.f32.mrf.mxu0  ;;  %v1296_v21 = vmul.f32 %v4291_v9, %v1263_v11  ;;  %v1167_v23 = vld [vmem:[#allocation2 + $0x21] sm:$0xff]  ;;  %v1007_v48 = vmul.f32 %v4261_v46, %v1263_v11  ;;  %v1297_v50 = vmul.f32 %v4291_v9, %v1264_v35 }
  0xd2   : > { %v588_v7 = vadd.f32 %v4210_v28, %v587_v5  ;;  %v1135_v26 = vadd.f32 %v1103_v14, %v1038_v13  ;;  %v1200_v32 = vmul.f32 %v4286_v8, %v1167_v23  ;;  %v911_v47 = vmul.f32 %v4251_v40, %v1167_v23  ;;  %v484_v13 = vld [vmem:[%s4122_s17 + $0xb0] sm:$0xff]  ;;  %v485_v14 = vld [vmem:[%s4122_s17 + $0xb8] sm:$0xff] }
  0xd3   : > { %v1328_v33 = vadd.f32 %v1296_v21, %v1231_v27  ;;  %v1039_v2 = vadd.f32 %v1007_v48, %v942_v55 }
  0xd4   : > { %v663_v12 = vmax.f32 %v588_v7, 0.0  ;;  %v1232_v42 = vadd.f32 %v1200_v32, %v1135_v26  ;;  %v943_v1 = vadd.f32 %v911_v47, %v846_v45  ;;  %v1008_v7 = vmul.f32 %v4261_v46, %v1264_v35 }
  0xd5   : > { %v505_v26 = vpack.c.bf16 %v485_v14, %v484_v13 }
  0xd6   : > { %v695_v19 = vmin.f32 %v663_v12, 6.0  ;;  %v1329_v57 = vadd.f32 %v1297_v50, %v1232_v42 }
  0xd7   : > { %v4303_v24 = vld [vmem:[#allocation2 + $0x30] sm:$0xff] }
  0xd8   : > { %770 = vst.msk [vmem:[#allocation2 + $0x39] sm:$0xff] %vm724_vm1, %v695_v19  ;;  %v1394_v29 = vmul.f32 %v4297_v16, %v4303_v24  ;;  %v4315_v36 = vld [vmem:[#allocation2 + $0x31] sm:$0xff]  ;;  %v1104_v56 = vmul.f32 %v4277_v61, %v4303_v24  ;;  %v1040_v19 = vadd.f32 %v1008_v7, %v943_v1  ;;  %v847_v47 = vmul.f32 %v4246_v39, %v4303_v24 }
  0xd9   : > { %v590_v30 = vpop.f32.mrf.mxu0  ;;  %v1491_v51 = vmul.f32 %v4313_v34, %v4315_v36  ;;  %v1201_v23 = vmul.f32 %v4286_v8, %v4315_v36  ;;  %v912_v48 = vmul.f32 %v4251_v40, %v4315_v36 }
  0xda   : > { %v591_v31 = vadd.f32 %v4210_v28, %v590_v30  ;;  %v1426_v43 = vadd.f32 %v1394_v29, %v1328_v33  ;;  %v1136_v11 = vadd.f32 %v1104_v56, %v1039_v2 }
  0xdc   : > { %v664_v41 = vmax.f32 %v591_v31, 0.0  ;;  %3603 = vmatmul.msk.bf16.gmra.mxu0 %vm522_vm0, %v504_v25  ;;  %v1523_v59 = vadd.f32 %v1491_v51, %v1426_v43  ;;  %v1233_v32 = vadd.f32 %v1201_v23, %v1136_v11  ;;  %v487_v23 = vld [vmem:[%s4122_s17 + $0xc8] sm:$0xff] }
  0xde   : > { %v696_v49 = vmin.f32 %v664_v41, 6.0 }
  0xdf   : > { %v1362_v52 = vld [vmem:[#allocation2 + $0x38] sm:$0xff] }
  0xe0   : > { %v1459_v53 = vld [vmem:[#allocation2 + $0x39] sm:$0xff]  ;;  %771 = vst.msk [vmem:[#allocation2 + $0x49] sm:$0xff] %vm724_vm1, %v696_v49  ;;  %v1395_v58 = vmul.f32 %v4297_v16, %v1362_v52  ;;  %v1105_v10 = vmul.f32 %v4277_v61, %v1362_v52 }
  0xe1   : > { %v1555_v54 = vld [vmem:[#allocation2 + $0x32] sm:$0xff]  ;;  %v592_v63 = vpop.f32.mrf.mxu0  ;;  %v4341_v0 = vld [vmem:[#allocation2 + $0x3a] sm:$0xff]  ;;  %v1492_v5 = vmul.f32 %v4313_v34, %v1459_v53  ;;  %v1202_v37 = vmul.f32 %v4286_v8, %v1459_v53 }
  0xe2   : > { %v1588_v60 = vmul.f32 %v4323_v44, %v1555_v54  ;;  %v593_v3 = vadd.f32 %v4210_v28, %v592_v63  ;;  %v1427_v4 = vadd.f32 %v1395_v58, %v1329_v57  ;;  %v1589_v17 = vmul.f32 %v4323_v44, %v4341_v0 }
  0xe3   : > { %v1298_v25 = vmul.f32 %v4291_v9, %v1555_v54  ;;  %v1137_v27 = vadd.f32 %v1105_v10, %v1040_v19  ;;  %v1299_v56 = vmul.f32 %v4291_v9, %v4341_v0  ;;  %v848_v57 = vmul.f32 %v4246_v39, %v1362_v52 }
  0xe4   : > { %v1620_v6 = vadd.f32 %v1588_v60, %v1523_v59  ;;  %v665_v12 = vmax.f32 %v593_v3, 0.0  ;;  %v1524_v15 = vadd.f32 %v1492_v5, %v1427_v4  ;;  %v913_v58 = vmul.f32 %v4251_v40, %v1459_v53 }
  0xe5   : > { %v1330_v42 = vadd.f32 %v1298_v25, %v1233_v32  ;;  %v1234_v43 = vadd.f32 %v1202_v37, %v1137_v27  ;;  %v1009_v59 = vmul.f32 %v4261_v46, %v1555_v54  ;;  %v944_v4 = vadd.f32 %v912_v48, %v847_v47 }
  0xe6   : > { %v1656_v18 = vadd.f32 %v4339_v62, %v1620_v6  ;;  %v697_v20 = vmin.f32 %v665_v12, 6.0  ;;  %v1621_v21 = vadd.f32 %v1589_v17, %v1524_v15  ;;  %v945_v10 = vadd.f32 %v913_v58, %v848_v57 }
  0xe7   : > { %v4355_v29 = vld [vmem:[#allocation2 + $0x48] sm:$0xff]  ;;  %v1331_v63 = vadd.f32 %v1299_v56, %v1234_v43  ;;  %v1041_v11 = vadd.f32 %v1009_v59, %v944_v4  ;;  %v1010_v17 = vmul.f32 %v4261_v46, %v4341_v0 }
  0xe8   : > { %772 = vst.msk [vmem:[#allocation2 + $0x51] sm:$0xff] %vm724_vm1, %v697_v20  ;;  %v1657_v30 = vadd.f32 %v4339_v62, %v1621_v21  ;;  %v1688_v31 = vmax.f32 %v1656_v18, 0.0  ;;  %v1396_v33 = vmul.f32 %v4297_v16, %v4355_v29  ;;  %v4363_v45 = vld [vmem:[#allocation2 + $0x49] sm:$0xff]  ;;  %v1106_v5 = vmul.f32 %v4277_v61, %v4355_v29  ;;  %v486_v21 = vld [vmem:[%s4122_s17 + $0xc0] sm:$0xff] }
  0xe9   : > { %v595_v35 = vpop.f32.mrf.mxu0  ;;  %v1493_v36 = vmul.f32 %v4313_v34, %v4363_v45  ;;  %v849_v58 = vmul.f32 %v4246_v39, %v4355_v29  ;;  %v914_v59 = vmul.f32 %v4251_v40, %v4363_v45 }
  0xea   : > { %v596_v38 = vadd.f32 %v4210_v28, %v595_v35  ;;  %v1689_v41 = vmax.f32 %v1657_v30, 0.0  ;;  %v1720_v50 = vmin.f32 %v1688_v31, 6.0  ;;  %v1428_v55 = vadd.f32 %v1396_v33, %v1330_v42 }
  0xeb   : > { %v1138_v19 = vadd.f32 %v1106_v5, %v1041_v11  ;;  %v1042_v30 = vadd.f32 %v1010_v17, %v945_v10  ;;  %v1203_v33 = vmul.f32 %v4286_v8, %v4363_v45  ;;  %v506_v35 = vpack.c.bf16 %v487_v23, %v486_v21 }
  0xec   : > { %v666_v49 = vmax.f32 %v596_v38, 0.0  ;;  %3604 = vmatmul.msk.bf16.gmra.mxu0 %vm522_vm0, %v505_v26  ;;  %v1721_v51 = vmin.f32 %v1689_v41, 6.0  ;;  %v1525_v53 = vadd.f32 %v1493_v36, %v1428_v55 }
  0xed   : > { %v1235_v43 = vadd.f32 %v1203_v33, %v1138_v19  ;;  %v489_v33 = vld [vmem:[%s4122_s17 + $0xd8] sm:$0xff] }
  0xee   : > { %v698_v60 = vmin.f32 %v666_v49, 6.0  ;;  %v1752_v24 = vpack.c.bf16 %v1721_v51, %v1720_v50 }
  0xef   : > { %v1364_v1 = vld [vmem:[#allocation2 + $0x50] sm:$0xff] }
  0xf0   : > { %v1461_v2 = vld [vmem:[#allocation2 + $0x51] sm:$0xff]  ;;  %773 = vst.msk [vmem:[#allocation2 + $0x61] sm:$0xff] %vm724_vm1, %v698_v60  ;;  %3627 = vmatmul.msk.bf16.vlgmr.msra.gmra.mxu1 %vm724_vm1, %v1752_v24  ;;  %v1397_v52 = vmul.f32 %v4297_v16, %v1364_v1  ;;  %v1107_v18 = vmul.f32 %v4277_v61, %v1364_v1  ;;  %v850_v5 = vmul.f32 %v4246_v39, %v1364_v1 }
  0xf1   : > { %v1557_v3 = vld [vmem:[#allocation2 + $0x4a] sm:$0xff]  ;;  %v597_v6 = vpop.f32.mrf.mxu0  ;;  %v4383_v7 = vld [vmem:[#allocation2 + $0x52] sm:$0xff]  ;;  %v1494_v14 = vmul.f32 %v4313_v34, %v1461_v2  ;;  %v1204_v49 = vmul.f32 %v4286_v8, %v1461_v2 }
  0xf2   : > { %v1590_v54 = vmul.f32 %v4323_v44, %v1557_v3  ;;  %v598_v12 = vadd.f32 %v4210_v28, %v597_v6  ;;  %v1429_v13 = vadd.f32 %v1397_v52, %v1331_v63  ;;  %v1591_v26 = vmul.f32 %v4323_v44, %v4383_v7 }
  0xf3   : > { %v1300_v0 = vmul.f32 %v4291_v9, %v1557_v3  ;;  %v1139_v37 = vadd.f32 %v1107_v18, %v1042_v30  ;;  %v1301_v4 = vmul.f32 %v4291_v9, %v4383_v7  ;;  %v915_v52 = vmul.f32 %v4251_v40, %v1461_v2 }
  0xf4   : > { %v1622_v15 = vadd.f32 %v1590_v54, %v1525_v53  ;;  %v667_v20 = vmax.f32 %v598_v12, 0.0  ;;  %v1526_v25 = vadd.f32 %v1494_v14, %v1429_v13  ;;  %v1011_v53 = vmul.f32 %v4261_v46, %v1557_v3 }
  0xf5   : > { %v1332_v55 = vadd.f32 %v1300_v0, %v1235_v43  ;;  %v1236_v56 = vadd.f32 %v1204_v49, %v1139_v37  ;;  %v946_v13 = vadd.f32 %v914_v59, %v849_v58  ;;  %v947_v18 = vadd.f32 %v915_v52, %v850_v5 }
  0xf6   : > { %v1658_v27 = vadd.f32 %v4339_v62, %v1622_v15  ;;  %v699_v31 = vmin.f32 %v667_v20, 6.0  ;;  %v1623_v32 = vadd.f32 %v1591_v26, %v1526_v25  ;;  %v1012_v26 = vmul.f32 %v4261_v46, %v4383_v7 }
  0xf7   : > { %v4398_v38 = vld [vmem:[#allocation2 + $0x60] sm:$0xff]  ;;  %v1333_v6 = vadd.f32 %v1301_v4, %v1236_v56  ;;  %v1043_v19 = vadd.f32 %v1011_v53, %v946_v13 }
  0xf8   : > { %774 = vst.msk [vmem:[#allocation2 + $0x69] sm:$0xff] %vm724_vm1, %v699_v31  ;;  %v1659_v41 = vadd.f32 %v4339_v62, %v1623_v32  ;;  %v1690_v42 = vmax.f32 %v1658_v27, 0.0  ;;  %v1398_v47 = vmul.f32 %v4297_v16, %v4398_v38  ;;  %v4406_v57 = vld [vmem:[#allocation2 + $0x61] sm:$0xff]  ;;  %v1108_v14 = vmul.f32 %v4277_v61, %v4398_v38  ;;  %v488_v32 = vld [vmem:[%s4122_s17 + $0xd0] sm:$0xff] }
  0xf9   : > { %v600_v48 = vpop.f32.mrf.mxu0  ;;  %v1495_v45 = vmul.f32 %v4313_v34, %v4406_v57  ;;  %v851_v52 = vmul.f32 %v4246_v39, %v4398_v38  ;;  %v916_v53 = vmul.f32 %v4251_v40, %v4406_v57 }
  0xfa   : > { %v601_v50 = vadd.f32 %v4210_v28, %v600_v48  ;;  %v1691_v51 = vmax.f32 %v1659_v41, 0.0  ;;  %v1722_v24 = vmin.f32 %v1690_v42, 6.0  ;;  %v1430_v63 = vadd.f32 %v1398_v47, %v1332_v55 }
  0xfb   : > { %v1140_v30 = vadd.f32 %v1108_v14, %v1043_v19  ;;  %v1044_v41 = vadd.f32 %v1012_v26, %v947_v18  ;;  %v1205_v47 = vmul.f32 %v4286_v8, %v4406_v57  ;;  %v507_v48 = vpack.c.bf16 %v489_v33, %v488_v32 }
  0xfc   : > { %v668_v60 = vmax.f32 %v601_v50, 0.0  ;;  %3605 = vmatmul.msk.bf16.gmra.mxu0 %vm522_vm0, %v506_v35  ;;  %v1723_v36 = vmin.f32 %v1691_v51, 6.0  ;;  %v1527_v2 = vadd.f32 %v1495_v45, %v1430_v63 }
  0xfd   : > { %v1237_v56 = vadd.f32 %v1205_v47, %v1140_v30  ;;  %v491_v47 = vld [vmem:[%s4122_s17 + $0xe8] sm:$0xff] }
  0xfe   : > { %v700_v54 = vmin.f32 %v668_v60, 6.0  ;;  %v1753_v29 = vpack.c.bf16 %v1723_v36, %v1722_v24 }
  0xff   : > { %v1366_v10 = vld [vmem:[#allocation2 + $0x68] sm:$0xff] }
 0x100   : > { %v1463_v11 = vld [vmem:[#allocation2 + $0x69] sm:$0xff]  ;;  %775 = vst.msk [vmem:[#allocation2 + $0x79] sm:$0xff] %vm724_vm1, %v700_v54  ;;  %3628 = vmatmul.msk.bf16.gmra.mxu1 %vm724_vm1, %v1753_v29  ;;  %v1399_v1 = vmul.f32 %v4297_v16, %v1366_v10  ;;  %v1109_v27 = vmul.f32 %v4277_v61, %v1366_v10  ;;  %v852_v14 = vmul.f32 %v4246_v39, %v1366_v10 }
 0x101   : > { %v1559_v12 = vld [vmem:[#allocation2 + $0x62] sm:$0xff]  ;;  %v602_v15 = vpop.f32.mrf.mxu0  ;;  %v4426_v17 = vld [vmem:[#allocation2 + $0x6a] sm:$0xff]  ;;  %v1496_v23 = vmul.f32 %v4313_v34, %v1463_v11  ;;  %v1206_v60 = vmul.f32 %v4286_v8, %v1463_v11 }
 0x102   : > { %v1592_v3 = vmul.f32 %v4323_v44, %v1559_v12  ;;  %v603_v20 = vadd.f32 %v4210_v28, %v602_v15  ;;  %v1431_v21 = vadd.f32 %v1399_v1, %v1333_v6  ;;  %v1593_v35 = vmul.f32 %v4323_v44, %v4426_v17 }
 0x103   : > { %v1302_v7 = vmul.f32 %v4291_v9, %v1559_v12  ;;  %v1141_v49 = vadd.f32 %v1109_v27, %v1044_v41  ;;  %v1303_v13 = vmul.f32 %v4291_v9, %v4426_v17  ;;  %v917_v1 = vmul.f32 %v4251_v40, %v1463_v11 }
 0x104   : > { %v1624_v25 = vadd.f32 %v1592_v3, %v1527_v2  ;;  %v669_v31 = vmax.f32 %v603_v20, 0.0  ;;  %v1528_v0 = vadd.f32 %v1496_v23, %v1431_v21  ;;  %v1013_v2 = vmul.f32 %v4261_v46, %v1559_v12 }
 0x105   : > { %v1334_v63 = vadd.f32 %v1302_v7, %v1237_v56  ;;  %v1238_v4 = vadd.f32 %v1206_v60, %v1141_v49  ;;  %v948_v21 = vadd.f32 %v916_v53, %v851_v52  ;;  %v949_v27 = vadd.f32 %v917_v1, %v852_v14 }
 0x106   : > { %v1660_v37 = vadd.f32 %v4339_v62, %v1624_v25  ;;  %v701_v42 = vmin.f32 %v669_v31, 6.0  ;;  %v1625_v43 = vadd.f32 %v1593_v35, %v1528_v0  ;;  %v1014_v35 = vmul.f32 %v4261_v46, %v4426_v17 }
 0x107   : > { %v4441_v50 = vld [vmem:[#allocation2 + $0x78] sm:$0xff]  ;;  %v1335_v15 = vadd.f32 %v1303_v13, %v1238_v4  ;;  %v1045_v30 = vadd.f32 %v1013_v2, %v948_v21 }
 0x108   : > { %776 = vst.msk [vmem:[#allocation2 + $0x81] sm:$0xff] %vm724_vm1, %v701_v42  ;;  %v1661_v51 = vadd.f32 %v4339_v62, %v1625_v43  ;;  %v1692_v55 = vmax.f32 %v1660_v37, 0.0  ;;  %v1400_v58 = vmul.f32 %v4297_v16, %v4441_v50  ;;  %v4449_v5 = vld [vmem:[#allocation2 + $0x79] sm:$0xff]  ;;  %v1110_v23 = vmul.f32 %v4277_v61, %v4441_v50 }
 0x109   : > { %v605_v59 = vpop.f32.mrf.mxu0  ;;  %v1497_v57 = vmul.f32 %v4313_v34, %v4449_v5  ;;  %v490_v43 = vld [vmem:[%s4122_s17 + $0xe0] sm:$0xff]  ;;  %v853_v1 = vmul.f32 %v4246_v39, %v4441_v50  ;;  %v918_v2 = vmul.f32 %v4251_v40, %v4449_v5 }
 0x10a   : > { %v606_v24 = vadd.f32 %v4210_v28, %v605_v59  ;;  %v1693_v36 = vmax.f32 %v1661_v51, 0.0  ;;  %v1724_v29 = vmin.f32 %v1692_v55, 6.0  ;;  %v1432_v6 = vadd.f32 %v1400_v58, %v1334_v63 }
 0x10b   : > { %v1142_v41 = vadd.f32 %v1110_v23, %v1045_v30  ;;  %v1046_v51 = vadd.f32 %v1014_v35, %v949_v27  ;;  %v1207_v58 = vmul.f32 %v4286_v8, %v4449_v5  ;;  %v508_v59 = vpack.c.bf16 %v491_v47, %v490_v43 }
 0x10c   : > { %v670_v54 = vmax.f32 %v606_v24, 0.0  ;;  %3606 = vmatmul.msk.bf16.gmra.mxu0 %vm522_vm0, %v507_v48  ;;  %v1725_v45 = vmin.f32 %v1693_v36, 6.0  ;;  %v1529_v11 = vadd.f32 %v1497_v57, %v1432_v6 }
 0x10d   : > { %v1239_v4 = vadd.f32 %v1207_v58, %v1142_v41  ;;  %v493_v58 = vld [vmem:[%s4122_s17 + $0xf8] sm:$0xff] }
 0x10e   : > { %v702_v3 = vmin.f32 %v670_v54, 6.0  ;;  %v1754_v38 = vpack.c.bf16 %v1725_v45, %v1724_v29 }
 0x10f   : > { %v1368_v18 = vld [vmem:[#allocation2 + $0x80] sm:$0xff] }
 0x110   : > { %v1465_v19 = vld [vmem:[#allocation2 + $0x81] sm:$0xff]  ;;  %777 = vst.msk [vmem:[#allocation2 + $0x91] sm:$0xff] %vm724_vm1, %v702_v3  ;;  %3629 = vmatmul.msk.bf16.gmra.mxu1 %vm724_vm1, %v1754_v38  ;;  %v1401_v10 = vmul.f32 %v4297_v16, %v1368_v18  ;;  %v1111_v37 = vmul.f32 %v4277_v61, %v1368_v18  ;;  %v854_v23 = vmul.f32 %v4246_v39, %v1368_v18 }
 0x111   : > { %v1561_v20 = vld [vmem:[#allocation2 + $0x7a] sm:$0xff]  ;;  %v607_v25 = vpop.f32.mrf.mxu0  ;;  %v4469_v26 = vld [vmem:[#allocation2 + $0x82] sm:$0xff]  ;;  %v1498_v33 = vmul.f32 %v4313_v34, %v1465_v19  ;;  %v1208_v54 = vmul.f32 %v4286_v8, %v1465_v19 }
 0x112   : > { %v1594_v12 = vmul.f32 %v4323_v44, %v1561_v20  ;;  %v608_v31 = vadd.f32 %v4210_v28, %v607_v25  ;;  %v1433_v32 = vadd.f32 %v1401_v10, %v1335_v15  ;;  %v1595_v48 = vmul.f32 %v4323_v44, %v4469_v26 }
 0x113   : > { %v1304_v17 = vmul.f32 %v4291_v9, %v1561_v20  ;;  %v1143_v60 = vadd.f32 %v1111_v37, %v1046_v51  ;;  %v1305_v21 = vmul.f32 %v4291_v9, %v4469_v26  ;;  %v919_v10 = vmul.f32 %v4251_v40, %v1465_v19 }
 0x114   : > { %v1626_v0 = vadd.f32 %v1594_v12, %v1529_v11  ;;  %v671_v42 = vmax.f32 %v608_v31, 0.0  ;;  %v1530_v7 = vadd.f32 %v1498_v33, %v1433_v32  ;;  %v1015_v11 = vmul.f32 %v4261_v46, %v1561_v20 }
 0x115   : > { %v1336_v6 = vadd.f32 %v1304_v17, %v1239_v4  ;;  %v1240_v13 = vadd.f32 %v1208_v54, %v1143_v60  ;;  %v950_v32 = vadd.f32 %v918_v2, %v853_v1  ;;  %v951_v37 = vadd.f32 %v919_v10, %v854_v23 }
 0x116   : > { %v1662_v49 = vadd.f32 %v4339_v62, %v1626_v0  ;;  %v703_v55 = vmin.f32 %v671_v42, 6.0  ;;  %v1627_v56 = vadd.f32 %v1595_v48, %v1530_v7  ;;  %v1016_v48 = vmul.f32 %v4261_v46, %v4469_v26 }
 0x117   : > { %v4484_v24 = vld [vmem:[#allocation2 + $0x90] sm:$0xff]  ;;  %v1337_v25 = vadd.f32 %v1305_v21, %v1240_v13  ;;  %v1047_v41 = vadd.f32 %v1015_v11, %v950_v32 }
 0x118   : > { %778 = vst.msk [vmem:[#allocation2 + $0x99] sm:$0xff] %vm724_vm1, %v703_v55  ;;  %v1663_v36 = vadd.f32 %v4339_v62, %v1627_v56  ;;  %v1694_v63 = vmax.f32 %v1662_v49, 0.0  ;;  %v1402_v52 = vmul.f32 %v4297_v16, %v4484_v24  ;;  %v4492_v14 = vld [vmem:[#allocation2 + $0x91] sm:$0xff]  ;;  %v1112_v33 = vmul.f32 %v4277_v61, %v4484_v24 }
 0x119   : > { %v610_v53 = vpop.f32.mrf.mxu0  ;;  %v1499_v5 = vmul.f32 %v4313_v34, %v4492_v14  ;;  %v492_v56 = vld [vmem:[%s4122_s17 + $0xf0] sm:$0xff]  ;;  %v855_v10 = vmul.f32 %v4246_v39, %v4484_v24  ;;  %v920_v11 = vmul.f32 %v4251_v40, %v4492_v14 }
 0x11a   : > { %v611_v29 = vadd.f32 %v4210_v28, %v610_v53  ;;  %v1695_v45 = vmax.f32 %v1663_v36, 0.0  ;;  %v1726_v38 = vmin.f32 %v1694_v63, 6.0  ;;  %v1434_v15 = vadd.f32 %v1402_v52, %v1336_v6 }
 0x11b   : > { %v1144_v51 = vadd.f32 %v1112_v33, %v1047_v41  ;;  %v1048_v36 = vadd.f32 %v1016_v48, %v951_v37  ;;  %v1209_v52 = vmul.f32 %v4286_v8, %v4492_v14  ;;  %v509_v53 = vpack.c.bf16 %v493_v58, %v492_v56 }
 0x11c   : > { %v672_v3 = vmax.f32 %v611_v29, 0.0  ;;  %3607 = vmatmul.msk.bf16.gmra.mxu0 %vm522_vm0, %v508_v59  ;;  %v1727_v57 = vmin.f32 %v1695_v45, 6.0  ;;  %v1531_v19 = vadd.f32 %v1499_v5, %v1434_v15 }
 0x11d   : > { %v1241_v13 = vadd.f32 %v1209_v52, %v1144_v51 }
 0x11e   : > { %v704_v12 = vmin.f32 %v672_v3, 6.0  ;;  %v1755_v50 = vpack.c.bf16 %v1727_v57, %v1726_v38 }
 0x11f   : > { %v1370_v27 = vld [vmem:[#allocation2 + $0x98] sm:$0xff] }
 0x120   : > { %v1467_v30 = vld [vmem:[#allocation2 + $0x99] sm:$0xff]  ;;  %779 = vst.msk [vmem:[#allocation2 + $0xa9] sm:$0xff] %vm724_vm1, %v704_v12  ;;  %3630 = vmatmul.msk.bf16.gmra.mxu1 %vm724_vm1, %v1755_v50  ;;  %v1403_v18 = vmul.f32 %v4297_v16, %v1370_v27  ;;  %v1113_v49 = vmul.f32 %v4277_v61, %v1370_v27  ;;  %v856_v33 = vmul.f32 %v4246_v39, %v1370_v27 }
 0x121   : > { %v1563_v31 = vld [vmem:[#allocation2 + $0x92] sm:$0xff]  ;;  %v612_v0 = vpop.f32.mrf.mxu0  ;;  %v4512_v35 = vld [vmem:[#allocation2 + $0x9a] sm:$0xff]  ;;  %v1500_v47 = vmul.f32 %v4313_v34, %v1467_v30  ;;  %v1210_v3 = vmul.f32 %v4286_v8, %v1467_v30 }
 0x122   : > { %v1596_v20 = vmul.f32 %v4323_v44, %v1563_v31  ;;  %v613_v42 = vadd.f32 %v4210_v28, %v612_v0  ;;  %v1435_v43 = vadd.f32 %v1403_v18, %v1337_v25  ;;  %v1597_v59 = vmul.f32 %v4323_v44, %v4512_v35 }
 0x123   : > { %v1306_v26 = vmul.f32 %v4291_v9, %v1563_v31  ;;  %v1145_v54 = vadd.f32 %v1113_v49, %v1048_v36  ;;  %v1307_v32 = vmul.f32 %v4291_v9, %v4512_v35  ;;  %v921_v18 = vmul.f32 %v4251_v40, %v1467_v30 }
 0x124   : > { %v1628_v7 = vadd.f32 %v1596_v20, %v1531_v19  ;;  %v673_v55 = vmax.f32 %v613_v42, 0.0  ;;  %v1532_v17 = vadd.f32 %v1500_v47, %v1435_v43  ;;  %v1017_v19 = vmul.f32 %v4261_v46, %v1563_v31 }
 0x125   : > { %v1338_v15 = vadd.f32 %v1306_v26, %v1241_v13  ;;  %v1242_v21 = vadd.f32 %v1210_v3, %v1145_v54  ;;  %v952_v43 = vadd.f32 %v920_v11, %v855_v10  ;;  %v953_v49 = vadd.f32 %v921_v18, %v856_v33 }
 0x126   : > { %v1664_v60 = vadd.f32 %v4339_v62, %v1628_v7  ;;  %v705_v63 = vmin.f32 %v673_v55, 6.0  ;;  %v1629_v4 = vadd.f32 %v1597_v59, %v1532_v17  ;;  %v1018_v59 = vmul.f32 %v4261_v46, %v4512_v35 }
 0x127   : > { %v4527_v29 = vld [vmem:[#allocation2 + $0xa8] sm:$0xff]  ;;  %v1339_v14 = vadd.f32 %v1307_v32, %v1242_v21  ;;  %v1049_v51 = vadd.f32 %v1017_v19, %v952_v43 }
 0x128   : > { %780 = vst.msk [vmem:[#allocation2 + $0xb1] sm:$0xff] %vm724_vm1, %v705_v63  ;;  %v1665_v45 = vadd.f32 %v4339_v62, %v1629_v4  ;;  %v1696_v6 = vmax.f32 %v1664_v60, 0.0  ;;  %v1404_v1 = vmul.f32 %v4297_v16, %v4527_v29  ;;  %v1468_v23 = vld [vmem:[#allocation2 + $0xa9] sm:$0xff]  ;;  %v1114_v47 = vmul.f32 %v4277_v61, %v4527_v29 }
 0x129   : > { %v615_v2 = vpop.f32.mrf.mxu0  ;;  %v1501_v0 = vmul.f32 %v4313_v34, %v1468_v23  ;;  %v922_v32 = vmul.f32 %v4251_v40, %v1468_v23 }
 0x12a   : > { %v616_v38 = vadd.f32 %v4210_v28, %v615_v2  ;;  %v1697_v57 = vmax.f32 %v1665_v45, 0.0  ;;  %v1728_v50 = vmin.f32 %v1696_v6, 6.0  ;;  %v1436_v25 = vadd.f32 %v1404_v1, %v1338_v15 }
 0x12b   : > { %v1146_v36 = vadd.f32 %v1114_v47, %v1049_v51  ;;  %v1211_v6 = vmul.f32 %v4286_v8, %v1468_v23 }
 0x12c   : > { %v674_v12 = vmax.f32 %v616_v38, 0.0  ;;  %3608 = vmatmul.msk.bf16.gmra.mxu0 %vm522_vm0, %v509_v53  ;;  %v1729_v5 = vmin.f32 %v1697_v57, 6.0  ;;  %v1533_v30 = vadd.f32 %v1501_v0, %v1436_v25  ;;  %v1050_v53 = vadd.f32 %v1018_v59, %v953_v49 }
 0x12d   : > { %v1243_v38 = vadd.f32 %v1211_v6, %v1146_v36  ;;  %v857_v25 = vmul.f32 %v4246_v39, %v4527_v29 }
 0x12e   : > { %v706_v20 = vmin.f32 %v674_v12, 6.0  ;;  %v1756_v24 = vpack.c.bf16 %v1729_v5, %v1728_v50 }
 0x12f   : > { %v1372_v37 = vld [vmem:[#allocation2 + $0xb0] sm:$0xff]  ;;  %v954_v49 = vadd.f32 %v922_v32, %v857_v25 }
 0x130   : > { %v1469_v41 = vld [vmem:[#allocation2 + $0xb1] sm:$0xff]  ;;  %781 = vst.msk [vmem:[#allocation2 + $0xc1] sm:$0xff] %vm724_vm1, %v706_v20  ;;  %3631 = vmatmul.msk.bf16.gmra.mxu1 %vm724_vm1, %v1756_v24  ;;  %v1405_v27 = vmul.f32 %v4297_v16, %v1372_v37  ;;  %v1115_v60 = vmul.f32 %v4277_v61, %v1372_v37  ;;  %v858_v0 = vmul.f32 %v4246_v39, %v1372_v37 }
 0x131   : > { %v1565_v42 = vld [vmem:[#allocation2 + $0xaa] sm:$0xff]  ;;  %v617_v7 = vpop.f32.mrf.mxu0  ;;  %v4552_v48 = vld [vmem:[#allocation2 + $0xb2] sm:$0xff]  ;;  %v1502_v58 = vmul.f32 %v4313_v34, %v1469_v41  ;;  %v1212_v21 = vmul.f32 %v4286_v8, %v1469_v41 }
 0x132   : > { %v1598_v31 = vmul.f32 %v4323_v44, %v1565_v42  ;;  %v618_v55 = vadd.f32 %v4210_v28, %v617_v7  ;;  %v1437_v56 = vadd.f32 %v1405_v27, %v1339_v14  ;;  %v1599_v52 = vmul.f32 %v4323_v44, %v4552_v48 }
 0x133   : > { %v1308_v13 = vmul.f32 %v4291_v9, %v1565_v42  ;;  %v1147_v1 = vadd.f32 %v1115_v60, %v1050_v53  ;;  %v1309_v24 = vmul.f32 %v4291_v9, %v4552_v48  ;;  %v923_v14 = vmul.f32 %v4251_v40, %v1469_v41 }
 0x134   : > { %v1630_v17 = vadd.f32 %v1598_v31, %v1533_v30  ;;  %v675_v63 = vmax.f32 %v618_v55, 0.0  ;;  %v1534_v4 = vadd.f32 %v1502_v58, %v1437_v56  ;;  %v1019_v43 = vmul.f32 %v4261_v46, %v1565_v42 }
 0x135   : > { %v1340_v12 = vadd.f32 %v1308_v13, %v1243_v38  ;;  %v1244_v50 = vadd.f32 %v1212_v21, %v1147_v1  ;;  %v955_v58 = vadd.f32 %v923_v14, %v858_v0 }
 0x136   : > { %v1666_v26 = vadd.f32 %v4339_v62, %v1630_v17  ;;  %v707_v54 = vmin.f32 %v675_v63, 6.0  ;;  %v1631_v45 = vadd.f32 %v1599_v52, %v1534_v4  ;;  %v1051_v17 = vadd.f32 %v1019_v43, %v954_v49 }
 0x137   : > { %v4564_v2 = vld [vmem:[#allocation2 + $0xc0] sm:$0xff]  ;;  %v1341_v29 = vadd.f32 %v1309_v24, %v1244_v50  ;;  %v1020_v4 = vmul.f32 %v4261_v46, %v4552_v48 }
 0x138   : > { %782 = vst.msk [vmem:[#allocation2 + $0xc9] sm:$0xff] %vm724_vm1, %v707_v54  ;;  %v1667_v35 = vadd.f32 %v4339_v62, %v1631_v45  ;;  %v1698_v3 = vmax.f32 %v1666_v26, 0.0  ;;  %v1406_v57 = vmul.f32 %v4297_v16, %v4564_v2  ;;  %v1470_v5 = vld [vmem:[#allocation2 + $0xc1] sm:$0xff]  ;;  %v1116_v51 = vmul.f32 %v4277_v61, %v4564_v2  ;;  %v4609_v50 = vld [vmem:[%s6181_s2] ss:$0 sm:$0xff] }
 0x139   : > { %v620_v15 = vpop.f32.mrf.mxu0  ;;  %v1503_v30 = vmul.f32 %v4313_v34, %v1470_v5  ;;  %v1052_v13 = vadd.f32 %v1020_v4, %v955_v58  ;;  %v924_v24 = vmul.f32 %v4251_v40, %v1470_v5 }
 0x13a   : > { %v621_v10 = vadd.f32 %v4210_v28, %v620_v15  ;;  %v1699_v11 = vmax.f32 %v1667_v35, 0.0  ;;  %v1730_v18 = vmin.f32 %v1698_v3, 6.0  ;;  %v1438_v20 = vadd.f32 %v1406_v57, %v1340_v12 }
 0x13b   : > { %v1148_v26 = vadd.f32 %v1116_v51, %v1051_v17  ;;  %v1213_v35 = vmul.f32 %v4286_v8, %v1470_v5 }
 0x13c   : > { %v676_v33 = vmax.f32 %v621_v10, 0.0  ;;  %v1731_v19 = vmin.f32 %v1699_v11, 6.0  ;;  %v1535_v41 = vadd.f32 %v1503_v30, %v1438_v20  ;;  %v859_v20 = vmul.f32 %v4246_v39, %v4564_v2 }
 0x13d   : > { %v1245_v21 = vadd.f32 %v1213_v35, %v1148_v26 }
 0x13e   : > { %v708_v47 = vmin.f32 %v676_v33, 6.0  ;;  %v1757_v27 = vpack.c.bf16 %v1731_v19, %v1730_v18  ;;  %v956_v58 = vadd.f32 %v924_v24, %v859_v20  ;;  %v4665_v24 = vld [vmem:[%s6182_s3] ss:$0 sm:$0xff] }
 0x13f   : > { %v1374_v31 = vld [vmem:[#allocation2 + $0xc8] sm:$0xff] }
 0x140   : > { %v1471_v23 = vld [vmem:[#allocation2 + $0xc9] sm:$0xff]  ;;  %783 = vst.msk [vmem:[#allocation2 + $0xd9] sm:$0xff] %vm724_vm1, %v708_v47  ;;  %3632 = vmatmul.msk.bf16.gmra.mxu1 %vm724_vm1, %v1757_v27  ;;  %v1407_v37 = vmul.f32 %v4297_v16, %v1374_v31  ;;  %v1117_v52 = vmul.f32 %v4277_v61, %v1374_v31  ;;  %v860_v30 = vmul.f32 %v4246_v39, %v1374_v31 }
 0x141   : > { %v1567_v7 = vld [vmem:[#allocation2 + $0xc2] sm:$0xff]  ;;  %v622_v55 = vpop.f32.mrf.mxu0  ;;  %v4587_v56 = vld [vmem:[#allocation2 + $0xca] sm:$0xff]  ;;  %v1504_v36 = vmul.f32 %v4313_v34, %v1471_v23  ;;  %v1214_v12 = vmul.f32 %v4286_v8, %v1471_v23 }
 0x142   : > { %v1600_v42 = vmul.f32 %v4323_v44, %v1567_v7  ;;  %v623_v59 = vadd.f32 %v4210_v28, %v622_v55  ;;  %v1439_v60 = vadd.f32 %v1407_v37, %v1341_v29  ;;  %v1601_v45 = vmul.f32 %v4323_v44, %v4587_v56 }
 0x143   : > { %v1310_v3 = vmul.f32 %v4291_v9, %v1567_v7  ;;  %v1149_v38 = vadd.f32 %v1117_v52, %v1052_v13  ;;  %v1311_v27 = vmul.f32 %v4291_v9, %v4587_v56  ;;  %v925_v29 = vmul.f32 %v4251_v40, %v1471_v23  ;;  %v4640_v52 = vld [vmem:[%s6182_s3 + $0x2] ss:$0 sm:$0xff] }
 0x144   : > { %v1632_v63 = vadd.f32 %v1600_v42, %v1535_v41  ;;  %v677_v53 = vmax.f32 %v623_v59, 0.0  ;;  %v1536_v54 = vadd.f32 %v1504_v36, %v1439_v60  ;;  %v1021_v49 = vmul.f32 %v4261_v46, %v1567_v7 }
 0x145   : > { %v1342_v33 = vadd.f32 %v1310_v3, %v1245_v21  ;;  %v1246_v18 = vadd.f32 %v1214_v12, %v1149_v38  ;;  %v957_v7 = vadd.f32 %v925_v29, %v860_v30  ;;  %v1022_v26 = vmul.f32 %v4640_v52, %v4587_v56 }
 0x146   : > { %v1668_v6 = vadd.f32 %v4339_v62, %v1632_v63  ;;  %v709_v1 = vmin.f32 %v677_v53, 6.0  ;;  %v1633_v28 = vadd.f32 %v1601_v45, %v1536_v54  ;;  %v1053_v59 = vadd.f32 %v1021_v49, %v956_v58 }
 0x147   : > { %v4599_v57 = vld [vmem:[#allocation2 + $0xd8] sm:$0xff]  ;;  %v1343_v41 = vadd.f32 %v1311_v27, %v1246_v18  ;;  %v4675_v27 = vld [vmem:[%s6182_s3 + $0x6] ss:$0 sm:$0xff] }
 0x148   : > { %784 = vst.msk [vmem:[#allocation2 + $0xe1] sm:$0xff] %vm724_vm1, %v709_v1  ;;  %v1669_v48 = vadd.f32 %v4339_v62, %v1633_v28  ;;  %v1700_v15 = vmax.f32 %v1668_v6, 0.0  ;;  %v1408_v10 = vmul.f32 %v4297_v16, %v4599_v57  ;;  %v4612_v19 = vld [vmem:[#allocation2 + $0xd9] sm:$0xff]  ;;  %v1118_v17 = vmul.f32 %v4277_v61, %v4599_v57 }
 0x149   : > { %v625_v11 = vpop.f32.mrf.mxu0  ;;  %v1505_v2 = vmul.f32 %v4313_v34, %v4612_v19  ;;  %v1054_v28 = vadd.f32 %v1022_v26, %v957_v7  ;;  %v1215_v38 = vmul.f32 %v4286_v8, %v4612_v19  ;;  %v4717_v26 = vld [vmem:[%s6182_s3 + $0x9] ss:$0 sm:$0xff] }
 0x14a   : > { %v626_v25 = vadd.f32 %v4609_v50, %v625_v11  ;;  %v1701_v32 = vmax.f32 %v1669_v48, 0.0  ;;  %v1732_v14 = vmin.f32 %v1700_v15, 6.0  ;;  %v1440_v47 = vadd.f32 %v1408_v10, %v1342_v33 }
 0x14b   : > { %v1150_v54 = vadd.f32 %v1118_v17, %v1053_v59 }
 0x14c   : > { %v678_v0 = vmax.f32 %v626_v25, 0.0  ;;  %v1733_v43 = vmin.f32 %v1701_v32, 6.0  ;;  %v1537_v40 = vadd.f32 %v1505_v2, %v1440_v47 }
 0x14d   : > { %v1247_v10 = vadd.f32 %v1215_v38, %v1150_v54 }
 0x14e   : > { %v710_v51 = vmin.f32 %v678_v0, 6.0  ;;  %v1758_v37 = vpack.c.bf16 %v1733_v43, %v1732_v14  ;;  %v861_v0 = vmul.f32 %v4665_v24, %v4599_v57  ;;  %v4683_v57 = vld [vmem:[%s6182_s3 + $0x1] ss:$0 sm:$0xff] }
 0x14f   : > { %v1376_v5 = vld [vmem:[#allocation2 + $0xe0] sm:$0xff]  ;;  %v926_v49 = vmul.f32 %v4683_v57, %v4612_v19  ;;  %v4699_v19 = vld [vmem:[%s6182_s3 + $0x8] ss:$0 sm:$0xff] }
 0x150   : > { %v1473_v42 = vld [vmem:[#allocation2 + $0xe1] sm:$0xff]  ;;  %785 = vst.msk [vmem:[#allocation2 + $0xf1] sm:$0xff] %vm724_vm1, %v710_v51  ;;  %3633 = vmatmul.msk.bf16.gmra.mxu1 %vm724_vm1, %v1758_v37  ;;  %v1409_v39 = vmul.f32 %v4297_v16, %v1376_v5  ;;  %v1119_v53 = vmul.f32 %v4277_v61, %v1376_v5  ;;  %v862_v29 = vmul.f32 %v4665_v24, %v1376_v5 }
 0x151   : > { %v4624_v55 = vld [vmem:[#allocation2 + $0xda] sm:$0xff]  ;;  %v627_v31 = vpop.f32.mrf.mxu0  ;;  %v4633_v23 = vld [vmem:[#allocation2 + $0xe2] sm:$0xff]  ;;  %v1506_v63 = vmul.f32 %v4313_v34, %v1473_v42  ;;  %v1216_v25 = vmul.f32 %v4286_v8, %v1473_v42  ;;  %v927_v51 = vmul.f32 %v4683_v57, %v1473_v42  ;;  %v958_v59 = vadd.f32 %v926_v49, %v861_v0 }
 0x152   : > { %v1602_v46 = vmul.f32 %v4323_v44, %v4624_v55  ;;  %v628_v60 = vadd.f32 %v4609_v50, %v627_v31  ;;  %v1441_v36 = vadd.f32 %v1409_v39, %v1343_v41  ;;  %v1603_v13 = vmul.f32 %v4323_v44, %v4633_v23  ;;  %v3719_v8 = vld [vmem:[%s6186_s7] sm:$0xff] }
 0x153   : > { %v1312_v48 = vmul.f32 %v4291_v9, %v4624_v55  ;;  %v1151_v56 = vadd.f32 %v1119_v53, %v1054_v28  ;;  %v1313_v30 = vmul.f32 %v4675_v27, %v4633_v23  ;;  %2048 = vmatpush.bf16.msra.mxu2 %v3719_v8 }
 0x154   : > { %v1634_v4 = vadd.f32 %v1602_v46, %v1537_v40  ;;  %v679_v45 = vmax.f32 %v628_v60, 0.0  ;;  %v1538_v6 = vadd.f32 %v1506_v63, %v1441_v36  ;;  %v1023_v40 = vmul.f32 %v4640_v52, %v4624_v55  ;;  %v4709_v60 = vld [vmem:[%s6182_s3 + $0x4] ss:$0 sm:$0xff] }
 0x155   : > { %v1344_v18 = vadd.f32 %v1312_v48, %v1247_v10  ;;  %v1248_v9 = vadd.f32 %v1216_v25, %v1151_v56  ;;  %v959_v55 = vadd.f32 %v927_v51, %v862_v29 }
 0x156   : > { %v1670_v1 = vadd.f32 %v4339_v62, %v1634_v4  ;;  %v711_v35 = vmin.f32 %v679_v45, 6.0  ;;  %v1635_v3 = vadd.f32 %v1603_v13, %v1538_v6  ;;  %v1024_v6 = vmul.f32 %v4640_v52, %v4633_v23 }
 0x157   : > { %v4652_v15 = vld [vmem:[#allocation2 + $0xf0] sm:$0xff]  ;;  %v1345_v58 = vadd.f32 %v1313_v30, %v1248_v9  ;;  %v1055_v13 = vadd.f32 %v1023_v40, %v958_v59 }
 0x158   : > { %786 = vst.msk [vmem:[#allocation2 + $0xf9] sm:$0xff] %vm724_vm1, %v711_v35  ;;  %v1671_v61 = vadd.f32 %v4339_v62, %v1635_v3  ;;  %v1702_v21 = vmax.f32 %v1670_v1, 0.0  ;;  %v1410_v11 = vmul.f32 %v4297_v16, %v4652_v15  ;;  %v4660_v20 = vld [vmem:[#allocation2 + $0xf1] sm:$0xff]  ;;  %v1120_v36 = vmul.f32 %v4709_v60, %v4652_v15 }
 0x159   : > { %v630_v12 = vpop.f32.mrf.mxu0  ;;  %v1507_v41 = vmul.f32 %v4313_v34, %v4660_v20 }
 0x15a   : > { %v631_v32 = vadd.f32 %v4609_v50, %v630_v12  ;;  %v1703_v33 = vmax.f32 %v1671_v61, 0.0  ;;  %v1734_v16 = vmin.f32 %v1702_v21, 6.0  ;;  %v1442_v47 = vadd.f32 %v1410_v11, %v1344_v18  ;;  %v4729_v21 = vld [vmem:[%s6182_s3 + $0x5] ss:$0 sm:$0xff] }
 0x15b   : > { %v1152_v38 = vadd.f32 %v1120_v36, %v1055_v13  ;;  %v1056_v61 = vadd.f32 %v1024_v6, %v959_v55 }
 0x15c   : > { %v680_v14 = vmax.f32 %v631_v32, 0.0  ;;  %v1735_v43 = vmin.f32 %v1703_v33, 6.0  ;;  %v1539_v42 = vadd.f32 %v1507_v41, %v1442_v47 }
 0x15e   : > { %v712_v37 = vmin.f32 %v680_v14, 6.0  ;;  %v1759_v2 = vpack.c.bf16 %v1735_v43, %v1734_v16 }
 0x15f   : > { %v1378_v17 = vld [vmem:[#allocation2 + $0xf8] sm:$0xff] }
 0x160   : > { %v1475_v39 = vld [vmem:[#allocation2 + $0xf9] sm:$0xff]  ;;  %787 = vst.msk [vmem:[#allocation2 + $0x109] sm:$0xff] %vm724_vm1, %v712_v37  ;;  %3634 = vmatmul.msk.bf16.gmra.mxu1 %vm724_vm1, %v1759_v2  ;;  %v1411_v34 = vmul.f32 %v4699_v19, %v1378_v17  ;;  %v1121_v3 = vmul.f32 %v4709_v60, %v1378_v17  ;;  %v863_v37 = vmul.f32 %v4665_v24, %v4652_v15 }
 0x161   : > { %v4690_v5 = vld [vmem:[#allocation2 + $0xf2] sm:$0xff]  ;;  %v4702_v46 = vld [vmem:[#allocation2 + $0xfa] sm:$0xff]  ;;  %v632_v7 = vpop.f32.mrf.mxu0  ;;  %v1508_v53 = vmul.f32 %v4717_v26, %v1475_v39  ;;  %v1218_v14 = vmul.f32 %v4729_v21, %v1475_v39  ;;  %v928_v2 = vmul.f32 %v4683_v57, %v4660_v20 }
 0x162   : > { %v1604_v31 = vmul.f32 %v4323_v44, %v4690_v5  ;;  %v633_v63 = vadd.f32 %v4609_v50, %v632_v7  ;;  %v1443_v4 = vadd.f32 %v1411_v34, %v1345_v58  ;;  %v1605_v45 = vmul.f32 %v4323_v44, %v4702_v46  ;;  %v4754_v58 = vld [vmem:[%s6185_s6] ss:$0 sm:$0xff] }
 0x163   : > { %v1217_v44 = vmul.f32 %v4729_v21, %v4660_v20  ;;  %v1314_v23 = vmul.f32 %v4675_v27, %v4690_v5  ;;  %v1153_v25 = vadd.f32 %v1121_v3, %v1056_v61  ;;  %v1315_v49 = vmul.f32 %v4675_v27, %v4702_v46 }
 0x164   : > { %v1636_v54 = vadd.f32 %v1604_v31, %v1539_v42  ;;  %v681_v1 = vmax.f32 %v633_v63, 0.0  ;;  %v1540_v28 = vadd.f32 %v1508_v53, %v1443_v4  ;;  %v864_v34 = vmul.f32 %v4665_v24, %v1378_v17  ;;  %v4777_v4 = vld [vmem:[%s6182_s3 + $0xa] ss:$0 sm:$0xff] }
 0x165   : > { %v1249_v33 = vadd.f32 %v1217_v44, %v1152_v38  ;;  %v1250_v30 = vadd.f32 %v1218_v14, %v1153_v25  ;;  %v929_v42 = vmul.f32 %v4683_v57, %v1475_v39  ;;  %v1025_v20 = vmul.f32 %v4640_v52, %v4690_v5 }
 0x166   : > { %v1672_v35 = vadd.f32 %v4339_v62, %v1636_v54  ;;  %v713_v48 = vmin.f32 %v681_v1, 6.0  ;;  %v1637_v56 = vadd.f32 %v1605_v45, %v1540_v28  ;;  %v960_v53 = vadd.f32 %v928_v2, %v863_v37 }
 0x167   : > { %v4735_v10 = vld [vmem:[#allocation2 + $0x108] sm:$0xff]  ;;  %v1346_v16 = vadd.f32 %v1314_v23, %v1249_v33  ;;  %v1347_v55 = vadd.f32 %v1315_v49, %v1250_v30  ;;  %v961_v1 = vadd.f32 %v929_v42, %v864_v34  ;;  %v1026_v3 = vmul.f32 %v4640_v52, %v4702_v46 }
 0x168   : > { %788 = vst.msk [vmem:[#allocation2 + $0x111] sm:$0xff] %vm724_vm1, %v713_v48  ;;  %v1673_v11 = vadd.f32 %v4339_v62, %v1637_v56  ;;  %v1704_v12 = vmax.f32 %v1672_v35, 0.0  ;;  %v1412_v18 = vmul.f32 %v4699_v19, %v4735_v10  ;;  %v4743_v29 = vld [vmem:[#allocation2 + $0x109] sm:$0xff]  ;;  %v1122_v54 = vmul.f32 %v4709_v60, %v4735_v10 }
 0x169   : > { %v635_v32 = vpop.f32.mrf.mxu0  ;;  %v1509_v15 = vmul.f32 %v4717_v26, %v4743_v29  ;;  %v1057_v38 = vadd.f32 %v1025_v20, %v960_v53  ;;  %v1219_v14 = vmul.f32 %v4729_v21, %v4743_v29 }
 0x16a   : > { %v636_v9 = vadd.f32 %v4609_v50, %v635_v32  ;;  %v1705_v0 = vmax.f32 %v1673_v11, 0.0  ;;  %v1736_v47 = vmin.f32 %v1704_v12, 6.0  ;;  %v1444_v51 = vadd.f32 %v1412_v18, %v1346_v16  ;;  %v4796_v11 = vld [vmem:[%s6183_s4] ss:$0 sm:$0xff] }
 0x16b   : > { %v1154_v25 = vadd.f32 %v1122_v54, %v1057_v38  ;;  %v1058_v18 = vadd.f32 %v1026_v3, %v961_v1 }
 0x16c   : > { %v682_v43 = vmax.f32 %v636_v9, 0.0  ;;  %v1737_v8 = vmin.f32 %v1705_v0, 6.0  ;;  %v1541_v36 = vadd.f32 %v1509_v15, %v1444_v51  ;;  %v3813_v9 = vld [vmem:[%s4122_s17] sm:$0xff] }
 0x16d   : > { %v1853_v62 = vpop.f32.mrf.mxu1  ;;  %v1251_v37 = vadd.f32 %v1219_v14, %v1154_v25 }
 0x16e   : > { %v714_v41 = vmin.f32 %v682_v43, 6.0  ;;  %v1760_v40 = vpack.c.bf16 %v1737_v8, %v1736_v47  ;;  %v1854_v28 = vadd.f32 %v4754_v58, %v1853_v62  ;;  %v3814_v47 = vld [vmem:[%s4122_s17 + $0x8] sm:$0xff] }
 0x16f   : > { %v4758_v31 = vld [vmem:[#allocation2 + $0x110] sm:$0xff] }
 0x170   : > { %v4760_v7 = vld [vmem:[#allocation2 + $0x111] sm:$0xff]  ;;  %789 = vst.msk [vmem:[#allocation2 + $0x121] sm:$0xff] %vm724_vm1, %v714_v41  ;;  %3635 = vmatmul.msk.bf16.gmra.mxu1 %vm724_vm1, %v1760_v40  ;;  %v1413_v17 = vmul.f32 %v4699_v19, %v4758_v31  ;;  %v1123_v44 = vmul.f32 %v4709_v60, %v4758_v31  ;;  %v4801_v0 = vadd.f32 %v3813_v9, %v1854_v28 }
 0x171   : > { %v4764_v59 = vld [vmem:[#allocation2 + $0x10a] sm:$0xff]  ;;  %v637_v39 = vpop.f32.mrf.mxu0  ;;  %v4772_v63 = vld [vmem:[#allocation2 + $0x112] sm:$0xff]  ;;  %v1510_v13 = vmul.f32 %v4717_v26, %v4760_v7  ;;  %v1220_v42 = vmul.f32 %v4729_v21, %v4760_v7  ;;  %v866_v28 = vmul.f32 %v4665_v24, %v4758_v31 }
 0x172   : > { %v1606_v5 = vmul.f32 %v4777_v4, %v4764_v59  ;;  %v638_v45 = vadd.f32 %v4609_v50, %v637_v39  ;;  %v1445_v6 = vadd.f32 %v1413_v17, %v1347_v55  ;;  %v1607_v61 = vmul.f32 %v4777_v4, %v4772_v63 }
 0x173   : > { %v1316_v16 = vmul.f32 %v4675_v27, %v4764_v59  ;;  %v1155_v49 = vadd.f32 %v1123_v44, %v1058_v18  ;;  %v1317_v53 = vmul.f32 %v4675_v27, %v4772_v63  ;;  %v1028_v14 = vmul.f32 %v4640_v52, %v4772_v63  ;;  %v3815_v63 = vld [vmem:[%s4122_s17 + $0x10] sm:$0xff] }
 0x174   : > { %v1638_v35 = vadd.f32 %v1606_v5, %v1541_v36  ;;  %v683_v48 = vmax.f32 %v638_v45, 0.0  ;;  %v1542_v56 = vadd.f32 %v1510_v13, %v1445_v6  ;;  %v865_v45 = vmul.f32 %v4665_v24, %v4735_v10 }
 0x175   : > { %v1855_v23 = vpop.f32.mrf.mxu1  ;;  %v1348_v15 = vadd.f32 %v1316_v16, %v1251_v37  ;;  %v1252_v39 = vadd.f32 %v1220_v42, %v1155_v49  ;;  %v930_v6 = vmul.f32 %v4683_v57, %v4743_v29  ;;  %v1027_v10 = vmul.f32 %v4640_v52, %v4764_v59 }
 0x176   : > { %v1674_v12 = vadd.f32 %v4796_v11, %v1638_v35  ;;  %v715_v46 = vmin.f32 %v683_v48, 6.0  ;;  %v1856_v32 = vadd.f32 %v4754_v58, %v1855_v23  ;;  %v1639_v33 = vadd.f32 %v1607_v61, %v1542_v56 }
 0x177   : > { %v4807_v43 = vld [vmem:[#allocation2 + $0x120] sm:$0xff]  ;;  %v931_v35 = vmul.f32 %v4683_v57, %v4760_v7  ;;  %v1349_v29 = vadd.f32 %v1317_v53, %v1252_v39  ;;  %v3816_v39 = vld [vmem:[%s4122_s17 + $0x18] sm:$0xff] }
 0x178   : > { %790 = vst.msk [vmem:[#allocation2 + $0x129] sm:$0xff] %vm724_vm1, %v715_v46  ;;  %v4811_v8 = vadd.f32 %v3814_v47, %v1856_v32  ;;  %v1675_v30 = vadd.f32 %v4796_v11, %v1639_v33  ;;  %v1706_v62 = vmax.f32 %v1674_v12, 0.0  ;;  %v1414_v2 = vmul.f32 %v4699_v19, %v4807_v43  ;;  %v4822_v36 = vld [vmem:[#allocation2 + $0x121] sm:$0xff] }
 0x179   : > { %v640_v51 = vpop.f32.mrf.mxu0  ;;  %v1511_v48 = vmul.f32 %v4717_v26, %v4822_v36  ;;  %v962_v12 = vadd.f32 %v930_v6, %v865_v45  ;;  %v1124_v25 = vmul.f32 %v4709_v60, %v4807_v43  ;;  %v963_v33 = vadd.f32 %v931_v35, %v866_v28 }
 0x17a   : > { %v641_v41 = vadd.f32 %v4609_v50, %v640_v51  ;;  %v1965_v40 = vpack.c.bf16 %v4811_v8, %v4801_v0  ;;  %v1707_v34 = vmax.f32 %v1675_v30, 0.0  ;;  %v1738_v55 = vmin.f32 %v1706_v62, 6.0 }
 0x17b   : > { %v1446_v54 = vadd.f32 %v1414_v2, %v1348_v15  ;;  %v1059_v16 = vadd.f32 %v1027_v10, %v962_v12  ;;  %v1060_v42 = vadd.f32 %v1028_v14, %v963_v33  ;;  %v932_v33 = vmul.f32 %v4683_v57, %v4822_v36 }
 0x17c   : > { %v684_v20 = vmax.f32 %v641_v41, 0.0  ;;  %3647 = vmatmul.msk.bf16.vlgmr.msra.gmra.mxu2 %vm522_vm0, %v1965_v40  ;;  %v1739_v17 = vmin.f32 %v1707_v34, 6.0 }
 0x17d   : > { %v1858_v5 = vpop.f32.mrf.mxu1  ;;  %v1543_v61 = vadd.f32 %v1511_v48, %v1446_v54  ;;  %v1156_v2 = vadd.f32 %v1124_v25, %v1059_v16 }
 0x17e   : > { %v716_v13 = vmin.f32 %v684_v20, 6.0  ;;  %v1761_v1 = vpack.c.bf16 %v1739_v17, %v1738_v55  ;;  %v1859_v18 = vadd.f32 %v4754_v58, %v1858_v5  ;;  %v1221_v20 = vmul.f32 %v4729_v21, %v4822_v36 }
 0x17f   : > { %v4834_v3 = vld [vmem:[#allocation2 + $0x128] sm:$0xff] }
 0x180   : > { %v4836_v38 = vld [vmem:[#allocation2 + $0x129] sm:$0xff]  ;;  %791 = vst.msk [vmem:[#allocation2 + $0x139] sm:$0xff] %vm724_vm1, %v716_v13  ;;  %3636 = vmatmul.msk.bf16.gmra.mxu1 %vm724_vm1, %v1761_v1  ;;  %v1415_v31 = vmul.f32 %v4699_v19, %v4834_v3  ;;  %v1125_v49 = vmul.f32 %v4709_v60, %v4834_v3  ;;  %v4867_v15 = vadd.f32 %v3815_v63, %v1859_v18 }
 0x181   : > { %v4840_v56 = vld [vmem:[#allocation2 + $0x122] sm:$0xff]  ;;  %v642_v7 = vpop.f32.mrf.mxu0  ;;  %v4848_v44 = vld [vmem:[#allocation2 + $0x12a] sm:$0xff]  ;;  %v1512_v32 = vmul.f32 %v4717_v26, %v4836_v38  ;;  %v1253_v13 = vadd.f32 %v1221_v20, %v1156_v2  ;;  %v1222_v10 = vmul.f32 %v4729_v21, %v4836_v38  ;;  %v868_v14 = vmul.f32 %v4665_v24, %v4834_v3 }
 0x182   : > { %v1608_v23 = vmul.f32 %v4777_v4, %v4840_v56  ;;  %v643_v59 = vadd.f32 %v4609_v50, %v642_v7  ;;  %v1447_v46 = vadd.f32 %v1415_v31, %v1349_v29  ;;  %v1609_v62 = vmul.f32 %v4777_v4, %v4848_v44 }
 0x183   : > { %v1318_v55 = vmul.f32 %v4675_v27, %v4840_v56  ;;  %v1157_v45 = vadd.f32 %v1125_v49, %v1060_v42  ;;  %v933_v16 = vmul.f32 %v4683_v57, %v4836_v38 }
 0x184   : > { %v1640_v9 = vadd.f32 %v1608_v23, %v1543_v61  ;;  %v685_v47 = vmax.f32 %v643_v59, 0.0  ;;  %v1544_v30 = vadd.f32 %v1512_v32, %v1447_v46  ;;  %v1319_v59 = vmul.f32 %v4675_v27, %v4848_v44 }
 0x185   : > { %v1860_v51 = vpop.f32.mrf.mxu1  ;;  %v1350_v29 = vadd.f32 %v1318_v55, %v1253_v13  ;;  %v1254_v23 = vadd.f32 %v1222_v10, %v1157_v45  ;;  %v867_v32 = vmul.f32 %v4665_v24, %v4807_v43  ;;  %v1029_v43 = vmul.f32 %v4640_v52, %v4840_v56 }
 0x186   : > { %v1676_v37 = vadd.f32 %v4796_v11, %v1640_v9  ;;  %v717_v41 = vmin.f32 %v685_v47, 6.0  ;;  %v1861_v40 = vadd.f32 %v4754_v58, %v1860_v51  ;;  %v1641_v34 = vadd.f32 %v1609_v62, %v1544_v30 }
 0x187   : > { %v4873_v17 = vld [vmem:[#allocation2 + $0x138] sm:$0xff]  ;;  %v1351_v36 = vadd.f32 %v1319_v59, %v1254_v23  ;;  %v965_v63 = vadd.f32 %v933_v16, %v868_v14  ;;  %v3818_v59 = vld [vmem:[%s4122_s17 + $0x28] sm:$0xff] }
 0x188   : > { %792 = vst.msk [vmem:[#allocation2 + $0x141] sm:$0xff] %vm724_vm1, %v717_v41  ;;  %v4877_v5 = vadd.f32 %v3816_v39, %v1861_v40  ;;  %v1677_v53 = vadd.f32 %v4796_v11, %v1641_v34  ;;  %v1708_v54 = vmax.f32 %v1676_v37, 0.0  ;;  %v1416_v1 = vmul.f32 %v4699_v19, %v4873_v17  ;;  %v4888_v12 = vld [vmem:[#allocation2 + $0x139] sm:$0xff] }
 0x189   : > { %v645_v6 = vpop.f32.mrf.mxu0  ;;  %v1513_v62 = vmul.f32 %v4717_v26, %v4888_v12  ;;  %v964_v41 = vadd.f32 %v932_v33, %v867_v32  ;;  %v1126_v40 = vmul.f32 %v4709_v60, %v4873_v17  ;;  %v1030_v39 = vmul.f32 %v4640_v52, %v4848_v44  ;;  %v3817_v44 = vld [vmem:[%s4122_s17 + $0x20] sm:$0xff] }
 0x18a   : > { %v646_v28 = vadd.f32 %v4609_v50, %v645_v6  ;;  %v1966_v35 = vpack.c.bf16 %v4877_v5, %v4867_v15  ;;  %v1709_v48 = vmax.f32 %v1677_v53, 0.0  ;;  %v1740_v7 = vmin.f32 %v1708_v54, 6.0 }
 0x18b   : > { %v1448_v46 = vadd.f32 %v1416_v1, %v1350_v29  ;;  %v1061_v53 = vadd.f32 %v1029_v43, %v964_v41 }
 0x18c   : > { %v686_v31 = vmax.f32 %v646_v28, 0.0  ;;  %3648 = vmatmul.msk.bf16.gmra.mxu2 %vm522_vm0, %v1966_v35  ;;  %v1741_v61 = vmin.f32 %v1709_v48, 6.0 }
 0x18d   : > { %v1863_v25 = vpop.f32.mrf.mxu1  ;;  %v1545_v51 = vadd.f32 %v1513_v62, %v1448_v46  ;;  %v1158_v35 = vadd.f32 %v1126_v40, %v1061_v53 }
 0x18e   : > { %v718_v18 = vmin.f32 %v686_v31, 6.0  ;;  %v1762_v9 = vpack.c.bf16 %v1741_v61, %v1740_v7  ;;  %v1864_v20 = vadd.f32 %v4754_v58, %v1863_v25  ;;  %v1062_v31 = vadd.f32 %v1030_v39, %v965_v63 }
 0x18f   : > { %v4900_v47 = vld [vmem:[#allocation2 + $0x140] sm:$0xff]  ;;  %v1223_v61 = vmul.f32 %v4729_v21, %v4888_v12 }
 0x190   : > { %v4902_v30 = vld [vmem:[#allocation2 + $0x141] sm:$0xff]  ;;  %793 = vst.msk [vmem:[#allocation2 + $0x151] sm:$0xff] %vm724_vm1, %v718_v18  ;;  %3637 = vmatmul.msk.bf16.gmra.mxu1 %vm724_vm1, %v1762_v9  ;;  %v1417_v3 = vmul.f32 %v4699_v19, %v4900_v47  ;;  %v1127_v13 = vmul.f32 %v4709_v60, %v4900_v47  ;;  %v4933_v7 = vadd.f32 %v3817_v44, %v1864_v20 }
 0x191   : > { %v4906_v49 = vld [vmem:[#allocation2 + $0x13a] sm:$0xff]  ;;  %v647_v38 = vpop.f32.mrf.mxu0  ;;  %v4914_v37 = vld [vmem:[#allocation2 + $0x142] sm:$0xff]  ;;  %v1514_v42 = vmul.f32 %v4717_v26, %v4902_v30  ;;  %v1255_v14 = vadd.f32 %v1223_v61, %v1158_v35  ;;  %v869_v20 = vmul.f32 %v4665_v24, %v4873_v17 }
 0x192   : > { %v1610_v2 = vmul.f32 %v4777_v4, %v4906_v49  ;;  %v648_v56 = vadd.f32 %v4609_v50, %v647_v38  ;;  %v1449_v34 = vadd.f32 %v1417_v3, %v1351_v36  ;;  %v1611_v6 = vmul.f32 %v4777_v4, %v4914_v37 }
 0x193   : > { %v1320_v23 = vmul.f32 %v4675_v27, %v4906_v49  ;;  %v1159_v18 = vadd.f32 %v1127_v13, %v1062_v31  ;;  %v1224_v3 = vmul.f32 %v4729_v21, %v4902_v30  ;;  %v1031_v17 = vmul.f32 %v4640_v52, %v4906_v49 }
 0x194   : > { %v1642_v55 = vadd.f32 %v1610_v2, %v1545_v51  ;;  %v687_v54 = vmax.f32 %v648_v56, 0.0  ;;  %v1546_v45 = vadd.f32 %v1514_v42, %v1449_v34  ;;  %v1321_v42 = vmul.f32 %v4675_v27, %v4914_v37 }
 0x195   : > { %v1865_v1 = vpop.f32.mrf.mxu1  ;;  %v1352_v38 = vadd.f32 %v1320_v23, %v1255_v14  ;;  %v1256_v40 = vadd.f32 %v1224_v3, %v1159_v18 }
 0x196   : > { %v1678_v28 = vadd.f32 %v4796_v11, %v1642_v55  ;;  %v719_v48 = vmin.f32 %v687_v54, 6.0  ;;  %v1866_v10 = vadd.f32 %v4754_v58, %v1865_v1  ;;  %v1643_v29 = vadd.f32 %v1611_v6, %v1546_v45 }
 0x197   : > { %v4939_v25 = vld [vmem:[#allocation2 + $0x150] sm:$0xff]  ;;  %v934_v55 = vmul.f32 %v4683_v57, %v4888_v12  ;;  %v870_v54 = vmul.f32 %v4665_v24, %v4900_v47  ;;  %v935_v45 = vmul.f32 %v4683_v57, %v4902_v30  ;;  %v1353_v12 = vadd.f32 %v1321_v42, %v1256_v40 }
 0x198   : > { %794 = vst.msk [vmem:[#allocation2 + $0x159] sm:$0xff] %vm724_vm1, %v719_v48  ;;  %v4943_v46 = vadd.f32 %v3818_v59, %v1866_v10  ;;  %v1679_v32 = vadd.f32 %v4796_v11, %v1643_v29  ;;  %v1710_v33 = vmax.f32 %v1678_v28, 0.0  ;;  %v1418_v16 = vmul.f32 %v4699_v19, %v4939_v25  ;;  %v4954_v56 = vld [vmem:[#allocation2 + $0x151] sm:$0xff] }
 0x199   : > { %v650_v9 = vpop.f32.mrf.mxu0  ;;  %v1515_v1 = vmul.f32 %v4717_v26, %v4954_v56  ;;  %v966_v29 = vadd.f32 %v934_v55, %v869_v20  ;;  %v1128_v31 = vmul.f32 %v4709_v60, %v4939_v25  ;;  %v967_v23 = vadd.f32 %v935_v45, %v870_v54  ;;  %v3819_v40 = vld [vmem:[%s4122_s17 + $0x30] sm:$0xff]  ;;  %v3820_v20 = vld [vmem:[%s4122_s17 + $0x38] sm:$0xff] }
 0x19a   : > { %v651_v62 = vadd.f32 %v4609_v50, %v650_v9  ;;  %v1967_v43 = vpack.c.bf16 %v4943_v46, %v4933_v7  ;;  %v1711_v36 = vmax.f32 %v1679_v32, 0.0  ;;  %v1742_v2 = vmin.f32 %v1710_v33, 6.0 }
 0x19b   : > { %v1450_v63 = vadd.f32 %v1418_v16, %v1352_v38  ;;  %v1032_v33 = vmul.f32 %v4640_v52, %v4914_v37  ;;  %v1063_v18 = vadd.f32 %v1031_v17, %v966_v29 }
 0x19c   : > { %v688_v51 = vmax.f32 %v651_v62, 0.0  ;;  %3649 = vmatmul.msk.bf16.gmra.mxu2 %vm522_vm0, %v1967_v43  ;;  %v1743_v41 = vmin.f32 %v1711_v36, 6.0 }
 0x19d   : > { %v1868_v34 = vpop.f32.mrf.mxu1  ;;  %v1547_v48 = vadd.f32 %v1515_v1, %v1450_v63  ;;  %v1160_v3 = vadd.f32 %v1128_v31, %v1063_v18 }
 0x19e   : > { %v720_v39 = vmin.f32 %v688_v51, 6.0  ;;  %v1763_v53 = vpack.c.bf16 %v1743_v41, %v1742_v2  ;;  %v1869_v59 = vadd.f32 %v4754_v58, %v1868_v34  ;;  %v1064_v41 = vadd.f32 %v1032_v33, %v967_v23 }
 0x19f   : > { %v1386_v6 = vld [vmem:[#allocation2 + $0x158] sm:$0xff]  ;;  %v1225_v34 = vmul.f32 %v4729_v21, %v4954_v56 }
 0x1a0   : > { %v1483_v13 = vld [vmem:[#allocation2 + $0x159] sm:$0xff]  ;;  %795 = vst.msk [vmem:[#allocation2 + $0x169] sm:$0xff] %vm724_vm1, %v720_v39  ;;  %3638 = vmatmul.msk.bf16.gmra.mxu1 %vm724_vm1, %v1763_v53  ;;  %v1419_v35 = vmul.f32 %v4699_v19, %v1386_v6  ;;  %v1129_v62 = vmul.f32 %v4709_v60, %v1386_v6  ;;  %v4989_v37 = vadd.f32 %v3819_v40, %v1869_v59 }
 0x1a1   : > { %v1579_v28 = vld [vmem:[#allocation2 + $0x152] sm:$0xff]  ;;  %v652_v47 = vpop.f32.mrf.mxu0  ;;  %v4973_v10 = vld [vmem:[#allocation2 + $0x15a] sm:$0xff]  ;;  %v1516_v61 = vmul.f32 %v4717_v26, %v1483_v13  ;;  %v1257_v1 = vadd.f32 %v1225_v34, %v1160_v3  ;;  %v872_v31 = vmul.f32 %v4665_v24, %v1386_v6 }
 0x1a2   : > { %v1612_v30 = vmul.f32 %v4777_v4, %v1579_v28  ;;  %v653_v44 = vadd.f32 %v4609_v50, %v652_v47  ;;  %v1451_v49 = vadd.f32 %v1419_v35, %v1353_v12  ;;  %v1613_v16 = vmul.f32 %v4777_v4, %v4973_v10 }
 0x1a3   : > { %v1322_v42 = vmul.f32 %v4675_v27, %v1579_v28  ;;  %v1161_v54 = vadd.f32 %v1129_v62, %v1064_v41  ;;  %v871_v12 = vmul.f32 %v4665_v24, %v4939_v25  ;;  %v1323_v6 = vmul.f32 %v4675_v27, %v4973_v10 }
 0x1a4   : > { %v1644_v32 = vadd.f32 %v1612_v30, %v1547_v48  ;;  %v689_v9 = vmax.f32 %v653_v44, 0.0  ;;  %v1548_v14 = vadd.f32 %v1516_v61, %v1451_v49  ;;  %v1226_v30 = vmul.f32 %v4729_v21, %v1483_v13 }
 0x1a5   : > { %v1870_v43 = vpop.f32.mrf.mxu1  ;;  %v1354_v29 = vadd.f32 %v1322_v42, %v1257_v1  ;;  %v936_v44 = vmul.f32 %v4683_v57, %v4954_v56  ;;  %v937_v49 = vmul.f32 %v4683_v57, %v1483_v13 }
 0x1a6   : > { %v1680_v36 = vadd.f32 %v4796_v11, %v1644_v32  ;;  %v721_v38 = vmin.f32 %v689_v9, 6.0  ;;  %v1871_v51 = vadd.f32 %v4754_v58, %v1870_v43  ;;  %v1645_v2 = vadd.f32 %v1613_v16, %v1548_v14 }
 0x1a7   : > { %v1387_v63 = vld [vmem:[#allocation2 + $0x168] sm:$0xff]  ;;  %v1258_v59 = vadd.f32 %v1226_v30, %v1161_v54  ;;  %v1033_v9 = vmul.f32 %v4640_v52, %v1579_v28  ;;  %v1034_v54 = vmul.f32 %v4640_v52, %v4973_v10 }
 0x1a8   : > { %796 = vst.msk [vmem:[#allocation2 + $0x171] sm:$0xff] %vm724_vm1, %v721_v38  ;;  %v4996_v55 = vadd.f32 %v3820_v20, %v1871_v51  ;;  %v1681_v39 = vadd.f32 %v4796_v11, %v1645_v2  ;;  %v1712_v53 = vmax.f32 %v1680_v36, 0.0  ;;  %v1420_v17 = vmul.f32 %v4699_v19, %v1387_v63  ;;  %v1484_v32 = vld [vmem:[#allocation2 + $0x169] sm:$0xff] }
 0x1a9   : > { %v655_v45 = vpop.f32.mrf.mxu0  ;;  %v1517_v13 = vmul.f32 %v4717_v26, %v1484_v32  ;;  %v968_v36 = vadd.f32 %v936_v44, %v871_v12  ;;  %v1130_v3 = vmul.f32 %v4709_v60, %v1387_v63  ;;  %v1355_v38 = vadd.f32 %v1323_v6, %v1258_v59  ;;  %v3821_v59 = vld [vmem:[%s4122_s17 + $0x40] sm:$0xff]  ;;  %v3822_v6 = vld [vmem:[%s4122_s17 + $0x48] sm:$0xff] }
 0x1aa   : > { %v656_v35 = vadd.f32 %v4609_v50, %v655_v45  ;;  %v1968_v47 = vpack.c.bf16 %v4996_v55, %v4989_v37  ;;  %v1713_v48 = vmax.f32 %v1681_v39, 0.0  ;;  %v1744_v25 = vmin.f32 %v1712_v53, 6.0 }
 0x1ab   : > { %v1452_v18 = vadd.f32 %v1420_v17, %v1354_v29  ;;  %v969_v51 = vadd.f32 %v937_v49, %v872_v31  ;;  %v1065_v42 = vadd.f32 %v1033_v9, %v968_v36  ;;  %v1227_v31 = vmul.f32 %v4729_v21, %v1484_v32 }
 0x1ac   : > { %v690_v61 = vmax.f32 %v656_v35, 0.0  ;;  %3650 = vmatmul.msk.bf16.gmra.mxu2 %vm522_vm0, %v1968_v47  ;;  %v1745_v23 = vmin.f32 %v1713_v48, 6.0  ;;  %v873_v10 = vmul.f32 %v4665_v24, %v1387_v63  ;;  %v938_v44 = vmul.f32 %v4683_v57, %v1484_v32 }
 0x1ad   : > { %v1873_v33 = vpop.f32.mrf.mxu1  ;;  %v1549_v41 = vadd.f32 %v1517_v13, %v1452_v18  ;;  %v1162_v12 = vadd.f32 %v1130_v3, %v1065_v42  ;;  %v1066_v30 = vadd.f32 %v1034_v54, %v969_v51 }
 0x1ae   : > { %v722_v14 = vmin.f32 %v690_v61, 6.0  ;;  %v1764_v16 = vpack.c.bf16 %v1745_v23, %v1744_v25  ;;  %v1874_v45 = vadd.f32 %v4754_v58, %v1873_v33  ;;  %v970_v51 = vadd.f32 %v938_v44, %v873_v10  ;;  %v1391_v44 = vld [vmem:[#allocation2 + $0x198] sm:$0xff] }
 0x1af   : > { %v1388_v62 = vld [vmem:[#allocation2 + $0x170] sm:$0xff]  ;;  %v1259_v9 = vadd.f32 %v1227_v31, %v1162_v12 }
 0x1b0   : > { %v1485_v56 = vld [vmem:[#allocation2 + $0x171] sm:$0xff]  ;;  %797 = vst.msk [vmem:[#allocation2 + $0x181] sm:$0xff] %vm724_vm1, %v722_v14  ;;  %3639 = vmatmul.msk.bf16.gmra.mxu1 %vm724_vm1, %v1764_v16  ;;  %v1421_v28 = vmul.f32 %v4699_v19, %v1388_v62  ;;  %v1131_v17 = vmul.f32 %v4709_v60, %v1388_v62  ;;  %v5034_v33 = vadd.f32 %v3821_v59, %v1874_v45 }
 0x1b1   : > { %v1581_v43 = vld [vmem:[#allocation2 + $0x16a] sm:$0xff]  ;;  %v657_v2 = vpop.f32.mrf.mxu0  ;;  %v1582_v40 = vld [vmem:[#allocation2 + $0x172] sm:$0xff]  ;;  %v1518_v53 = vmul.f32 %v4717_v26, %v1485_v56  ;;  %v1228_v3 = vmul.f32 %v4729_v21, %v1485_v56 }
 0x1b2   : > { %v1614_v34 = vmul.f32 %v4777_v4, %v1581_v43  ;;  %v658_v20 = vadd.f32 %v4609_v50, %v657_v2  ;;  %v1453_v39 = vadd.f32 %v1421_v28, %v1355_v38  ;;  %v1615_v48 = vmul.f32 %v4777_v4, %v1582_v40 }
 0x1b3   : > { %v1324_v23 = vmul.f32 %v4675_v27, %v1581_v43  ;;  %v1163_v18 = vadd.f32 %v1131_v17, %v1066_v30  ;;  %v1035_v16 = vmul.f32 %v4640_v52, %v1581_v43  ;;  %v874_v38 = vmul.f32 %v4665_v24, %v1388_v62 }
 0x1b4   : > { %v1646_v1 = vadd.f32 %v1614_v34, %v1549_v41  ;;  %v691_v35 = vmax.f32 %v658_v20, 0.0  ;;  %v1550_v47 = vadd.f32 %v1518_v53, %v1453_v39  ;;  %v939_v28 = vmul.f32 %v4683_v57, %v1485_v56 }
 0x1b5   : > { %v1875_v29 = vpop.f32.mrf.mxu1  ;;  %v1356_v41 = vadd.f32 %v1324_v23, %v1259_v9  ;;  %v1260_v42 = vadd.f32 %v1228_v3, %v1163_v18  ;;  %v1067_v45 = vadd.f32 %v1035_v16, %v970_v51  ;;  %v1325_v24 = vmul.f32 %v4675_v27, %v1582_v40  ;;  %v1392_v9 = vld [vmem:[#allocation2 + $0x1a0] sm:$0xff] }
 0x1b6   : > { %v1682_v50 = vadd.f32 %v4796_v11, %v1646_v1  ;;  %v723_v49 = vmin.f32 %v691_v35, 6.0  ;;  %v1876_v61 = vadd.f32 %v4754_v58, %v1875_v29  ;;  %v1647_v25 = vadd.f32 %v1615_v48, %v1550_v47 }
 0x1b7   : > { %v1389_v14 = vld [vmem:[#allocation2 + $0x180] sm:$0xff]  ;;  %v971_v57 = vadd.f32 %v939_v28, %v874_v38  ;;  %v1357_v12 = vadd.f32 %v1325_v24, %v1260_v42  ;;  %v1036_v30 = vmul.f32 %v4640_v52, %v1582_v40  ;;  %v3823_v42 = vld [vmem:[%s4122_s17 + $0x50] sm:$0xff] }
 0x1b8   : > { %798 = vst.msk [vmem:[#allocation2 + $0x189] sm:$0xff] %vm724_vm1, %v723_v49  ;;  %v5039_v63 = vadd.f32 %v3822_v6, %v1876_v61  ;;  %v1683_v32 = vadd.f32 %v4796_v11, %v1647_v25  ;;  %v1714_v13 = vmax.f32 %v1682_v50, 0.0  ;;  %v1422_v36 = vmul.f32 %v4699_v19, %v1389_v14  ;;  %v1486_v20 = vld [vmem:[#allocation2 + $0x181] sm:$0xff]  ;;  %v1488_v38 = vld [vmem:[#allocation2 + $0x199] sm:$0xff] }
 0x1b9   : > { %v1132_v34 = vmul.f32 %v4709_v60, %v1389_v14  ;;  %v1519_v56 = vmul.f32 %v4717_v26, %v1486_v20  ;;  %v1229_v10 = vmul.f32 %v4729_v21, %v1486_v20  ;;  %v1068_v61 = vadd.f32 %v1036_v30, %v971_v57  ;;  %v1489_v28 = vld [vmem:[#allocation2 + $0x1a1] sm:$0xff] }
 0x1ba   : > { %v1969_v43 = vpack.c.bf16 %v5039_v63, %v5034_v33  ;;  %v1715_v2 = vmax.f32 %v1683_v32, 0.0  ;;  %v1746_v39 = vmin.f32 %v1714_v13, 6.0  ;;  %v1454_v54 = vadd.f32 %v1422_v36, %v1356_v41 }
 0x1bb   : > { %v1164_v17 = vadd.f32 %v1132_v34, %v1067_v45  ;;  %v1424_v32 = vmul.f32 %v4699_v19, %v1391_v44  ;;  %v1425_v41 = vmul.f32 %v4699_v19, %v1392_v9  ;;  %v1586_v45 = vld [vmem:[#allocation2 + $0x1a2] sm:$0xff] }
 0x1bc   : > { %3651 = vmatmul.msk.bf16.gmra.mxu2 %vm522_vm0, %v1969_v43  ;;  %v1747_v53 = vmin.f32 %v1715_v2, 6.0  ;;  %v1551_v50 = vadd.f32 %v1519_v56, %v1454_v54  ;;  %v1522_v54 = vmul.f32 %v4717_v26, %v1489_v28  ;;  %v1585_v56 = vld [vmem:[#allocation2 + $0x19a] sm:$0xff] }
 0x1bd   : > { %v1878_v1 = vpop.f32.mrf.mxu1  ;;  %v1261_v40 = vadd.f32 %v1229_v10, %v1164_v17 }
 0x1be   : > { %v1765_v62 = vpack.c.bf16 %v1747_v53, %v1746_v39  ;;  %v1879_v14 = vadd.f32 %v4754_v58, %v1878_v1  ;;  %v1521_v53 = vmul.f32 %v4717_v26, %v1488_v38  ;;  %v3824_v1 = vld [vmem:[%s4122_s17 + $0x58] sm:$0xff]  ;;  %v3827_v38 = vld [vmem:[%s4122_s17 + $0x70] sm:$0xff] }
 0x1bf   : > { %v1390_v35 = vld [vmem:[#allocation2 + $0x188] sm:$0xff] }
 0x1c0   : > { %v1487_v47 = vld [vmem:[#allocation2 + $0x189] sm:$0xff]  ;;  %3640 = vmatmul.msk.bf16.gmra.mxu1 %vm724_vm1, %v1765_v62  ;;  %v1423_v29 = vmul.f32 %v4699_v19, %v1390_v35  ;;  %v1133_v25 = vmul.f32 %v4709_v60, %v1390_v35  ;;  %v5069_v20 = vadd.f32 %v3823_v42, %v1879_v14  ;;  %v1619_v35 = vmul.f32 %v4777_v4, %v1586_v45 }
 0x1c1   : > { %v1583_v48 = vld [vmem:[#allocation2 + $0x182] sm:$0xff]  ;;  %v1584_v49 = vld [vmem:[#allocation2 + $0x18a] sm:$0xff]  ;;  %v1520_v18 = vmul.f32 %v4717_v26, %v1487_v47  ;;  %v1230_v6 = vmul.f32 %v4729_v21, %v1487_v47 }
 0x1c2   : > { %v1616_v31 = vmul.f32 %v4777_v4, %v1583_v48  ;;  %v1326_v23 = vmul.f32 %v4675_v27, %v1583_v48  ;;  %v1455_v59 = vadd.f32 %v1423_v29, %v1357_v12  ;;  %v1165_v16 = vadd.f32 %v1133_v25, %v1068_v61 }
 0x1c3   : > { %v1617_v36 = vmul.f32 %v4777_v4, %v1584_v49  ;;  %v1327_v2 = vmul.f32 %v4675_v27, %v1584_v49  ;;  %v1618_v29 = vmul.f32 %v4777_v4, %v1585_v56  ;;  %v3826_v4 = vld [vmem:[%s4122_s17 + $0x68] sm:$0xff] }
 0x1c4   : > { %v1648_v52 = vadd.f32 %v1616_v31, %v1551_v50  ;;  %v1552_v13 = vadd.f32 %v1520_v18, %v1455_v59  ;;  %v1358_v3 = vadd.f32 %v1326_v23, %v1261_v40  ;;  %v1262_v43 = vadd.f32 %v1230_v6, %v1165_v16 }
 0x1c5   : > { %v1880_v51 = vpop.f32.mrf.mxu1 }
 0x1c6   : > { %v1684_v60 = vadd.f32 %v4796_v11, %v1648_v52  ;;  %v1881_v34 = vadd.f32 %v4754_v58, %v1880_v51  ;;  %v1649_v21 = vadd.f32 %v1617_v36, %v1552_v13  ;;  %v1359_v39 = vadd.f32 %v1327_v2, %v1262_v43  ;;  %v3825_v52 = vld [vmem:[%s4122_s17 + $0x60] sm:$0xff]  ;;  %v3828_v51 = vld [vmem:[%s4122_s17 + $0x78] sm:$0xff] }
 0x1c7   : > { %v1456_v62 = vadd.f32 %v1424_v32, %v1358_v3 }
 0x1c8   : > { %v5074_v24 = vadd.f32 %v3824_v1, %v1881_v34  ;;  %v1685_v57 = vadd.f32 %v4796_v11, %v1649_v21  ;;  %v1716_v27 = vmax.f32 %v1684_v60, 0.0  ;;  %v1457_v19 = vadd.f32 %v1425_v41, %v1359_v39  ;;  %v3829_v39 = vld [vmem:[%s4122_s17 + $0x80] sm:$0xff] }
 0x1c9   : > { %v1553_v30 = vadd.f32 %v1521_v53, %v1456_v62 }
 0x1ca   : > { %v1970_v17 = vpack.c.bf16 %v5074_v24, %v5069_v20  ;;  %v1717_v12 = vmax.f32 %v1685_v57, 0.0  ;;  %v1554_v47 = vadd.f32 %v1522_v54, %v1457_v19  ;;  %v1748_v26 = vmin.f32 %v1716_v27, 6.0  ;;  %v3830_v54 = vld [vmem:[%s4122_s17 + $0x88] sm:$0xff]  ;;  %v5162_v57 = vld [vmem:[%s6187_s8] ss:$0 sm:$0xff] }
 0x1cb   : > { %v1650_v44 = vadd.f32 %v1618_v29, %v1553_v30  ;;  %v3831_v29 = vld [vmem:[%s4122_s17 + $0x90] sm:$0xff] }
 0x1cc   : > { %3652 = vmatmul.msk.bf16.gmra.mxu2 %vm522_vm0, %v1970_v17  ;;  %v1749_v48 = vmin.f32 %v1717_v12, 6.0  ;;  %v1651_v10 = vadd.f32 %v1619_v35, %v1554_v47  ;;  %v3725_v17 = vld [vmem:[%s6190_s11 + $0x28] sm:$0xff] }
 0x1cd   : > { %v1883_v50 = vpop.f32.mrf.mxu1  ;;  %v1686_v25 = vadd.f32 %v4796_v11, %v1650_v44  ;;  %3340 = vmatpush.bf16.msra.mxu3 %v3725_v17 }
 0x1ce   : > { %v1766_v31 = vpack.c.bf16 %v1749_v48, %v1748_v26  ;;  %v1687_v49 = vadd.f32 %v4796_v11, %v1651_v10  ;;  %v1884_v61 = vadd.f32 %v4754_v58, %v1883_v50  ;;  %v3724_v48 = vld [vmem:[%s6190_s11 + $0x20] sm:$0xff] }
 0x1cf   : > { %v1718_v14 = vmax.f32 %v1686_v25, 0.0  ;;  %v3723_v25 = vld [vmem:[%s6190_s11 + $0x18] sm:$0xff] }
 0x1d0   : > { %3641 = vmatmul.msk.bf16.gmra.mxu1 %vm724_vm1, %v1766_v31  ;;  %v1719_v18 = vmax.f32 %v1687_v49, 0.0  ;;  %v5088_v40 = vadd.f32 %v3825_v52, %v1884_v61  ;;  %v3832_v31 = vld [vmem:[%s4122_s17 + $0x98] sm:$0xff] }
 0x1d1   : > { %v1750_v11 = vmin.f32 %v1718_v14, 6.0  ;;  %3341 = vmatpush.bf16.msra.mxu3 %v3724_v48  ;;  %v5232_v14 = vld [vmem:[%s6188_s9 + $0x2] ss:$0 sm:$0xff] }
 0x1d2   : > { %v1751_v6 = vmin.f32 %v1719_v18, 6.0  ;;  %v2345_v18 = vld [vmem:[#allocation3 + $0x1] sm:$0xff] }
 0x1d4   : > { %v1767_v13 = vpack.c.bf16 %v1751_v6, %v1750_v11  ;;  %v2281_v6 = vld [vmem:[#allocation3 + $0x8] sm:$0xff] }
 0x1d5   : > { %v1885_v23 = vpop.f32.mrf.mxu1  ;;  %3342 = vmatpush.bf16.msra.mxu3 %v3723_v25  ;;  %v5282_v25 = vld [vmem:[%s6188_s9 + $0x6] ss:$0 sm:$0xff] }
 0x1d6   : > { %v1886_v59 = vadd.f32 %v4754_v58, %v1885_v23  ;;  %v5220_v23 = vld [vmem:[%s6188_s9 + $0x1] ss:$0 sm:$0xff] }
 0x1d8   : > { %v5091_v9 = vadd.f32 %v3826_v4, %v1886_v59  ;;  %v2280_v59 = vld [vmem:[#allocation3] sm:$0xff] }
 0x1da   : > { %v1971_v16 = vpack.c.bf16 %v5091_v9, %v5088_v40 }
 0x1dc   : > { %3653 = vmatmul.msk.bf16.gmra.mxu2 %vm522_vm0, %v1971_v16  ;;  %v3722_v16 = vld [vmem:[%s6190_s11 + $0x10] sm:$0xff] }
 0x1dd   : > { %v1888_v32 = vpop.f32.mrf.mxu1  ;;  %3343 = vmatpush.bf16.msra.mxu3 %v3722_v16 }
 0x1de   : > { %v1889_v36 = vadd.f32 %v4754_v58, %v1888_v32  ;;  %v2346_v32 = vld [vmem:[#allocation3 + $0x9] sm:$0xff] }
 0x1df   : > { %v2379_v22 = vmul.f32 %v5220_v23, %v2346_v32  ;;  %v5290_v32 = vld [vmem:[%s6188_s9 + $0x8] ss:$0 sm:$0xff] }
 0x1e0   : > { %3642 = vmatmul.msk.bf16.gmra.mxu1 %vm724_vm1, %v1767_v13  ;;  %v5106_v28 = vadd.f32 %v3827_v38, %v1889_v36  ;;  %v2378_v13 = vmul.f32 %v5220_v23, %v2345_v18 }
 0x1e5   : > { %v1890_v60 = vpop.f32.mrf.mxu1 }
 0x1e6   : > { %v1891_v3 = vadd.f32 %v4754_v58, %v1890_v60  ;;  %v2442_v60 = vld [vmem:[#allocation3 + $0x2] sm:$0xff] }
 0x1e8   : > { %v5109_v43 = vadd.f32 %v3828_v51, %v1891_v3 }
 0x1ea   : > { %v1972_v2 = vpack.c.bf16 %v5109_v43, %v5106_v28 }
 0x1ec   : > { %3654 = vmatmul.msk.bf16.gmra.mxu2 %vm522_vm0, %v1972_v2  ;;  %v3721_v2 = vld [vmem:[%s6190_s11 + $0x8] sm:$0xff] }
 0x1ed   : > { %v1893_v41 = vpop.f32.mrf.mxu1  ;;  %3344 = vmatpush.bf16.msra.mxu3 %v3721_v2 }
 0x1ee   : > { %v1894_v34 = vadd.f32 %v4754_v58, %v1893_v41 }
 0x1f0   : > { %v5143_v53 = vadd.f32 %v3829_v39, %v1894_v34  ;;  %v2443_v34 = vld [vmem:[#allocation3 + $0xa] sm:$0xff] }
 0x1f5   : > { %v1895_v21 = vpop.f32.mrf.mxu1 }
 0x1f6   : > { %v1896_v42 = vadd.f32 %v4754_v58, %v1895_v21  ;;  %v2475_v21 = vmul.f32 %v5232_v14, %v2442_v60 }
 0x1f8   : > { %v5146_v45 = vadd.f32 %v3830_v54, %v1896_v42  ;;  %v5252_v42 = vld [vmem:[%s6188_s9 + $0x4] ss:$0 sm:$0xff]  ;;  %v5257_v54 = vld [vmem:[%s6185_s6] ss:$0 sm:$0xff] }
 0x1fa   : > { %v1973_v1 = vpack.c.bf16 %v5146_v45, %v5143_v53 }
 0x1fc   : > { %3655 = vmatmul.msk.bf16.gmra.mxu2 %vm522_vm0, %v1973_v1 }
 0x1fd   : > { %v1898_v27 = vpop.f32.mrf.mxu1 }
 0x1fe   : > { %v1899_v12 = vadd.f32 %v4754_v58, %v1898_v27 }
 0x1ff   : > { %v2050_v62 = vpop.f32.mrf.mxu2 }
 0x200   : > { %v2051_v19 = vadd.f32 %v5162_v57, %v2050_v62  ;;  %v5197_v50 = vadd.f32 %v3831_v29, %v1899_v12  ;;  %v3720_v12 = vld [vmem:[%s6190_s11] sm:$0xff] }
 0x201   : > { %3345 = vmatpush.bf16.msra.mxu3 %v3720_v12 }
 0x202   : > { %v2130_v56 = vmax.f32 %v2051_v19, 0.0 }
 0x204   : > { %v2162_v35 = vmin.f32 %v2130_v56, 6.0  ;;  %v2476_v56 = vmul.f32 %v5232_v14, %v2443_v34 }
 0x205   : > { %v1900_v47 = vpop.f32.mrf.mxu1 }
 0x206   : > { %2237 = vst.msk [vmem:[#allocation3 + $0x19] sm:$0xff] %vm2194_vm4, %v2162_v35  ;;  %v1901_v26 = vadd.f32 %v4754_v58, %v1900_v47  ;;  %v5208_v58 = vld [vmem:[%s6188_s9] ss:$0 sm:$0xff] }
 0x207   : > { %v2052_v30 = vpop.f32.mrf.mxu2  ;;  %v2313_v11 = vmul.f32 %v5208_v58, %v2280_v59  ;;  %v2314_v38 = vmul.f32 %v5208_v58, %v2281_v6 }
 0x208   : > { %v5200_v10 = vadd.f32 %v3832_v31, %v1901_v26  ;;  %v2053_v44 = vadd.f32 %v5162_v57, %v2052_v30  ;;  %v3834_v30 = vld [vmem:[%s4122_s17 + $0xa0] sm:$0xff]  ;;  %v3835_v31 = vld [vmem:[%s4122_s17 + $0xa8] sm:$0xff] }
 0x209   : > { %v2410_v41 = vadd.f32 %v2378_v13, %v2313_v11  ;;  %v2411_v19 = vadd.f32 %v2379_v22, %v2314_v38 }
 0x20a   : > { %v2131_v49 = vmax.f32 %v2053_v44, 0.0  ;;  %v1974_v61 = vpack.c.bf16 %v5200_v10, %v5197_v50 }
 0x20b   : > { %v2507_v35 = vadd.f32 %v2475_v21, %v2410_v41  ;;  %v2508_v59 = vadd.f32 %v2476_v56, %v2411_v19  ;;  %v5305_v19 = vld [vmem:[%s6188_s9 + $0x9] ss:$0 sm:$0xff] }
 0x20c   : > { %v2163_v52 = vmin.f32 %v2131_v49, 6.0  ;;  %3656 = vmatmul.msk.bf16.gmra.mxu2 %vm522_vm0, %v1974_v61  ;;  %v5277_v61 = vld [vmem:[%s6188_s9 + $0x5] ss:$0 sm:$0xff] }
 0x20d   : > { %v1903_v4 = vpop.f32.mrf.mxu1  ;;  %v2539_v39 = vld [vmem:[#allocation3 + $0x18] sm:$0xff] }
 0x20e   : > { %2238 = vst.msk [vmem:[#allocation3 + $0x21] sm:$0xff] %vm2194_vm4, %v2163_v52  ;;  %v1904_v1 = vadd.f32 %v5257_v54, %v1903_v4  ;;  %v2572_v26 = vmul.f32 %v5252_v42, %v2539_v39  ;;  %v2636_v52 = vld [vmem:[#allocation3 + $0x19] sm:$0xff]  ;;  %v2315_v12 = vmul.f32 %v5208_v58, %v2539_v39 }
 0x20f   : > { %v2055_v36 = vpop.f32.mrf.mxu2  ;;  %v2669_v60 = vmul.f32 %v5277_v61, %v2636_v52 }
 0x210   : > { %v2056_v3 = vadd.f32 %v5162_v57, %v2055_v36  ;;  %v5268_v29 = vadd.f32 %v3834_v30, %v1904_v1  ;;  %v2604_v11 = vadd.f32 %v2572_v26, %v2507_v35  ;;  %v2380_v35 = vmul.f32 %v5220_v23, %v2636_v52  ;;  %v5314_v30 = vld [vmem:[%s6188_s9 + $0xa] ss:$0 sm:$0xff] }
 0x212   : > { %v2132_v51 = vmax.f32 %v2056_v3, 0.0  ;;  %6225 = vst [vmem:[#allocation16_spill] sm:$0xff] %v5268_v29  ;;  %v2701_v2 = vadd.f32 %v2669_v60, %v2604_v11 }
 0x214   : > { %v2164_v27 = vmin.f32 %v2132_v51, 6.0 }
 0x215   : > { %v1905_v62 = vpop.f32.mrf.mxu1  ;;  %v2540_v47 = vld [vmem:[#allocation3 + $0x20] sm:$0xff] }
 0x216   : > { %2239 = vst.msk [vmem:[#allocation3 + $0x31] sm:$0xff] %vm2194_vm4, %v2164_v27  ;;  %v1906_v17 = vadd.f32 %v5257_v54, %v1905_v62  ;;  %v2573_v18 = vmul.f32 %v5252_v42, %v2540_v47  ;;  %v2733_v4 = vld [vmem:[#allocation3 + $0x1a] sm:$0xff]  ;;  %v2734_v27 = vld [vmem:[#allocation3 + $0x22] sm:$0xff] }
 0x217   : > { %v2057_v48 = vpop.f32.mrf.mxu2  ;;  %v2637_v36 = vld [vmem:[#allocation3 + $0x21] sm:$0xff]  ;;  %v2766_v3 = vmul.f32 %v5282_v25, %v2733_v4 }
 0x218   : > { %v5271_v44 = vadd.f32 %v3835_v31, %v1906_v17  ;;  %v2058_v49 = vadd.f32 %v5162_v57, %v2057_v48  ;;  %v2605_v22 = vadd.f32 %v2573_v18, %v2508_v59  ;;  %v2670_v21 = vmul.f32 %v5277_v61, %v2637_v36 }
 0x219   : > { %v2798_v62 = vadd.f32 %v2766_v3, %v2701_v2  ;;  %v2316_v59 = vmul.f32 %v5208_v58, %v2540_v47  ;;  %v2381_v18 = vmul.f32 %v5220_v23, %v2637_v36  ;;  %v2412_v3 = vadd.f32 %v2380_v35, %v2315_v12  ;;  %v3837_v35 = vld [vmem:[%s4122_s17 + $0xb8] sm:$0xff] }
 0x21a   : > { %6226 = vst [vmem:[#allocation17_spill] sm:$0xff] %v5271_v44  ;;  %v2133_v16 = vmax.f32 %v2058_v49, 0.0  ;;  %v1975_v6 = vpack.c.bf16 %v5271_v44, %v5268_v29  ;;  %v2702_v56 = vadd.f32 %v2670_v21, %v2605_v22  ;;  %v2767_v49 = vmul.f32 %v5282_v25, %v2734_v27  ;;  %v3836_v21 = vld [vmem:[%s4122_s17 + $0xb0] sm:$0xff] }
 0x21c   : > { %v2165_v13 = vmin.f32 %v2133_v16, 6.0  ;;  %3657 = vmatmul.msk.bf16.gmra.mxu2 %vm522_vm0, %v1975_v6  ;;  %v2799_v6 = vadd.f32 %v2767_v49, %v2702_v56  ;;  %v2413_v56 = vadd.f32 %v2381_v18, %v2316_v59 }
 0x21d   : > { %v1908_v38 = vpop.f32.mrf.mxu1  ;;  %v5295_v51 = vld [vmem:[#allocation3 + $0x30] sm:$0xff] }
 0x21e   : > { %2240 = vst.msk [vmem:[#allocation3 + $0x39] sm:$0xff] %vm2194_vm4, %v2165_v13  ;;  %v2864_v41 = vmul.f32 %v5290_v32, %v5295_v51  ;;  %v5307_v17 = vld [vmem:[#allocation3 + $0x31] sm:$0xff]  ;;  %v1909_v31 = vadd.f32 %v5257_v54, %v1908_v38  ;;  %v2477_v38 = vmul.f32 %v5232_v14, %v2733_v4  ;;  %v2574_v12 = vmul.f32 %v5252_v42, %v5295_v51 }
 0x21f   : > { %v2060_v34 = vpop.f32.mrf.mxu2  ;;  %v2961_v39 = vmul.f32 %v5305_v19, %v5307_v17 }
 0x220   : > { %v2061_v1 = vadd.f32 %v5162_v57, %v2060_v34  ;;  %v2896_v48 = vadd.f32 %v2864_v41, %v2798_v62  ;;  %v5335_v34 = vld [vmem:[%s6189_s10] ss:$0 sm:$0xff] }
 0x222   : > { %v2134_v26 = vmax.f32 %v2061_v1, 0.0  ;;  %v2993_v22 = vadd.f32 %v2961_v39, %v2896_v48  ;;  %v5338_v1 = vadd.f32 %v3836_v21, %v1909_v31  ;;  %v2478_v31 = vmul.f32 %v5232_v14, %v2734_v27 }
 0x223   : > { %v2671_v27 = vmul.f32 %v5277_v61, %v5307_v17 }
 0x224   : > { %v2166_v16 = vmin.f32 %v2134_v26, 6.0 }
 0x225   : > { %v1910_v52 = vpop.f32.mrf.mxu1  ;;  %v2832_v11 = vld [vmem:[#allocation3 + $0x38] sm:$0xff] }
 0x226   : > { %v2929_v13 = vld [vmem:[#allocation3 + $0x39] sm:$0xff]  ;;  %2241 = vst.msk [vmem:[#allocation3 + $0x49] sm:$0xff] %vm2194_vm4, %v2166_v16  ;;  %v1911_v47 = vadd.f32 %v5257_v54, %v1910_v52  ;;  %v2865_v36 = vmul.f32 %v5290_v32, %v2832_v11  ;;  %v2509_v52 = vadd.f32 %v2477_v38, %v2412_v3  ;;  %v2575_v21 = vmul.f32 %v5252_v42, %v2832_v11 }
 0x227   : > { %v5322_v60 = vld [vmem:[#allocation3 + $0x32] sm:$0xff]  ;;  %v5328_v2 = vld [vmem:[#allocation3 + $0x3a] sm:$0xff]  ;;  %v2062_v4 = vpop.f32.mrf.mxu2  ;;  %v2962_v62 = vmul.f32 %v5305_v19, %v2929_v13 }
 0x228   : > { %v3058_v41 = vmul.f32 %v5314_v30, %v5322_v60  ;;  %v5344_v26 = vadd.f32 %v3837_v35, %v1911_v47  ;;  %v2063_v48 = vadd.f32 %v5162_v57, %v2062_v4  ;;  %v2897_v49 = vadd.f32 %v2865_v36, %v2799_v6 }
 0x229   : > { %v3059_v39 = vmul.f32 %v5314_v30, %v5328_v2  ;;  %v2510_v35 = vadd.f32 %v2478_v31, %v2413_v56  ;;  %v2606_v29 = vadd.f32 %v2574_v12, %v2509_v52  ;;  %v2768_v3 = vmul.f32 %v5282_v25, %v5322_v60 }
 0x22a   : > { %v3090_v16 = vadd.f32 %v3058_v41, %v2993_v22  ;;  %v2135_v44 = vmax.f32 %v2063_v48, 0.0  ;;  %v1976_v59 = vpack.c.bf16 %v5344_v26, %v5338_v1  ;;  %v2994_v18 = vadd.f32 %v2962_v62, %v2897_v49 }
 0x22b   : > { %v2607_v22 = vadd.f32 %v2575_v21, %v2510_v35  ;;  %v2703_v12 = vadd.f32 %v2671_v27, %v2606_v29  ;;  %v2318_v21 = vmul.f32 %v5208_v58, %v2832_v11  ;;  %v2769_v27 = vmul.f32 %v5282_v25, %v5328_v2 }
 0x22c   : > { %v3126_v47 = vadd.f32 %v5335_v34, %v3090_v16  ;;  %v2167_v4 = vmin.f32 %v2135_v44, 6.0  ;;  %3658 = vmatmul.msk.bf16.gmra.mxu2 %vm522_vm0, %v1976_v59  ;;  %v3091_v6 = vadd.f32 %v3059_v39, %v2994_v18  ;;  %v2672_v44 = vmul.f32 %v5277_v61, %v2929_v13 }
 0x22d   : > { %v1913_v36 = vpop.f32.mrf.mxu1  ;;  %v5359_v38 = vld [vmem:[#allocation3 + $0x48] sm:$0xff]  ;;  %v2317_v39 = vmul.f32 %v5208_v58, %v5295_v51  ;;  %v2800_v52 = vadd.f32 %v2768_v3, %v2703_v12  ;;  %v2382_v59 = vmul.f32 %v5220_v23, %v5307_v17 }
 0x22e   : > { %2242 = vst.msk [vmem:[#allocation3 + $0x51] sm:$0xff] %vm2194_vm4, %v2167_v4  ;;  %v3127_v41 = vadd.f32 %v5335_v34, %v3091_v6  ;;  %v3158_v62 = vmax.f32 %v3126_v47, 0.0  ;;  %v2866_v48 = vmul.f32 %v5290_v32, %v5359_v38  ;;  %v2704_v31 = vadd.f32 %v2672_v44, %v2607_v22  ;;  %v5372_v29 = vld [vmem:[#allocation3 + $0x49] sm:$0xff] }
 0x22f   : > { %v2065_v56 = vpop.f32.mrf.mxu2  ;;  %v2383_v4 = vmul.f32 %v5220_v23, %v2929_v13  ;;  %v1914_v6 = vadd.f32 %v5257_v54, %v1913_v36  ;;  %v2414_v13 = vadd.f32 %v2382_v59, %v2317_v39  ;;  %v2479_v36 = vmul.f32 %v5232_v14, %v5322_v60  ;;  %v3839_v59 = vld [vmem:[%s4122_s17 + $0xc8] sm:$0xff] }
 0x230   : > { %v2066_v49 = vadd.f32 %v5162_v57, %v2065_v56  ;;  %v3159_v16 = vmax.f32 %v3127_v41, 0.0  ;;  %v3190_v47 = vmin.f32 %v3158_v62, 6.0  ;;  %v2898_v51 = vadd.f32 %v2866_v48, %v2800_v52 }
 0x231   : > { %v2801_v41 = vadd.f32 %v2769_v27, %v2704_v31  ;;  %v2963_v62 = vmul.f32 %v5305_v19, %v5372_v29  ;;  %v2576_v60 = vmul.f32 %v5252_v42, %v5359_v38 }
 0x232   : > { %v2136_v18 = vmax.f32 %v2066_v49, 0.0  ;;  %v3191_v35 = vmin.f32 %v3159_v16, 6.0  ;;  %v2415_v49 = vadd.f32 %v2383_v4, %v2318_v21  ;;  %v3838_v16 = vld [vmem:[%s4122_s17 + $0xc0] sm:$0xff] }
 0x233   : > { %v5389_v31 = vadd.f32 %v3838_v16, %v1914_v6  ;;  %v2480_v6 = vmul.f32 %v5232_v14, %v5328_v2 }
 0x234   : > { %v2168_v22 = vmin.f32 %v2136_v18, 6.0  ;;  %v3222_v3 = vpack.c.bf16 %v3191_v35, %v3190_v47  ;;  %v2995_v18 = vadd.f32 %v2963_v62, %v2898_v51  ;;  %v2511_v51 = vadd.f32 %v2479_v36, %v2414_v13 }
 0x235   : > { %v1915_v11 = vpop.f32.mrf.mxu1  ;;  %v2834_v56 = vld [vmem:[#allocation3 + $0x50] sm:$0xff]  ;;  %6227 = vst [vmem:[#allocation18_spill] sm:$0xff] %v5389_v31  ;;  %v2673_v36 = vmul.f32 %v5277_v61, %v5372_v29 }
 0x236   : > { %v2931_v17 = vld [vmem:[#allocation3 + $0x51] sm:$0xff]  ;;  %2243 = vst.msk [vmem:[#allocation3 + $0x61] sm:$0xff] %vm2194_vm4, %v2168_v22  ;;  %v1916_v12 = vadd.f32 %v5257_v54, %v1915_v11  ;;  %3693 = vmatmul.msk.bf16.vlgmr.msra.gmra.mxu3 %vm2194_vm4, %v3222_v3  ;;  %v2867_v48 = vmul.f32 %v5290_v32, %v2834_v56  ;;  %v2577_v3 = vmul.f32 %v5252_v42, %v2834_v56 }
 0x237   : > { %v5380_v44 = vld [vmem:[#allocation3 + $0x4a] sm:$0xff]  ;;  %v2067_v52 = vpop.f32.mrf.mxu2  ;;  %v5391_v47 = vld [vmem:[#allocation3 + $0x52] sm:$0xff]  ;;  %v2964_v21 = vmul.f32 %v5305_v19, %v2931_v17 }
 0x238   : > { %v3060_v39 = vmul.f32 %v5314_v30, %v5380_v44  ;;  %v5398_v35 = vadd.f32 %v3839_v59, %v1916_v12  ;;  %v2068_v27 = vadd.f32 %v5162_v57, %v2067_v52  ;;  %v2899_v22 = vadd.f32 %v2867_v48, %v2801_v41 }
 0x239   : > { %v3061_v12 = vmul.f32 %v5314_v30, %v5391_v47  ;;  %v2512_v41 = vadd.f32 %v2480_v6, %v2415_v49  ;;  %v2608_v48 = vadd.f32 %v2576_v60, %v2511_v51 }
 0x23a   : > { %6228 = vst [vmem:[#allocation19_spill] sm:$0xff] %v5398_v35  ;;  %v3092_v4 = vadd.f32 %v3060_v39, %v2995_v18  ;;  %v1977_v11 = vpack.c.bf16 %v5398_v35, %v5389_v31  ;;  %v2137_v62 = vmax.f32 %v2068_v27, 0.0  ;;  %v2996_v16 = vadd.f32 %v2964_v21, %v2899_v22 }
 0x23b   : > { %v2609_v13 = vadd.f32 %v2577_v3, %v2512_v41  ;;  %v2770_v39 = vmul.f32 %v5282_v25, %v5380_v44  ;;  %v2674_v21 = vmul.f32 %v5277_v61, %v2931_v17 }
 0x23c   : > { %v3128_v52 = vadd.f32 %v5335_v34, %v3092_v4  ;;  %v2169_v59 = vmin.f32 %v2137_v62, 6.0  ;;  %3659 = vmatmul.msk.bf16.gmra.mxu2 %vm522_vm0, %v1977_v11  ;;  %v3093_v18 = vadd.f32 %v3061_v12, %v2996_v16  ;;  %v2705_v4 = vadd.f32 %v2673_v36, %v2608_v48 }
 0x23d   : > { %v1918_v2 = vpop.f32.mrf.mxu1  ;;  %v5415_v27 = vld [vmem:[#allocation3 + $0x60] sm:$0xff]  ;;  %v2319_v11 = vmul.f32 %v5208_v58, %v5359_v38  ;;  %v2706_v62 = vadd.f32 %v2674_v21, %v2609_v13  ;;  %v2320_v12 = vmul.f32 %v5208_v58, %v2834_v56  ;;  %v2385_v36 = vmul.f32 %v5220_v23, %v2931_v17 }
 0x23e   : > { %2244 = vst.msk [vmem:[#allocation3 + $0x69] sm:$0xff] %vm2194_vm4, %v2169_v59  ;;  %v3129_v22 = vadd.f32 %v5335_v34, %v3093_v18  ;;  %v3160_v49 = vmax.f32 %v3128_v52, 0.0  ;;  %v2868_v6 = vmul.f32 %v5290_v32, %v5415_v27  ;;  %v2802_v16 = vadd.f32 %v2770_v39, %v2705_v4  ;;  %v5428_v48 = vld [vmem:[#allocation3 + $0x61] sm:$0xff] }
 0x23f   : > { %v2070_v60 = vpop.f32.mrf.mxu2  ;;  %v2384_v52 = vmul.f32 %v5220_v23, %v5372_v29 }
 0x240   : > { %v2071_v51 = vadd.f32 %v5162_v57, %v2070_v60  ;;  %v3161_v3 = vmax.f32 %v3129_v22, 0.0  ;;  %v3192_v59 = vmin.f32 %v3160_v49, 6.0  ;;  %v1919_v60 = vadd.f32 %v5257_v54, %v1918_v2 }
 0x241   : > { %v2771_v22 = vmul.f32 %v5282_v25, %v5391_v47  ;;  %v2900_v38 = vadd.f32 %v2868_v6, %v2802_v16  ;;  %v2965_v49 = vmul.f32 %v5305_v19, %v5428_v48  ;;  %v2416_v17 = vadd.f32 %v2384_v52, %v2319_v11  ;;  %v3840_v16 = vld [vmem:[%s4122_s17 + $0xd0] sm:$0xff]  ;;  %v3841_v52 = vld [vmem:[%s4122_s17 + $0xd8] sm:$0xff] }
 0x242   : > { %v2138_v41 = vmax.f32 %v2071_v51, 0.0  ;;  %v3193_v18 = vmin.f32 %v3161_v3, 6.0  ;;  %v2481_v2 = vmul.f32 %v5232_v14, %v5380_v44  ;;  %v2578_v44 = vmul.f32 %v5252_v42, %v5415_v27 }
 0x243   : > { %v2803_v21 = vadd.f32 %v2771_v22, %v2706_v62  ;;  %v2417_v62 = vadd.f32 %v2385_v36, %v2320_v12 }
 0x244   : > { %v2170_v13 = vmin.f32 %v2138_v41, 6.0  ;;  %v3223_v39 = vpack.c.bf16 %v3193_v18, %v3192_v59  ;;  %v5445_v41 = vadd.f32 %v3840_v16, %v1919_v60  ;;  %v2997_v18 = vadd.f32 %v2965_v49, %v2900_v38 }
 0x245   : > { %v1920_v56 = vpop.f32.mrf.mxu1  ;;  %v2836_v4 = vld [vmem:[#allocation3 + $0x68] sm:$0xff]  ;;  %v2482_v60 = vmul.f32 %v5232_v14, %v5391_v47  ;;  %v2513_v38 = vadd.f32 %v2481_v2, %v2416_v17  ;;  %v2675_v2 = vmul.f32 %v5277_v61, %v5428_v48 }
 0x246   : > { %v2933_v29 = vld [vmem:[#allocation3 + $0x69] sm:$0xff]  ;;  %2245 = vst.msk [vmem:[#allocation3 + $0x79] sm:$0xff] %vm2194_vm4, %v2170_v13  ;;  %v1921_v6 = vadd.f32 %v5257_v54, %v1920_v56  ;;  %3694 = vmatmul.msk.bf16.gmra.mxu3 %vm2194_vm4, %v3223_v39  ;;  %v2869_v3 = vmul.f32 %v5290_v32, %v2836_v4  ;;  %v2579_v49 = vmul.f32 %v5252_v42, %v2836_v4 }
 0x247   : > { %v5436_v51 = vld [vmem:[#allocation3 + $0x62] sm:$0xff]  ;;  %6229 = vst [vmem:[#allocation20_spill] sm:$0xff] %v5445_v41  ;;  %v2072_v59 = vpop.f32.mrf.mxu2  ;;  %v5447_v22 = vld [vmem:[#allocation3 + $0x6a] sm:$0xff]  ;;  %v2966_v12 = vmul.f32 %v5305_v19, %v2933_v29 }
 0x248   : > { %v3062_v11 = vmul.f32 %v5314_v30, %v5436_v51  ;;  %v5454_v13 = vadd.f32 %v3841_v52, %v1921_v6  ;;  %v2073_v39 = vadd.f32 %v5162_v57, %v2072_v59  ;;  %v2901_v56 = vadd.f32 %v2869_v3, %v2803_v21 }
 0x249   : > { %v3063_v6 = vmul.f32 %v5314_v30, %v5447_v22  ;;  %v2514_v21 = vadd.f32 %v2482_v60, %v2417_v62  ;;  %v2610_v3 = vadd.f32 %v2578_v44, %v2513_v38  ;;  %v2321_v38 = vmul.f32 %v5208_v58, %v5415_v27 }
 0x24a   : > { %6230 = vst [vmem:[#allocation21_spill] sm:$0xff] %v5454_v13  ;;  %v3094_v36 = vadd.f32 %v3062_v11, %v2997_v18  ;;  %v1978_v16 = vpack.c.bf16 %v5454_v13, %v5445_v41  ;;  %v2139_v35 = vmax.f32 %v2073_v39, 0.0  ;;  %v2998_v31 = vadd.f32 %v2966_v12, %v2901_v56 }
 0x24b   : > { %v2611_v17 = vadd.f32 %v2579_v49, %v2514_v21  ;;  %v2772_v11 = vmul.f32 %v5282_v25, %v5436_v51  ;;  %v2707_v12 = vadd.f32 %v2675_v2, %v2610_v3  ;;  %v2387_v2 = vmul.f32 %v5220_v23, %v2933_v29 }
 0x24c   : > { %v3130_v59 = vadd.f32 %v5335_v34, %v3094_v36  ;;  %v2171_v52 = vmin.f32 %v2139_v35, 6.0  ;;  %3660 = vmatmul.msk.bf16.gmra.mxu2 %vm522_vm0, %v1978_v16  ;;  %v3095_v18 = vadd.f32 %v3063_v6, %v2998_v31  ;;  %v2676_v35 = vmul.f32 %v5277_v61, %v2933_v29 }
 0x24d   : > { %v1923_v47 = vpop.f32.mrf.mxu1  ;;  %v5471_v39 = vld [vmem:[#allocation3 + $0x78] sm:$0xff]  ;;  %v2804_v16 = vadd.f32 %v2772_v11, %v2707_v12  ;;  %v2322_v6 = vmul.f32 %v5208_v58, %v2836_v4  ;;  %v2483_v29 = vmul.f32 %v5232_v14, %v5436_v51 }
 0x24e   : > { %2246 = vst.msk [vmem:[#allocation3 + $0x81] sm:$0xff] %vm2194_vm4, %v2171_v52  ;;  %v3131_v56 = vadd.f32 %v5335_v34, %v3095_v18  ;;  %v3162_v62 = vmax.f32 %v3130_v59, 0.0  ;;  %v2870_v31 = vmul.f32 %v5290_v32, %v5471_v39  ;;  %v2708_v49 = vadd.f32 %v2676_v35, %v2611_v17  ;;  %v5484_v3 = vld [vmem:[#allocation3 + $0x79] sm:$0xff] }
 0x24f   : > { %v2075_v44 = vpop.f32.mrf.mxu2  ;;  %v2386_v59 = vmul.f32 %v5220_v23, %v5428_v48  ;;  %v2580_v51 = vmul.f32 %v5252_v42, %v5471_v39 }
 0x250   : > { %v2076_v36 = vadd.f32 %v5162_v57, %v2075_v44  ;;  %v3163_v60 = vmax.f32 %v3131_v56, 0.0  ;;  %v3194_v52 = vmin.f32 %v3162_v62, 6.0  ;;  %v1924_v44 = vadd.f32 %v5257_v54, %v1923_v47 }
 0x251   : > { %v2773_v56 = vmul.f32 %v5282_v25, %v5447_v22  ;;  %v2902_v27 = vadd.f32 %v2870_v31, %v2804_v16  ;;  %v2967_v62 = vmul.f32 %v5305_v19, %v5484_v3  ;;  %v3842_v16 = vld [vmem:[%s4122_s17 + $0xe0] sm:$0xff] }
 0x252   : > { %v2140_v21 = vmax.f32 %v2076_v36, 0.0  ;;  %v3195_v18 = vmin.f32 %v3163_v60, 6.0  ;;  %v2418_v60 = vadd.f32 %v2386_v59, %v2321_v38  ;;  %v3843_v59 = vld [vmem:[%s4122_s17 + $0xe8] sm:$0xff] }
 0x253   : > { %v2805_v35 = vadd.f32 %v2773_v56, %v2708_v49  ;;  %v2419_v49 = vadd.f32 %v2387_v2, %v2322_v6 }
 0x254   : > { %v2172_v17 = vmin.f32 %v2140_v21, 6.0  ;;  %v3224_v11 = vpack.c.bf16 %v3195_v18, %v3194_v52  ;;  %v5499_v21 = vadd.f32 %v3842_v16, %v1924_v44  ;;  %v2999_v18 = vadd.f32 %v2967_v62, %v2902_v27 }
 0x255   : > { %v1925_v4 = vpop.f32.mrf.mxu1  ;;  %v2838_v12 = vld [vmem:[#allocation3 + $0x80] sm:$0xff]  ;;  %v2484_v44 = vmul.f32 %v5232_v14, %v5447_v22  ;;  %v2515_v27 = vadd.f32 %v2483_v29, %v2418_v60  ;;  %v2677_v29 = vmul.f32 %v5277_v61, %v5484_v3 }
 0x256   : > { %v2935_v48 = vld [vmem:[#allocation3 + $0x81] sm:$0xff]  ;;  %2247 = vst.msk [vmem:[#allocation3 + $0x91] sm:$0xff] %vm2194_vm4, %v2172_v17  ;;  %v1926_v47 = vadd.f32 %v5257_v54, %v1925_v4  ;;  %3695 = vmatmul.msk.bf16.gmra.mxu3 %vm2194_vm4, %v3224_v11  ;;  %v2871_v31 = vmul.f32 %v5290_v32, %v2838_v12  ;;  %v2581_v62 = vmul.f32 %v5252_v42, %v2838_v12 }
 0x257   : > { %v3031_v36 = vld [vmem:[#allocation3 + $0x7a] sm:$0xff]  ;;  %6231 = vst [vmem:[#allocation22_spill] sm:$0xff] %v5499_v21  ;;  %v2077_v52 = vpop.f32.mrf.mxu2  ;;  %v5501_v56 = vld [vmem:[#allocation3 + $0x82] sm:$0xff]  ;;  %v2968_v6 = vmul.f32 %v5305_v19, %v2935_v48 }
 0x258   : > { %v3064_v38 = vmul.f32 %v5314_v30, %v3031_v36  ;;  %v5507_v17 = vadd.f32 %v3843_v59, %v1926_v47  ;;  %v2078_v11 = vadd.f32 %v5162_v57, %v2077_v52  ;;  %v2903_v4 = vadd.f32 %v2871_v31, %v2805_v35 }
 0x259   : > { %v3065_v47 = vmul.f32 %v5314_v30, %v5501_v56  ;;  %v2516_v35 = vadd.f32 %v2484_v44, %v2419_v49  ;;  %v2612_v31 = vadd.f32 %v2580_v51, %v2515_v27  ;;  %v2323_v27 = vmul.f32 %v5208_v58, %v5471_v39 }
 0x25a   : > { %6232 = vst [vmem:[#allocation23_spill] sm:$0xff] %v5507_v17  ;;  %v3096_v2 = vadd.f32 %v3064_v38, %v2999_v18  ;;  %v1979_v16 = vpack.c.bf16 %v5507_v17, %v5499_v21  ;;  %v2141_v13 = vmax.f32 %v2078_v11, 0.0  ;;  %v3000_v41 = vadd.f32 %v2968_v6, %v2903_v4  ;;  %v3845_v17 = vld [vmem:[%s4122_s17 + $0xf8] sm:$0xff] }
 0x25b   : > { %v2613_v60 = vadd.f32 %v2581_v62, %v2516_v35  ;;  %v2774_v38 = vmul.f32 %v5282_v25, %v3031_v36  ;;  %v2709_v51 = vadd.f32 %v2677_v29, %v2612_v31  ;;  %v2389_v29 = vmul.f32 %v5220_v23, %v2935_v48 }
 0x25c   : > { %v3132_v52 = vadd.f32 %v5335_v34, %v3096_v2  ;;  %v2173_v59 = vmin.f32 %v2141_v13, 6.0  ;;  %3661 = vmatmul.msk.bf16.gmra.mxu2 %vm522_vm0, %v1979_v16  ;;  %v3097_v18 = vadd.f32 %v3065_v47, %v3000_v41  ;;  %v2678_v13 = vmul.f32 %v5277_v61, %v2935_v48 }
 0x25d   : > { %v1928_v22 = vpop.f32.mrf.mxu1  ;;  %v5523_v11 = vld [vmem:[#allocation3 + $0x90] sm:$0xff]  ;;  %v2806_v16 = vadd.f32 %v2774_v38, %v2709_v51  ;;  %v2324_v47 = vmul.f32 %v5208_v58, %v2838_v12 }
 0x25e   : > { %2248 = vst.msk [vmem:[#allocation3 + $0x99] sm:$0xff] %vm2194_vm4, %v2173_v59  ;;  %v3133_v4 = vadd.f32 %v5335_v34, %v3097_v18  ;;  %v3164_v6 = vmax.f32 %v3132_v52, 0.0  ;;  %v2872_v41 = vmul.f32 %v5290_v32, %v5523_v11  ;;  %v2710_v62 = vadd.f32 %v2678_v13, %v2613_v60  ;;  %v5536_v31 = vld [vmem:[#allocation3 + $0x91] sm:$0xff] }
 0x25f   : > { %v2080_v49 = vpop.f32.mrf.mxu2  ;;  %v2388_v52 = vmul.f32 %v5220_v23, %v5484_v3  ;;  %v2485_v60 = vmul.f32 %v5232_v14, %v3031_v36 }
 0x260   : > { %v2081_v2 = vadd.f32 %v5162_v57, %v2080_v49  ;;  %v3165_v44 = vmax.f32 %v3133_v4, 0.0  ;;  %v3196_v59 = vmin.f32 %v3164_v6, 6.0  ;;  %v1929_v49 = vadd.f32 %v5257_v54, %v1928_v22 }
 0x261   : > { %v2775_v4 = vmul.f32 %v5282_v25, %v5501_v56  ;;  %v2904_v39 = vadd.f32 %v2872_v41, %v2806_v16  ;;  %v2582_v22 = vmul.f32 %v5252_v42, %v5523_v11  ;;  %v3844_v16 = vld [vmem:[%s4122_s17 + $0xf0] sm:$0xff] }
 0x262   : > { %v2142_v35 = vmax.f32 %v2081_v2, 0.0  ;;  %v3197_v18 = vmin.f32 %v3165_v44, 6.0  ;;  %v2969_v2 = vmul.f32 %v5305_v19, %v5536_v31  ;;  %v2420_v44 = vadd.f32 %v2388_v52, %v2323_v27 }
 0x263   : > { %v2807_v3 = vadd.f32 %v2775_v4, %v2710_v62  ;;  %v2421_v62 = vadd.f32 %v2389_v29, %v2324_v47  ;;  %v2486_v47 = vmul.f32 %v5232_v14, %v5501_v56  ;;  %v2679_v56 = vmul.f32 %v5277_v61, %v5536_v31 }
 0x264   : > { %v2174_v12 = vmin.f32 %v2142_v35, 6.0  ;;  %v3225_v38 = vpack.c.bf16 %v3197_v18, %v3196_v59  ;;  %v5552_v35 = vadd.f32 %v3844_v16, %v1929_v49  ;;  %v3001_v18 = vadd.f32 %v2969_v2, %v2904_v39 }
 0x265   : > { %v1930_v13 = vpop.f32.mrf.mxu1  ;;  %v2840_v51 = vld [vmem:[#allocation3 + $0x98] sm:$0xff]  ;;  %v2517_v52 = vadd.f32 %v2485_v60, %v2420_v44 }
 0x266   : > { %v2937_v6 = vld [vmem:[#allocation3 + $0x99] sm:$0xff]  ;;  %2249 = vst.msk [vmem:[#allocation3 + $0xa9] sm:$0xff] %vm2194_vm4, %v2174_v12  ;;  %v1931_v36 = vadd.f32 %v5257_v54, %v1930_v13  ;;  %3696 = vmatmul.msk.bf16.gmra.mxu3 %vm2194_vm4, %v3225_v38  ;;  %v2873_v41 = vmul.f32 %v5290_v32, %v2840_v51  ;;  %v2583_v29 = vmul.f32 %v5252_v42, %v2840_v51 }
 0x267   : > { %v3033_v48 = vld [vmem:[#allocation3 + $0x92] sm:$0xff]  ;;  %6233 = vst [vmem:[#allocation24_spill] sm:$0xff] %v5552_v35  ;;  %v2082_v59 = vpop.f32.mrf.mxu2  ;;  %v5554_v4 = vld [vmem:[#allocation3 + $0x9a] sm:$0xff]  ;;  %v2970_v38 = vmul.f32 %v5305_v19, %v2937_v6  ;;  %v2614_v49 = vadd.f32 %v2582_v22, %v2517_v52 }
 0x268   : > { %v3066_v27 = vmul.f32 %v5314_v30, %v3033_v48  ;;  %v5558_v21 = vadd.f32 %v3845_v17, %v1931_v36  ;;  %v2083_v54 = vadd.f32 %v5162_v57, %v2082_v59  ;;  %v2905_v12 = vadd.f32 %v2873_v41, %v2807_v3 }
 0x269   : > { %v3067_v17 = vmul.f32 %v5314_v30, %v5554_v4  ;;  %v2518_v3 = vadd.f32 %v2486_v47, %v2421_v62  ;;  %v2776_v22 = vmul.f32 %v5282_v25, %v3033_v48  ;;  %v2711_v52 = vadd.f32 %v2679_v56, %v2614_v49 }
 0x26a   : > { %6234 = vst [vmem:[#allocation25_spill] sm:$0xff] %v5558_v21  ;;  %v3098_v13 = vadd.f32 %v3066_v27, %v3001_v18  ;;  %v1980_v39 = vpack.c.bf16 %v5558_v21, %v5552_v35  ;;  %v2143_v2 = vmax.f32 %v2083_v54, 0.0  ;;  %v3002_v60 = vadd.f32 %v2970_v38, %v2905_v12 }
 0x26b   : > { %v2615_v16 = vadd.f32 %v2583_v29, %v2518_v3  ;;  %v2680_v12 = vmul.f32 %v5277_v61, %v2937_v6  ;;  %v2808_v47 = vadd.f32 %v2776_v22, %v2711_v52  ;;  %v2391_v56 = vmul.f32 %v5220_v23, %v2937_v6 }
 0x26c   : > { %v3134_v44 = vadd.f32 %v5335_v34, %v3098_v13  ;;  %v2175_v36 = vmin.f32 %v2143_v2, 6.0  ;;  %3662 = vmatmul.msk.bf16.gmra.mxu2 %vm522_vm0, %v1980_v39  ;;  %v3099_v41 = vadd.f32 %v3067_v17, %v3002_v60  ;;  %v2325_v2 = vmul.f32 %v5208_v58, %v5523_v11 }
 0x26d   : > { %v5574_v59 = vld [vmem:[#allocation3 + $0xa8] sm:$0xff]  ;;  %v2712_v39 = vadd.f32 %v2680_v12, %v2615_v16  ;;  %v2390_v60 = vmul.f32 %v5220_v23, %v5536_v31  ;;  %v2487_v22 = vmul.f32 %v5232_v14, %v3033_v48 }
 0x26e   : > { %2250 = vst.msk [vmem:[#allocation3 + $0xb1] sm:$0xff] %vm2194_vm4, %v2175_v36  ;;  %v3135_v18 = vadd.f32 %v5335_v34, %v3099_v41  ;;  %v3166_v27 = vmax.f32 %v3134_v44, 0.0  ;;  %v2874_v62 = vmul.f32 %v5290_v32, %v5574_v59  ;;  %v2938_v29 = vld [vmem:[#allocation3 + $0xa9] sm:$0xff]  ;;  %v2777_v36 = vmul.f32 %v5282_v25, %v5554_v4 }
 0x26f   : > { %v2085_v54 = vpop.f32.mrf.mxu2  ;;  %v2326_v41 = vmul.f32 %v5208_v58, %v2840_v51  ;;  %v2971_v11 = vmul.f32 %v5305_v19, %v2938_v29 }
 0x270   : > { %v2086_v38 = vadd.f32 %v5162_v57, %v2085_v54  ;;  %v3167_v13 = vmax.f32 %v3135_v18, 0.0  ;;  %v3198_v49 = vmin.f32 %v3166_v27, 6.0  ;;  %v2906_v3 = vadd.f32 %v2874_v62, %v2808_v47 }
 0x271   : > { %v2809_v52 = vadd.f32 %v2777_v36, %v2712_v39  ;;  %v2422_v27 = vadd.f32 %v2390_v60, %v2325_v2  ;;  %v2584_v62 = vmul.f32 %v5252_v42, %v5574_v59  ;;  %v2423_v47 = vadd.f32 %v2391_v56, %v2326_v41 }
 0x272   : > { %v2144_v17 = vmax.f32 %v2086_v38, 0.0  ;;  %v3199_v44 = vmin.f32 %v3167_v13, 6.0  ;;  %v3003_v6 = vadd.f32 %v2971_v11, %v2906_v3 }
 0x273   : > { %v2519_v39 = vadd.f32 %v2487_v22, %v2422_v27 }
 0x274   : > { %v2176_v16 = vmin.f32 %v2144_v17, 6.0  ;;  %v3226_v18 = vpack.c.bf16 %v3199_v44, %v3198_v49  ;;  %v2488_v44 = vmul.f32 %v5232_v14, %v5554_v4 }
 0x275   : > { %v2842_v54 = vld [vmem:[#allocation3 + $0xb0] sm:$0xff] }
 0x276   : > { %v2939_v31 = vld [vmem:[#allocation3 + $0xb1] sm:$0xff]  ;;  %2251 = vst.msk [vmem:[#allocation3 + $0xc1] sm:$0xff] %vm2194_vm4, %v2176_v16  ;;  %3697 = vmatmul.msk.bf16.gmra.mxu3 %vm2194_vm4, %v3226_v18  ;;  %v2875_v51 = vmul.f32 %v5290_v32, %v2842_v54  ;;  %v2585_v36 = vmul.f32 %v5252_v42, %v2842_v54  ;;  %v2616_v16 = vadd.f32 %v2584_v62, %v2519_v39 }
 0x277   : > { %v3035_v12 = vld [vmem:[#allocation3 + $0xaa] sm:$0xff]  ;;  %v2087_v38 = vpop.f32.mrf.mxu2  ;;  %v5598_v13 = vld [vmem:[#allocation3 + $0xb2] sm:$0xff]  ;;  %v2972_v60 = vmul.f32 %v5305_v19, %v2939_v31  ;;  %v2520_v56 = vadd.f32 %v2488_v44, %v2423_v47  ;;  %v2682_v47 = vmul.f32 %v5277_v61, %v2939_v31 }
 0x278   : > { %v3068_v48 = vmul.f32 %v5314_v30, %v3035_v12  ;;  %v2088_v17 = vadd.f32 %v5162_v57, %v2087_v38  ;;  %v2907_v2 = vadd.f32 %v2875_v51, %v2809_v52  ;;  %v3069_v11 = vmul.f32 %v5314_v30, %v5598_v13 }
 0x279   : > { %v2681_v52 = vmul.f32 %v5277_v61, %v2938_v29  ;;  %v2778_v51 = vmul.f32 %v5282_v25, %v3035_v12 }
 0x27a   : > { %v3100_v49 = vadd.f32 %v3068_v48, %v3003_v6  ;;  %v2145_v3 = vmax.f32 %v2088_v17, 0.0  ;;  %v3004_v18 = vadd.f32 %v2972_v60, %v2907_v2  ;;  %v2617_v6 = vadd.f32 %v2585_v36, %v2520_v56 }
 0x27b   : > { %v2713_v38 = vadd.f32 %v2681_v52, %v2616_v16  ;;  %v2489_v52 = vmul.f32 %v5232_v14, %v3035_v12 }
 0x27c   : > { %v3136_v41 = vadd.f32 %v5335_v34, %v3100_v49  ;;  %v2177_v22 = vmin.f32 %v2145_v3, 6.0  ;;  %v3101_v27 = vadd.f32 %v3069_v11, %v3004_v18  ;;  %v2714_v44 = vadd.f32 %v2682_v47, %v2617_v6 }
 0x27d   : > { %v5610_v48 = vld [vmem:[#allocation3 + $0xc0] sm:$0xff]  ;;  %v2810_v49 = vadd.f32 %v2778_v51, %v2713_v38  ;;  %v2327_v3 = vmul.f32 %v5208_v58, %v5574_v59  ;;  %v2392_v18 = vmul.f32 %v5220_v23, %v2938_v29 }
 0x27e   : > { %2252 = vst.msk [vmem:[#allocation3 + $0xc9] sm:$0xff] %vm2194_vm4, %v2177_v22  ;;  %v3137_v4 = vadd.f32 %v5335_v34, %v3101_v27  ;;  %v3168_v62 = vmax.f32 %v3136_v41, 0.0  ;;  %v2876_v39 = vmul.f32 %v5290_v32, %v5610_v48  ;;  %v5618_v36 = vld [vmem:[#allocation3 + $0xc1] sm:$0xff]  ;;  %v2779_v22 = vmul.f32 %v5282_v25, %v5598_v13 }
 0x27f   : > { %v2090_v17 = vpop.f32.mrf.mxu2  ;;  %v2328_v27 = vmul.f32 %v5208_v58, %v2842_v54  ;;  %v2973_v59 = vmul.f32 %v5305_v19, %v5618_v36 }
 0x280   : > { %v2091_v2 = vadd.f32 %v5162_v57, %v2090_v17  ;;  %v3169_v60 = vmax.f32 %v3137_v4, 0.0  ;;  %v3200_v16 = vmin.f32 %v3168_v62, 6.0  ;;  %v2908_v56 = vadd.f32 %v2876_v39, %v2810_v49 }
 0x281   : > { %v2393_v57 = vmul.f32 %v5220_v23, %v2939_v31  ;;  %v2811_v4 = vadd.f32 %v2779_v22, %v2714_v44  ;;  %v2424_v17 = vadd.f32 %v2392_v18, %v2327_v3  ;;  %v2586_v39 = vmul.f32 %v5252_v42, %v5610_v48 }
 0x282   : > { %v2146_v11 = vmax.f32 %v2091_v2, 0.0  ;;  %v3201_v41 = vmin.f32 %v3169_v60, 6.0  ;;  %v3005_v23 = vadd.f32 %v2973_v59, %v2908_v56  ;;  %v5641_v60 = vld [vmem:[%s6187_s8] ss:$0 sm:$0xff]  ;;  %v2683_v59 = vmul.f32 %v5277_v61, %v5618_v36 }
 0x283   : > { %v2425_v47 = vadd.f32 %v2393_v57, %v2328_v27  ;;  %v2521_v2 = vadd.f32 %v2489_v52, %v2424_v17 }
 0x284   : > { %v2178_v51 = vmin.f32 %v2146_v11, 6.0  ;;  %v3227_v6 = vpack.c.bf16 %v3201_v41, %v3200_v16  ;;  %v2490_v11 = vmul.f32 %v5232_v14, %v5598_v13 }
 0x285   : > { %v2844_v29 = vld [vmem:[#allocation3 + $0xc8] sm:$0xff]  ;;  %v2618_v41 = vadd.f32 %v2586_v39, %v2521_v2 }
 0x286   : > { %v2941_v38 = vld [vmem:[#allocation3 + $0xc9] sm:$0xff]  ;;  %2253 = vst.msk [vmem:[#allocation3 + $0xd9] sm:$0xff] %vm2194_vm4, %v2178_v51  ;;  %3698 = vmatmul.msk.bf16.gmra.mxu3 %vm2194_vm4, %v3227_v6  ;;  %v2877_v58 = vmul.f32 %v5290_v32, %v2844_v29  ;;  %v2587_v16 = vmul.f32 %v5252_v42, %v2844_v29  ;;  %v2522_v52 = vadd.f32 %v2490_v11, %v2425_v47 }
 0x287   : > { %v3037_v62 = vld [vmem:[#allocation3 + $0xc2] sm:$0xff]  ;;  %v2092_v31 = vpop.f32.mrf.mxu2  ;;  %v5636_v12 = vld [vmem:[#allocation3 + $0xca] sm:$0xff]  ;;  %v2974_v3 = vmul.f32 %v5305_v19, %v2941_v38 }
 0x288   : > { %v3070_v54 = vmul.f32 %v5314_v30, %v3037_v62  ;;  %v2093_v49 = vadd.f32 %v5641_v60, %v2092_v31  ;;  %v2909_v44 = vadd.f32 %v2877_v58, %v2811_v4  ;;  %v3071_v27 = vmul.f32 %v5314_v30, %v5636_v12 }
 0x289   : > { %v2780_v4 = vmul.f32 %v5282_v25, %v3037_v62  ;;  %v2619_v17 = vadd.f32 %v2587_v16, %v2522_v52  ;;  %v2715_v58 = vadd.f32 %v2683_v59, %v2618_v41  ;;  %v2684_v31 = vmul.f32 %v5277_v61, %v2941_v38  ;;  %v5674_v16 = vld [vmem:[%s6188_s9 + $0x1] ss:$0 sm:$0xff] }
 0x28a   : > { %v3102_v18 = vadd.f32 %v3070_v54, %v3005_v23  ;;  %v2147_v56 = vmax.f32 %v2093_v49, 0.0  ;;  %v3006_v22 = vadd.f32 %v2974_v3, %v2909_v44  ;;  %v2394_v61 = vmul.f32 %v5674_v16, %v5618_v36 }
 0x28b   : > { %v2812_v49 = vadd.f32 %v2780_v4, %v2715_v58  ;;  %v2716_v44 = vadd.f32 %v2684_v31, %v2619_v17 }
 0x28c   : > { %v3138_v57 = vadd.f32 %v5335_v34, %v3102_v18  ;;  %v2179_v51 = vmin.f32 %v2147_v56, 6.0  ;;  %v3103_v6 = vadd.f32 %v3071_v27, %v3006_v22  ;;  %v5667_v18 = vld [vmem:[%s6188_s9] ss:$0 sm:$0xff] }
 0x28d   : > { %v5654_v14 = vld [vmem:[#allocation3 + $0xd8] sm:$0xff]  ;;  %v2329_v11 = vmul.f32 %v5667_v18, %v5610_v48  ;;  %v2330_v52 = vmul.f32 %v5667_v18, %v2844_v29  ;;  %v5685_v48 = vld [vmem:[%s6188_s9 + $0x2] ss:$0 sm:$0xff] }
 0x28e   : > { %2254 = vst.msk [vmem:[#allocation3 + $0xe1] sm:$0xff] %vm2194_vm4, %v2179_v51  ;;  %v3139_v13 = vadd.f32 %v5335_v34, %v3103_v6  ;;  %v3170_v39 = vmax.f32 %v3138_v57, 0.0  ;;  %v2878_v23 = vmul.f32 %v5290_v32, %v5654_v14  ;;  %v5662_v3 = vld [vmem:[#allocation3 + $0xd9] sm:$0xff]  ;;  %v2781_v57 = vmul.f32 %v5282_v25, %v5636_v12 }
 0x28f   : > { %v2095_v54 = vpop.f32.mrf.mxu2  ;;  %v2395_v51 = vmul.f32 %v5674_v16, %v2941_v38  ;;  %v2491_v6 = vmul.f32 %v5685_v48, %v3037_v62  ;;  %v2975_v4 = vmul.f32 %v5305_v19, %v5662_v3  ;;  %v2426_v58 = vadd.f32 %v2394_v61, %v2329_v11 }
 0x290   : > { %v2096_v47 = vadd.f32 %v5641_v60, %v2095_v54  ;;  %v3171_v2 = vmax.f32 %v3139_v13, 0.0  ;;  %v3202_v56 = vmin.f32 %v3170_v39, 6.0  ;;  %v2910_v27 = vadd.f32 %v2878_v23, %v2812_v49 }
 0x291   : > { %v2813_v17 = vadd.f32 %v2781_v57, %v2716_v44  ;;  %v2588_v29 = vmul.f32 %v5252_v42, %v5654_v14  ;;  %v2492_v61 = vmul.f32 %v5685_v48, %v5636_v12  ;;  %v5714_v12 = vld [vmem:[%s6188_s9 + $0x5] ss:$0 sm:$0xff] }
 0x292   : > { %v2148_v41 = vmax.f32 %v2096_v47, 0.0  ;;  %v3203_v22 = vmin.f32 %v3171_v2, 6.0  ;;  %v3007_v62 = vadd.f32 %v2975_v4, %v2910_v27  ;;  %v2427_v47 = vadd.f32 %v2395_v51, %v2330_v52 }
 0x293   : > { %v2523_v2 = vadd.f32 %v2491_v6, %v2426_v58 }
 0x294   : > { %v2180_v59 = vmin.f32 %v2148_v41, 6.0  ;;  %v3228_v36 = vpack.c.bf16 %v3203_v22, %v3202_v56 }
 0x295   : > { %v2846_v13 = vld [vmem:[#allocation3 + $0xe0] sm:$0xff]  ;;  %v2620_v56 = vadd.f32 %v2588_v29, %v2523_v2 }
 0x296   : > { %v2943_v39 = vld [vmem:[#allocation3 + $0xe1] sm:$0xff]  ;;  %2255 = vst.msk [vmem:[#allocation3 + $0xf1] sm:$0xff] %vm2194_vm4, %v2180_v59  ;;  %3699 = vmatmul.msk.bf16.gmra.mxu3 %vm2194_vm4, %v3228_v36  ;;  %v2879_v38 = vmul.f32 %v5290_v32, %v2846_v13  ;;  %v5705_v32 = vld [vmem:[%s6188_s9 + $0x4] ss:$0 sm:$0xff]  ;;  %v2685_v59 = vmul.f32 %v5714_v12, %v5662_v3  ;;  %v5721_v36 = vld [vmem:[%s6188_s9 + $0x6] ss:$0 sm:$0xff] }
 0x297   : > { %v3039_v25 = vld [vmem:[#allocation3 + $0xda] sm:$0xff]  ;;  %v2097_v54 = vpop.f32.mrf.mxu2  ;;  %v5696_v31 = vld [vmem:[#allocation3 + $0xe2] sm:$0xff]  ;;  %v2976_v11 = vmul.f32 %v5305_v19, %v2943_v39  ;;  %v2589_v41 = vmul.f32 %v5705_v32, %v2846_v13  ;;  %v2524_v19 = vadd.f32 %v2492_v61, %v2427_v47  ;;  %v2686_v47 = vmul.f32 %v5714_v12, %v2943_v39 }
 0x298   : > { %v3072_v23 = vmul.f32 %v5314_v30, %v3039_v25  ;;  %v2098_v49 = vadd.f32 %v5641_v60, %v2097_v54  ;;  %v2911_v44 = vadd.f32 %v2879_v38, %v2813_v17  ;;  %v3073_v57 = vmul.f32 %v5314_v30, %v5696_v31 }
 0x299   : > { %v2782_v30 = vmul.f32 %v5721_v36, %v3039_v25  ;;  %v2621_v4 = vadd.f32 %v2589_v41, %v2524_v19  ;;  %v2717_v38 = vadd.f32 %v2685_v59, %v2620_v56  ;;  %v2396_v61 = vmul.f32 %v5674_v16, %v5662_v3 }
 0x29a   : > { %v3104_v42 = vadd.f32 %v3072_v23, %v3007_v62  ;;  %v2149_v22 = vmax.f32 %v2098_v49, 0.0  ;;  %v3008_v27 = vadd.f32 %v2976_v11, %v2911_v44  ;;  %v5731_v62 = vld [vmem:[%s6188_s9 + $0x8] ss:$0 sm:$0xff]  ;;  %v2397_v19 = vmul.f32 %v5674_v16, %v2943_v39 }
 0x29b   : > { %v2814_v44 = vadd.f32 %v2782_v30, %v2717_v38  ;;  %v2718_v11 = vadd.f32 %v2686_v47, %v2621_v4 }
 0x29c   : > { %v3140_v52 = vadd.f32 %v5335_v34, %v3104_v42  ;;  %v2181_v51 = vmin.f32 %v2149_v22, 6.0  ;;  %v3105_v6 = vadd.f32 %v3073_v57, %v3008_v27  ;;  %v2783_v57 = vmul.f32 %v5721_v36, %v5696_v31 }
 0x29d   : > { %v5724_v17 = vld [vmem:[#allocation3 + $0xf0] sm:$0xff] }
 0x29e   : > { %2256 = vst.msk [vmem:[#allocation3 + $0xf9] sm:$0xff] %vm2194_vm4, %v2181_v51  ;;  %v3141_v58 = vadd.f32 %v5335_v34, %v3105_v6  ;;  %v3172_v29 = vmax.f32 %v3140_v52, 0.0  ;;  %v2880_v23 = vmul.f32 %v5731_v62, %v5724_v17  ;;  %v5737_v42 = vld [vmem:[#allocation3 + $0xf1] sm:$0xff]  ;;  %v2331_v34 = vmul.f32 %v5667_v18, %v5654_v14  ;;  %v5751_v14 = vld [vmem:[%s6188_s9 + $0x9] ss:$0 sm:$0xff] }
 0x29f   : > { %v2100_v54 = vpop.f32.mrf.mxu2  ;;  %v2332_v52 = vmul.f32 %v5667_v18, %v2846_v13  ;;  %v2493_v51 = vmul.f32 %v5685_v48, %v3039_v25  ;;  %v2977_v3 = vmul.f32 %v5751_v14, %v5737_v42  ;;  %v2815_v30 = vadd.f32 %v2783_v57, %v2718_v11 }
 0x2a0   : > { %v2101_v2 = vadd.f32 %v5641_v60, %v2100_v54  ;;  %v3173_v49 = vmax.f32 %v3141_v58, 0.0  ;;  %v3204_v56 = vmin.f32 %v3172_v29, 6.0  ;;  %v2912_v27 = vadd.f32 %v2880_v23, %v2814_v44  ;;  %v5763_v23 = vld [vmem:[%s6188_s9 + $0xa] ss:$0 sm:$0xff] }
 0x2a1   : > { %v2428_v38 = vadd.f32 %v2396_v61, %v2331_v34  ;;  %v2590_v13 = vmul.f32 %v5705_v32, %v5724_v17 }
 0x2a2   : > { %v2150_v41 = vmax.f32 %v2101_v2, 0.0  ;;  %v3205_v22 = vmin.f32 %v3173_v49, 6.0  ;;  %v3009_v25 = vadd.f32 %v2977_v3, %v2912_v27  ;;  %v2429_v49 = vadd.f32 %v2397_v19, %v2332_v52  ;;  %v5778_v52 = vld [vmem:[%s6189_s10] ss:$0 sm:$0xff] }
 0x2a3   : > { %v2525_v44 = vadd.f32 %v2493_v51, %v2428_v38 }
 0x2a4   : > { %v2182_v6 = vmin.f32 %v2150_v41, 6.0  ;;  %v3229_v59 = vpack.c.bf16 %v3205_v22, %v3204_v56  ;;  %v2494_v56 = vmul.f32 %v5685_v48, %v5696_v31  ;;  %v2687_v31 = vmul.f32 %v5714_v12, %v5737_v42 }
 0x2a5   : > { %v2848_v4 = vld [vmem:[#allocation3 + $0xf8] sm:$0xff]  ;;  %v2622_v27 = vadd.f32 %v2590_v13, %v2525_v44 }
 0x2a6   : > { %v2945_v58 = vld [vmem:[#allocation3 + $0xf9] sm:$0xff]  ;;  %2257 = vst.msk [vmem:[#allocation3 + $0x109] sm:$0xff] %vm2194_vm4, %v2182_v6  ;;  %3700 = vmatmul.msk.bf16.gmra.mxu3 %vm2194_vm4, %v3229_v59  ;;  %v2881_v39 = vmul.f32 %v5731_v62, %v2848_v4  ;;  %v2591_v22 = vmul.f32 %v5705_v32, %v2848_v4  ;;  %v2526_v51 = vadd.f32 %v2494_v56, %v2429_v49 }
 0x2a7   : > { %v3041_v29 = vld [vmem:[#allocation3 + $0xf2] sm:$0xff]  ;;  %v2102_v47 = vpop.f32.mrf.mxu2  ;;  %v5766_v2 = vld [vmem:[#allocation3 + $0xfa] sm:$0xff]  ;;  %v2978_v61 = vmul.f32 %v5751_v14, %v2945_v58 }
 0x2a8   : > { %v3074_v54 = vmul.f32 %v5763_v23, %v3041_v29  ;;  %v2103_v11 = vadd.f32 %v5641_v60, %v2102_v47  ;;  %v2913_v34 = vadd.f32 %v2881_v39, %v2815_v30  ;;  %v3075_v59 = vmul.f32 %v5763_v23, %v5766_v2 }
 0x2a9   : > { %v2784_v38 = vmul.f32 %v5721_v36, %v3041_v29  ;;  %v2623_v13 = vadd.f32 %v2591_v22, %v2526_v51  ;;  %v2719_v47 = vadd.f32 %v2687_v31, %v2622_v27  ;;  %v2399_v31 = vmul.f32 %v5674_v16, %v2945_v58 }
 0x2aa   : > { %v3106_v41 = vadd.f32 %v3074_v54, %v3009_v25  ;;  %v2151_v57 = vmax.f32 %v2103_v11, 0.0  ;;  %v3010_v6 = vadd.f32 %v2978_v61, %v2913_v34  ;;  %v2688_v11 = vmul.f32 %v5714_v12, %v2945_v58 }
 0x2ac   : > { %v3142_v19 = vadd.f32 %v5778_v52, %v3106_v41  ;;  %v2183_v3 = vmin.f32 %v2151_v57, 6.0  ;;  %v3107_v30 = vadd.f32 %v3075_v59, %v3010_v6  ;;  %v2816_v41 = vadd.f32 %v2784_v38, %v2719_v47 }
 0x2ad   : > { %v5784_v39 = vld [vmem:[#allocation3 + $0x108] sm:$0xff]  ;;  %v2720_v56 = vadd.f32 %v2688_v11, %v2623_v13  ;;  %v2333_v57 = vmul.f32 %v5667_v18, %v5724_v17  ;;  %v2398_v6 = vmul.f32 %v5674_v16, %v5737_v42  ;;  %v2495_v38 = vmul.f32 %v5685_v48, %v3041_v29 }
 0x2ae   : > { %2258 = vst.msk [vmem:[#allocation3 + $0x111] sm:$0xff] %vm2194_vm4, %v2183_v3  ;;  %v3143_v25 = vadd.f32 %v5778_v52, %v3107_v30  ;;  %v3174_v54 = vmax.f32 %v3142_v19, 0.0  ;;  %v2882_v44 = vmul.f32 %v5731_v62, %v5784_v39  ;;  %v5792_v22 = vld [vmem:[#allocation3 + $0x109] sm:$0xff]  ;;  %v2785_v3 = vmul.f32 %v5721_v36, %v5766_v2 }
 0x2af   : > { %v2105_v49 = vpop.f32.mrf.mxu2  ;;  %v2334_v30 = vmul.f32 %v5667_v18, %v2848_v4  ;;  %v2979_v17 = vmul.f32 %v5751_v14, %v5792_v22  ;;  %v2430_v11 = vadd.f32 %v2398_v6, %v2333_v57  ;;  %v5812_v4 = vld [vmem:[%s6191_s12] ss:$0 sm:$0xff] }
 0x2b0   : > { %v2106_v34 = vadd.f32 %v5641_v60, %v2105_v49  ;;  %v3175_v61 = vmax.f32 %v3143_v25, 0.0  ;;  %v3206_v59 = vmin.f32 %v3174_v54, 6.0  ;;  %v2914_v51 = vadd.f32 %v2882_v44, %v2816_v41 }
 0x2b1   : > { %v2817_v47 = vadd.f32 %v2785_v3, %v2720_v56  ;;  %v2592_v44 = vmul.f32 %v5705_v32, %v5784_v39  ;;  %v2431_v56 = vadd.f32 %v2399_v31, %v2334_v30  ;;  %v2527_v57 = vadd.f32 %v2495_v38, %v2430_v11 }
 0x2b2   : > { %v2152_v27 = vmax.f32 %v2106_v34, 0.0  ;;  %v3207_v19 = vmin.f32 %v3175_v61, 6.0  ;;  %v3011_v29 = vadd.f32 %v2979_v17, %v2914_v51  ;;  %v2496_v51 = vmul.f32 %v5685_v48, %v5766_v2 }
 0x2b3   : > { %v2624_v17 = vadd.f32 %v2592_v44, %v2527_v57  ;;  %v2689_v11 = vmul.f32 %v5714_v12, %v5792_v22 }
 0x2b4   : > { %v2184_v13 = vmin.f32 %v2152_v27, 6.0  ;;  %v3230_v25 = vpack.c.bf16 %v3207_v19, %v3206_v59 }
 0x2b5   : > { %v2850_v42 = vld [vmem:[#allocation3 + $0x110] sm:$0xff] }
 0x2b6   : > { %v2947_v49 = vld [vmem:[#allocation3 + $0x111] sm:$0xff]  ;;  %2259 = vst.msk [vmem:[#allocation3 + $0x121] sm:$0xff] %vm2194_vm4, %v2184_v13  ;;  %3701 = vmatmul.msk.bf16.gmra.mxu3 %vm2194_vm4, %v3230_v25  ;;  %v2883_v58 = vmul.f32 %v5731_v62, %v2850_v42  ;;  %v2593_v25 = vmul.f32 %v5705_v32, %v2850_v42 }
 0x2b7   : > { %v3043_v54 = vld [vmem:[#allocation3 + $0x10a] sm:$0xff]  ;;  %v5815_v34 = vld [vmem:[#allocation3 + $0x112] sm:$0xff]  ;;  %v2107_v41 = vpop.f32.mrf.mxu2  ;;  %v2980_v59 = vmul.f32 %v5751_v14, %v2947_v49 }
 0x2b8   : > { %v3076_v61 = vmul.f32 %v5763_v23, %v3043_v54  ;;  %v2108_v6 = vadd.f32 %v5641_v60, %v2107_v41  ;;  %v2915_v27 = vadd.f32 %v2883_v58, %v2817_v47  ;;  %v3077_v13 = vmul.f32 %v5763_v23, %v5815_v34 }
 0x2b9   : > { %v3347_v3 = vpop.f32.mrf.mxu3  ;;  %v2528_v47 = vadd.f32 %v2496_v51, %v2431_v56  ;;  %v2786_v2 = vmul.f32 %v5721_v36, %v3043_v54 }
 0x2ba   : > { %v3108_v19 = vadd.f32 %v3076_v61, %v3011_v29  ;;  %v2153_v21 = vmax.f32 %v2108_v6, 0.0  ;;  %v3348_v30 = vadd.f32 %v5812_v4, %v3347_v3  ;;  %v3012_v31 = vadd.f32 %v2980_v59, %v2915_v27 }
 0x2bb   : > { %v2625_v35 = vadd.f32 %v2593_v25, %v2528_v47  ;;  %v2721_v6 = vadd.f32 %v2689_v11, %v2624_v17  ;;  %v2335_v17 = vmul.f32 %v5667_v18, %v5784_v39 }
 0x2bc   : > { %v3144_v38 = vadd.f32 %v5778_v52, %v3108_v19  ;;  %v2185_v58 = vmin.f32 %v2153_v21, 6.0  ;;  %v3427_v29 = vadd.f32 %v3348_v30, %v4801_v0  ;;  %v3109_v61 = vadd.f32 %v3077_v13, %v3012_v31 }
 0x2bd   : > { %v5831_v44 = vld [vmem:[#allocation3 + $0x120] sm:$0xff]  ;;  %v2690_v21 = vmul.f32 %v5714_v12, %v2947_v49  ;;  %v2818_v19 = vadd.f32 %v2786_v2, %v2721_v6  ;;  %v2400_v30 = vmul.f32 %v5674_v16, %v5792_v22 }
 0x2be   : > { %v3176_v41 = vmax.f32 %v3144_v38, 0.0  ;;  %2260 = vst.msk [vmem:[#allocation3 + $0x129] sm:$0xff] %vm2194_vm4, %v2185_v58  ;;  %v3145_v57 = vadd.f32 %v5778_v52, %v3109_v61  ;;  %v2884_v56 = vmul.f32 %v5731_v62, %v5831_v44  ;;  %v5845_v25 = vld [vmem:[#allocation3 + $0x121] sm:$0xff]  ;;  %v2787_v58 = vmul.f32 %v5721_v36, %v5815_v34 }
 0x2bf   : > { %3459 = vst.msk [vmem:[%s5839_s18] sm:$0xff] %vm522_vm0, %v3427_v29  ;;  %v2110_v0 = vpop.f32.mrf.mxu2  ;;  %v2722_v51 = vadd.f32 %v2690_v21, %v2625_v35  ;;  %v2336_v29 = vmul.f32 %v5667_v18, %v2850_v42  ;;  %v2401_v35 = vmul.f32 %v5674_v16, %v2947_v49  ;;  %v2497_v61 = vmul.f32 %v5685_v48, %v3043_v54 }
 0x2c0   : > { %v2111_v27 = vadd.f32 %v5641_v60, %v2110_v0  ;;  %v3177_v59 = vmax.f32 %v3145_v57, 0.0  ;;  %v3208_v13 = vmin.f32 %v3176_v41, 6.0  ;;  %v2916_v11 = vadd.f32 %v2884_v56, %v2818_v19 }
 0x2c1   : > { %v3349_v3 = vpop.f32.mrf.mxu3  ;;  %v2981_v22 = vmul.f32 %v5751_v14, %v5845_v25  ;;  %v2819_v57 = vadd.f32 %v2787_v58, %v2722_v51  ;;  %v2432_v21 = vadd.f32 %v2400_v30, %v2335_v17  ;;  %v2594_v42 = vmul.f32 %v5705_v32, %v5831_v44 }
 0x2c2   : > { %v2154_v31 = vmax.f32 %v2111_v27, 0.0  ;;  %v3350_v38 = vadd.f32 %v5812_v4, %v3349_v3  ;;  %v3209_v47 = vmin.f32 %v3177_v59, 6.0  ;;  %v2433_v19 = vadd.f32 %v2401_v35, %v2336_v29 }
 0x2c3   : > { %v3013_v54 = vadd.f32 %v2981_v22, %v2916_v11  ;;  %v2529_v3 = vadd.f32 %v2497_v61, %v2432_v21 }
 0x2c4   : > { %v2186_v2 = vmin.f32 %v2154_v31, 6.0  ;;  %v3428_v39 = vadd.f32 %v3350_v38, %v4811_v8  ;;  %v3231_v41 = vpack.c.bf16 %v3209_v47, %v3208_v13  ;;  %v2498_v47 = vmul.f32 %v5685_v48, %v5815_v34 }
 0x2c5   : > { %v2852_v6 = vld [vmem:[#allocation3 + $0x128] sm:$0xff]  ;;  %v2626_v58 = vadd.f32 %v2594_v42, %v2529_v3 }
 0x2c6   : > { %v2949_v56 = vld [vmem:[#allocation3 + $0x129] sm:$0xff]  ;;  %2261 = vst.msk [vmem:[#allocation3 + $0x139] sm:$0xff] %vm2194_vm4, %v2186_v2  ;;  %3702 = vmatmul.msk.bf16.gmra.mxu3 %vm2194_vm4, %v3231_v41  ;;  %v2885_v49 = vmul.f32 %v5731_v62, %v2852_v6  ;;  %v2595_v11 = vmul.f32 %v5705_v32, %v2852_v6  ;;  %v2691_v41 = vmul.f32 %v5714_v12, %v5845_v25 }
 0x2c7   : > { %v3045_v0 = vld [vmem:[#allocation3 + $0x122] sm:$0xff]  ;;  %v5865_v8 = vld [vmem:[#allocation3 + $0x12a] sm:$0xff]  ;;  %3460 = vst.msk [vmem:[%s5839_s18 + $0x8] sm:$0xff] %vm522_vm0, %v3428_v39  ;;  %v2112_v59 = vpop.f32.mrf.mxu2  ;;  %v2982_v17 = vmul.f32 %v5751_v14, %v2949_v56  ;;  %v2530_v39 = vadd.f32 %v2498_v47, %v2433_v19 }
 0x2c8   : > { %v3078_v27 = vmul.f32 %v5763_v23, %v3045_v0  ;;  %v2113_v13 = vadd.f32 %v5641_v60, %v2112_v59  ;;  %v2917_v51 = vadd.f32 %v2885_v49, %v2819_v57  ;;  %v3079_v38 = vmul.f32 %v5763_v23, %v5865_v8 }
 0x2c9   : > { %v3352_v31 = vpop.f32.mrf.mxu3  ;;  %v2788_v34 = vmul.f32 %v5721_v36, %v3045_v0  ;;  %v2723_v59 = vadd.f32 %v2691_v41, %v2626_v58  ;;  %v2402_v58 = vmul.f32 %v5674_v16, %v5845_v25  ;;  %v2338_v41 = vmul.f32 %v5667_v18, %v2852_v6 }
 0x2ca   : > { %v3110_v30 = vadd.f32 %v3078_v27, %v3013_v54  ;;  %v2155_v2 = vmax.f32 %v2113_v13, 0.0  ;;  %v3353_v29 = vadd.f32 %v5812_v4, %v3352_v31  ;;  %v3014_v35 = vadd.f32 %v2982_v17, %v2917_v51 }
 0x2cb   : > { %v2627_v54 = vadd.f32 %v2595_v11, %v2530_v39  ;;  %v2820_v17 = vadd.f32 %v2788_v34, %v2723_v59  ;;  %v2337_v11 = vmul.f32 %v5667_v18, %v5831_v44  ;;  %v2789_v39 = vmul.f32 %v5721_v36, %v5865_v8 }
 0x2cc   : > { %v3146_v61 = vadd.f32 %v5778_v52, %v3110_v30  ;;  %v2187_v22 = vmin.f32 %v2155_v2, 6.0  ;;  %v3429_v57 = vadd.f32 %v3353_v29, %v4867_v15  ;;  %v3111_v21 = vadd.f32 %v3079_v38, %v3014_v35 }
 0x2cd   : > { %v5883_v42 = vld [vmem:[#allocation3 + $0x138] sm:$0xff]  ;;  %v2692_v15 = vmul.f32 %v5714_v12, %v2949_v56 }
 0x2ce   : > { %v3178_v49 = vmax.f32 %v3146_v61, 0.0  ;;  %2262 = vst.msk [vmem:[#allocation3 + $0x141] sm:$0xff] %vm2194_vm4, %v2187_v22  ;;  %v3147_v27 = vadd.f32 %v5778_v52, %v3111_v21  ;;  %v2886_v19 = vmul.f32 %v5731_v62, %v5883_v42  ;;  %v5893_v47 = vld [vmem:[#allocation3 + $0x139] sm:$0xff]  ;;  %v2403_v22 = vmul.f32 %v5674_v16, %v2949_v56 }
 0x2cf   : > { %3461 = vst.msk [vmem:[%s5839_s18 + $0x10] sm:$0xff] %vm522_vm0, %v3429_v57  ;;  %v2115_v3 = vpop.f32.mrf.mxu2  ;;  %v2724_v38 = vadd.f32 %v2692_v15, %v2627_v54  ;;  %v2499_v57 = vmul.f32 %v5685_v48, %v3045_v0  ;;  %v2983_v25 = vmul.f32 %v5751_v14, %v5893_v47  ;;  %v2596_v6 = vmul.f32 %v5705_v32, %v5883_v42 }
 0x2d0   : > { %v2116_v13 = vadd.f32 %v5641_v60, %v2115_v3  ;;  %v3179_v51 = vmax.f32 %v3147_v27, 0.0  ;;  %v3210_v31 = vmin.f32 %v3178_v49, 6.0  ;;  %v2918_v61 = vadd.f32 %v2886_v19, %v2820_v17 }
 0x2d1   : > { %v3354_v30 = vpop.f32.mrf.mxu3  ;;  %v2821_v49 = vadd.f32 %v2789_v39, %v2724_v38  ;;  %v2434_v19 = vadd.f32 %v2402_v58, %v2337_v11 }
 0x2d2   : > { %v2156_v2 = vmax.f32 %v2116_v13, 0.0  ;;  %v3355_v29 = vadd.f32 %v5812_v4, %v3354_v30  ;;  %v3211_v35 = vmin.f32 %v3179_v51, 6.0  ;;  %v3015_v0 = vadd.f32 %v2983_v25, %v2918_v61 }
 0x2d3   : > { %v2435_v13 = vadd.f32 %v2403_v22, %v2338_v41  ;;  %v2531_v51 = vadd.f32 %v2499_v57, %v2434_v19 }
 0x2d4   : > { %v2188_v21 = vmin.f32 %v2156_v2, 6.0  ;;  %v3430_v44 = vadd.f32 %v3355_v29, %v4877_v5  ;;  %v3232_v34 = vpack.c.bf16 %v3211_v35, %v3210_v31  ;;  %v2500_v2 = vmul.f32 %v5685_v48, %v5865_v8 }
 0x2d5   : > { %v2854_v54 = vld [vmem:[#allocation3 + $0x140] sm:$0xff]  ;;  %v2628_v35 = vadd.f32 %v2596_v6, %v2531_v51 }
 0x2d6   : > { %v2951_v27 = vld [vmem:[#allocation3 + $0x141] sm:$0xff]  ;;  %2263 = vst.msk [vmem:[#allocation3 + $0x151] sm:$0xff] %vm2194_vm4, %v2188_v21  ;;  %3703 = vmatmul.msk.bf16.gmra.mxu3 %vm2194_vm4, %v3232_v34  ;;  %v2887_v56 = vmul.f32 %v5731_v62, %v2854_v54  ;;  %v2597_v29 = vmul.f32 %v5705_v32, %v2854_v54  ;;  %v2532_v57 = vadd.f32 %v2500_v2, %v2435_v13 }
 0x2d7   : > { %v3047_v59 = vld [vmem:[#allocation3 + $0x13a] sm:$0xff]  ;;  %v5913_v5 = vld [vmem:[#allocation3 + $0x142] sm:$0xff]  ;;  %3462 = vst.msk [vmem:[%s5839_s18 + $0x18] sm:$0xff] %vm522_vm0, %v3430_v44  ;;  %v2117_v15 = vpop.f32.mrf.mxu2  ;;  %v2984_v31 = vmul.f32 %v5751_v14, %v2951_v27  ;;  %v2693_v21 = vmul.f32 %v5714_v12, %v5893_v47  ;;  %v2404_v2 = vmul.f32 %v5674_v16, %v5893_v47 }
 0x2d8   : > { %v3080_v3 = vmul.f32 %v5763_v23, %v3047_v59  ;;  %v2118_v17 = vadd.f32 %v5641_v60, %v2117_v15  ;;  %v2919_v30 = vadd.f32 %v2887_v56, %v2821_v49  ;;  %v3081_v58 = vmul.f32 %v5763_v23, %v5913_v5 }
 0x2d9   : > { %v3357_v11 = vpop.f32.mrf.mxu3  ;;  %v2790_v8 = vmul.f32 %v5721_v36, %v3047_v59  ;;  %v2629_v19 = vadd.f32 %v2597_v29, %v2532_v57  ;;  %v2405_v57 = vmul.f32 %v5674_v16, %v2951_v27 }
 0x2da   : > { %v3112_v38 = vadd.f32 %v3080_v3, %v3015_v0  ;;  %v2157_v61 = vmax.f32 %v2118_v17, 0.0  ;;  %v3358_v39 = vadd.f32 %v5812_v4, %v3357_v11  ;;  %v3016_v41 = vadd.f32 %v2984_v31, %v2919_v30 }
 0x2db   : > { %v2725_v0 = vadd.f32 %v2693_v21, %v2628_v35  ;;  %v2501_v21 = vmul.f32 %v5685_v48, %v3047_v59 }
 0x2dc   : > { %v3148_v22 = vadd.f32 %v5778_v52, %v3112_v38  ;;  %v2189_v44 = vmin.f32 %v2157_v61, 6.0  ;;  %v3431_v34 = vadd.f32 %v3358_v39, %v4933_v7  ;;  %v3113_v25 = vadd.f32 %v3081_v58, %v3016_v41 }
 0x2dd   : > { %v5931_v6 = vld [vmem:[#allocation3 + $0x150] sm:$0xff]  ;;  %v2694_v7 = vmul.f32 %v5714_v12, %v2951_v27  ;;  %v2822_v17 = vadd.f32 %v2790_v8, %v2725_v0  ;;  %v2339_v58 = vmul.f32 %v5667_v18, %v5883_v42  ;;  %v2791_v41 = vmul.f32 %v5721_v36, %v5913_v5 }
 0x2de   : > { %v3180_v49 = vmax.f32 %v3148_v22, 0.0  ;;  %2264 = vst.msk [vmem:[#allocation3 + $0x159] sm:$0xff] %vm2194_vm4, %v2189_v44  ;;  %v3149_v56 = vadd.f32 %v5778_v52, %v3113_v25  ;;  %v2888_v3 = vmul.f32 %v5731_v62, %v5931_v6  ;;  %v5941_v11 = vld [vmem:[#allocation3 + $0x151] sm:$0xff]  ;;  %v2340_v22 = vmul.f32 %v5667_v18, %v2854_v54 }
 0x2df   : > { %3463 = vst.msk [vmem:[%s5839_s18 + $0x20] sm:$0xff] %vm522_vm0, %v3431_v34  ;;  %v2120_v15 = vpop.f32.mrf.mxu2  ;;  %v2726_v38 = vadd.f32 %v2694_v7, %v2629_v19  ;;  %v2985_v47 = vmul.f32 %v5751_v14, %v5941_v11  ;;  %v2598_v54 = vmul.f32 %v5705_v32, %v5931_v6 }
 0x2e0   : > { %v2121_v13 = vadd.f32 %v5641_v60, %v2120_v15  ;;  %v3181_v51 = vmax.f32 %v3149_v56, 0.0  ;;  %v3212_v31 = vmin.f32 %v3180_v49, 6.0  ;;  %v2920_v39 = vadd.f32 %v2888_v3, %v2822_v17 }
 0x2e1   : > { %v3359_v30 = vpop.f32.mrf.mxu3  ;;  %v2823_v25 = vadd.f32 %v2791_v41, %v2726_v38  ;;  %v2436_v56 = vadd.f32 %v2404_v2, %v2339_v58  ;;  %v2437_v15 = vadd.f32 %v2405_v57, %v2340_v22  ;;  %v2502_v58 = vmul.f32 %v5685_v48, %v5913_v5 }
 0x2e2   : > { %v2158_v29 = vmax.f32 %v2121_v13, 0.0  ;;  %v3360_v35 = vadd.f32 %v5812_v4, %v3359_v30  ;;  %v3213_v61 = vmin.f32 %v3181_v51, 6.0  ;;  %v3017_v59 = vadd.f32 %v2985_v47, %v2920_v39 }
 0x2e3   : > { %v2533_v7 = vadd.f32 %v2501_v21, %v2436_v56  ;;  %v2534_v22 = vadd.f32 %v2502_v58, %v2437_v15  ;;  %v2695_v57 = vmul.f32 %v5714_v12, %v5941_v11 }
 0x2e4   : > { %v2190_v44 = vmin.f32 %v2158_v29, 6.0  ;;  %v3432_v42 = vadd.f32 %v3360_v35, %v4943_v46  ;;  %v3233_v34 = vpack.c.bf16 %v3213_v61, %v3212_v31 }
 0x2e5   : > { %v2856_v8 = vld [vmem:[#allocation3 + $0x158] sm:$0xff]  ;;  %v2630_v29 = vadd.f32 %v2598_v54, %v2533_v7 }
 0x2e6   : > { %v2953_v49 = vld [vmem:[#allocation3 + $0x159] sm:$0xff]  ;;  %2265 = vst.msk [vmem:[#allocation3 + $0x169] sm:$0xff] %vm2194_vm4, %v2190_v44  ;;  %3704 = vmatmul.msk.bf16.gmra.mxu3 %vm2194_vm4, %v3233_v34  ;;  %v2889_v27 = vmul.f32 %v5731_v62, %v2856_v8  ;;  %v2599_v2 = vmul.f32 %v5705_v32, %v2856_v8 }
 0x2e7   : > { %v3049_v19 = vld [vmem:[#allocation3 + $0x152] sm:$0xff]  ;;  %v5961_v46 = vld [vmem:[#allocation3 + $0x15a] sm:$0xff]  ;;  %3464 = vst.msk [vmem:[%s5839_s18 + $0x28] sm:$0xff] %vm522_vm0, %v3432_v42  ;;  %v2122_v3 = vpop.f32.mrf.mxu2  ;;  %v2986_v17 = vmul.f32 %v5751_v14, %v2953_v49  ;;  %v2727_v54 = vadd.f32 %v2695_v57, %v2630_v29 }
 0x2e8   : > { %v3082_v0 = vmul.f32 %v5763_v23, %v3049_v19  ;;  %v2123_v13 = vadd.f32 %v5641_v60, %v2122_v3  ;;  %v2921_v51 = vadd.f32 %v2889_v27, %v2823_v25  ;;  %v3083_v38 = vmul.f32 %v5763_v23, %v5961_v46 }
 0x2e9   : > { %v3362_v31 = vpop.f32.mrf.mxu3  ;;  %v2792_v5 = vmul.f32 %v5721_v36, %v3049_v19  ;;  %v2631_v47 = vadd.f32 %v2599_v2, %v2534_v22 }
 0x2ea   : > { %v3114_v30 = vadd.f32 %v3082_v0, %v3017_v59  ;;  %v2159_v35 = vmax.f32 %v2123_v13, 0.0  ;;  %v3363_v61 = vadd.f32 %v5812_v4, %v3362_v31  ;;  %v3018_v39 = vadd.f32 %v2986_v17, %v2921_v51 }
 0x2eb   : > { %v2696_v0 = vmul.f32 %v5714_v12, %v2953_v49  ;;  %v2824_v15 = vadd.f32 %v2792_v5, %v2727_v54  ;;  %v2406_v31 = vmul.f32 %v5674_v16, %v5941_v11 }
 0x2ec   : > { %v3150_v41 = vadd.f32 %v5778_v52, %v3114_v30  ;;  %v2191_v21 = vmin.f32 %v2159_v35, 6.0  ;;  %v3433_v44 = vadd.f32 %v3363_v61, %v4989_v37  ;;  %v3115_v42 = vadd.f32 %v3083_v38, %v3018_v39 }
 0x2ed   : > { %v2857_v25 = vld [vmem:[#allocation3 + $0x168] sm:$0xff]  ;;  %v2728_v51 = vadd.f32 %v2696_v0, %v2631_v47  ;;  %v2341_v30 = vmul.f32 %v5667_v18, %v5931_v6  ;;  %v2793_v35 = vmul.f32 %v5721_v36, %v5961_v46  ;;  %v2342_v61 = vmul.f32 %v5667_v18, %v2856_v8 }
 0x2ee   : > { %v3182_v34 = vmax.f32 %v3150_v41, 0.0  ;;  %2266 = vst.msk [vmem:[#allocation3 + $0x171] sm:$0xff] %vm2194_vm4, %v2191_v21  ;;  %v3151_v56 = vadd.f32 %v5778_v52, %v3115_v42  ;;  %v2890_v27 = vmul.f32 %v5731_v62, %v2857_v25  ;;  %v2954_v17 = vld [vmem:[#allocation3 + $0x169] sm:$0xff]  ;;  %v2407_v39 = vmul.f32 %v5674_v16, %v2953_v49 }
 0x2ef   : > { %3465 = vst.msk [vmem:[%s5839_s18 + $0x30] sm:$0xff] %vm522_vm0, %v3433_v44  ;;  %v2125_v59 = vpop.f32.mrf.mxu2  ;;  %v2503_v41 = vmul.f32 %v5685_v48, %v3049_v19  ;;  %v2987_v11 = vmul.f32 %v5751_v14, %v2954_v17  ;;  %v2825_v21 = vadd.f32 %v2793_v35, %v2728_v51  ;;  %v2600_v47 = vmul.f32 %v5705_v32, %v2857_v25 }
 0x2f0   : > { %v2126_v37 = vadd.f32 %v5641_v60, %v2125_v59  ;;  %v3183_v3 = vmax.f32 %v3151_v56, 0.0  ;;  %v3214_v13 = vmin.f32 %v3182_v34, 6.0  ;;  %v2922_v29 = vadd.f32 %v2890_v27, %v2824_v15 }
 0x2f1   : > { %v3364_v7 = vpop.f32.mrf.mxu3  ;;  %v2438_v34 = vadd.f32 %v2406_v31, %v2341_v30  ;;  %v2439_v54 = vadd.f32 %v2407_v39, %v2342_v61  ;;  %v2343_v35 = vmul.f32 %v5667_v18, %v2857_v25  ;;  %v2408_v61 = vmul.f32 %v5674_v16, %v2954_v17 }
 0x2f2   : > { %v2160_v38 = vmax.f32 %v2126_v37, 0.0  ;;  %v3365_v58 = vadd.f32 %v5812_v4, %v3364_v7  ;;  %v3215_v2 = vmin.f32 %v3183_v3, 6.0  ;;  %v3019_v49 = vadd.f32 %v2987_v11, %v2922_v29 }
 0x2f3   : > { %v2535_v27 = vadd.f32 %v2503_v41, %v2438_v34  ;;  %v2697_v29 = vmul.f32 %v5714_v12, %v2954_v17 }
 0x2f4   : > { %v2192_v22 = vmin.f32 %v2160_v38, 6.0  ;;  %v3434_v6 = vadd.f32 %v3365_v58, %v4996_v55  ;;  %v3234_v57 = vpack.c.bf16 %v3215_v2, %v3214_v13  ;;  %v2504_v13 = vmul.f32 %v5685_v48, %v5961_v46 }
 0x2f5   : > { %v2858_v44 = vld [vmem:[#allocation3 + $0x170] sm:$0xff]  ;;  %v2632_v30 = vadd.f32 %v2600_v47, %v2535_v27 }
 0x2f6   : > { %v2955_v42 = vld [vmem:[#allocation3 + $0x171] sm:$0xff]  ;;  %2267 = vst.msk [vmem:[#allocation3 + $0x181] sm:$0xff] %vm2194_vm4, %v2192_v22  ;;  %3705 = vmatmul.msk.bf16.gmra.mxu3 %vm2194_vm4, %v3234_v57  ;;  %v2891_v8 = vmul.f32 %v5731_v62, %v2858_v44  ;;  %v2601_v51 = vmul.f32 %v5705_v32, %v2858_v44 }
 0x2f7   : > { %v3051_v5 = vld [vmem:[#allocation3 + $0x16a] sm:$0xff]  ;;  %v3052_v19 = vld [vmem:[#allocation3 + $0x172] sm:$0xff]  ;;  %3466 = vst.msk [vmem:[%s5839_s18 + $0x38] sm:$0xff] %vm522_vm0, %v3434_v6  ;;  %v2127_v56 = vpop.f32.mrf.mxu2  ;;  %v2988_v37 = vmul.f32 %v5751_v14, %v2955_v42  ;;  %v2729_v47 = vadd.f32 %v2697_v29, %v2632_v30  ;;  %v2698_v17 = vmul.f32 %v5714_v12, %v2955_v42 }
 0x2f8   : > { %v3084_v55 = vmul.f32 %v5763_v23, %v3051_v5  ;;  %v2128_v59 = vadd.f32 %v5641_v60, %v2127_v56  ;;  %v2923_v0 = vadd.f32 %v2891_v8, %v2825_v21  ;;  %v3085_v7 = vmul.f32 %v5763_v23, %v3052_v19 }
 0x2f9   : > { %v3367_v15 = vpop.f32.mrf.mxu3  ;;  %v2536_v60 = vadd.f32 %v2504_v13, %v2439_v54  ;;  %v2794_v22 = vmul.f32 %v5721_v36, %v3051_v5  ;;  %v2505_v11 = vmul.f32 %v5685_v48, %v3051_v5  ;;  %v2409_v8 = vmul.f32 %v5674_v16, %v2955_v42 }
 0x2fa   : > { %v3116_v3 = vadd.f32 %v3084_v55, %v3019_v49  ;;  %v2161_v31 = vmax.f32 %v2128_v59, 0.0  ;;  %v3368_v38 = vadd.f32 %v5812_v4, %v3367_v15  ;;  %v3020_v58 = vadd.f32 %v2988_v37, %v2923_v0 }
 0x2fb   : > { %v2633_v6 = vadd.f32 %v2601_v51, %v2536_v60  ;;  %v2440_v49 = vadd.f32 %v2408_v61, %v2343_v35  ;;  %v2826_v56 = vadd.f32 %v2794_v22, %v2729_v47  ;;  %v2795_v13 = vmul.f32 %v5721_v36, %v3052_v19 }
 0x2fc   : > { %v3152_v2 = vadd.f32 %v5778_v52, %v3116_v3  ;;  %v2193_v39 = vmin.f32 %v2161_v31, 6.0  ;;  %v3435_v46 = vadd.f32 %v3368_v38, %v5034_v33  ;;  %v3117_v41 = vadd.f32 %v3085_v7, %v3020_v58 }
 0x2fd   : > { %v2859_v57 = vld [vmem:[#allocation3 + $0x180] sm:$0xff]  ;;  %v2344_v33 = vmul.f32 %v5667_v18, %v2858_v44  ;;  %v2730_v27 = vadd.f32 %v2698_v17, %v2633_v6  ;;  %v2537_v0 = vadd.f32 %v2505_v11, %v2440_v49 }
 0x2fe   : > { %2268 = vst.msk [vmem:[#allocation3 + $0x189] sm:$0xff] %vm2194_vm4, %v2193_v39  ;;  %v3153_v21 = vadd.f32 %v5778_v52, %v3117_v41  ;;  %v3184_v34 = vmax.f32 %v3152_v2, 0.0  ;;  %v2892_v25 = vmul.f32 %v5731_v62, %v2859_v57  ;;  %v2602_v5 = vmul.f32 %v5705_v32, %v2859_v57  ;;  %v2956_v59 = vld [vmem:[#allocation3 + $0x181] sm:$0xff]  ;;  %v2861_v39 = vld [vmem:[#allocation3 + $0x198] sm:$0xff] }
 0x2ff   : > { %3467 = vst.msk [vmem:[%s5839_s18 + $0x40] sm:$0xff] %vm522_vm0, %v3435_v46  ;;  %v2441_v18 = vadd.f32 %v2409_v8, %v2344_v33  ;;  %v2989_v42 = vmul.f32 %v5751_v14, %v2956_v59  ;;  %v2827_v30 = vadd.f32 %v2795_v13, %v2730_v27  ;;  %v2506_v2 = vmul.f32 %v5685_v48, %v3052_v19  ;;  %v2862_v11 = vld [vmem:[#allocation3 + $0x1a0] sm:$0xff] }
 0x300   : > { %v3185_v55 = vmax.f32 %v3153_v21, 0.0  ;;  %v3216_v3 = vmin.f32 %v3184_v34, 6.0  ;;  %v2924_v7 = vadd.f32 %v2892_v25, %v2826_v56  ;;  %v2634_v51 = vadd.f32 %v2602_v5, %v2537_v0  ;;  %v2958_v27 = vld [vmem:[#allocation3 + $0x199] sm:$0xff] }
 0x301   : > { %v3369_v54 = vpop.f32.mrf.mxu3  ;;  %v2699_v60 = vmul.f32 %v5714_v12, %v2956_v59  ;;  %v2538_v46 = vadd.f32 %v2506_v2, %v2441_v18  ;;  %v2894_v17 = vmul.f32 %v5731_v62, %v2861_v39  ;;  %v2991_v18 = vmul.f32 %v5751_v14, %v2958_v27 }
 0x302   : > { %v3370_v37 = vadd.f32 %v5812_v4, %v3369_v54  ;;  %v3217_v15 = vmin.f32 %v3185_v55, 6.0  ;;  %v3021_v35 = vadd.f32 %v2989_v42, %v2924_v7  ;;  %v2959_v55 = vld [vmem:[#allocation3 + $0x1a1] sm:$0xff]  ;;  %v2895_v54 = vmul.f32 %v5731_v62, %v2862_v11 }
 0x303   : > { %v2731_v57 = vadd.f32 %v2699_v60, %v2634_v51 }
 0x304   : > { %v3436_v16 = vadd.f32 %v3370_v37, %v5039_v63  ;;  %v3235_v44 = vpack.c.bf16 %v3217_v15, %v3216_v3  ;;  %v2992_v37 = vmul.f32 %v5751_v14, %v2959_v55  ;;  %v3056_v3 = vld [vmem:[#allocation3 + $0x1a2] sm:$0xff] }
 0x305   : > { %v2860_v31 = vld [vmem:[#allocation3 + $0x188] sm:$0xff] }
 0x306   : > { %v2957_v38 = vld [vmem:[#allocation3 + $0x189] sm:$0xff]  ;;  %3468 = vst.msk [vmem:[%s5839_s18 + $0x48] sm:$0xff] %vm522_vm0, %v3436_v16  ;;  %3706 = vmatmul.msk.bf16.gmra.mxu3 %vm2194_vm4, %v3235_v44  ;;  %v2893_v29 = vmul.f32 %v5731_v62, %v2860_v31  ;;  %v2603_v41 = vmul.f32 %v5705_v32, %v2860_v31  ;;  %v3089_v44 = vmul.f32 %v5763_v23, %v3056_v3 }
 0x307   : > { %v3053_v58 = vld [vmem:[#allocation3 + $0x182] sm:$0xff]  ;;  %v3054_v63 = vld [vmem:[#allocation3 + $0x18a] sm:$0xff]  ;;  %v2990_v48 = vmul.f32 %v5751_v14, %v2957_v38  ;;  %v2700_v25 = vmul.f32 %v5714_v12, %v2957_v38 }
 0x308   : > { %v3086_v61 = vmul.f32 %v5763_v23, %v3053_v58  ;;  %v2796_v22 = vmul.f32 %v5721_v36, %v3053_v58  ;;  %v2925_v6 = vadd.f32 %v2893_v29, %v2827_v30  ;;  %v3087_v34 = vmul.f32 %v5763_v23, %v3054_v63 }
 0x309   : > { %v3372_v21 = vpop.f32.mrf.mxu3  ;;  %v2635_v47 = vadd.f32 %v2603_v41, %v2538_v46  ;;  %v2797_v5 = vmul.f32 %v5721_v36, %v3054_v63  ;;  %v3055_v36 = vld [vmem:[#allocation3 + $0x19a] sm:$0xff] }
 0x30a   : > { %v3118_v19 = vadd.f32 %v3086_v61, %v3021_v35  ;;  %v3373_v33 = vadd.f32 %v5812_v4, %v3372_v21  ;;  %v3022_v32 = vadd.f32 %v2990_v48, %v2925_v6  ;;  %v2828_v49 = vadd.f32 %v2796_v22, %v2731_v57 }
 0x30b   : > { %v2732_v56 = vadd.f32 %v2700_v25, %v2635_v47  ;;  %v3088_v51 = vmul.f32 %v5763_v23, %v3055_v36 }
 0x30c   : > { %v3154_v8 = vadd.f32 %v5778_v52, %v3118_v19  ;;  %v3437_v59 = vadd.f32 %v3373_v33, %v5069_v20  ;;  %v3119_v0 = vadd.f32 %v3087_v34, %v3022_v32  ;;  %v2926_v13 = vadd.f32 %v2894_v17, %v2828_v49 }
 0x30d   : > { %v2829_v12 = vadd.f32 %v2797_v5, %v2732_v56 }
 0x30e   : > { %3469 = vst.msk [vmem:[%s5839_s18 + $0x50] sm:$0xff] %vm522_vm0, %v3437_v59  ;;  %v3155_v15 = vadd.f32 %v5778_v52, %v3119_v0  ;;  %v3186_v7 = vmax.f32 %v3154_v8, 0.0  ;;  %v3023_v58 = vadd.f32 %v2991_v18, %v2926_v13  ;;  %v6236_v0 = vld [vmem:[#allocation17_spill] sm:$0xff] }
 0x30f   : > { %v2927_v16 = vadd.f32 %v2895_v54, %v2829_v12  ;;  %v6235_v54 = vld [vmem:[#allocation16_spill] sm:$0xff] }
 0x310   : > { %v3187_v62 = vmax.f32 %v3155_v15, 0.0  ;;  %v3218_v31 = vmin.f32 %v3186_v7, 6.0  ;;  %v3120_v14 = vadd.f32 %v3088_v51, %v3023_v58 }
 0x311   : > { %v3374_v20 = vpop.f32.mrf.mxu3  ;;  %v3024_v42 = vadd.f32 %v2992_v37, %v2927_v16  ;;  %v6237_v16 = vld [vmem:[#allocation18_spill] sm:$0xff] }
 0x312   : > { %v3375_v30 = vadd.f32 %v5812_v4, %v3374_v20  ;;  %v3219_v38 = vmin.f32 %v3187_v62, 6.0  ;;  %v3156_v61 = vadd.f32 %v5778_v52, %v3120_v14  ;;  %v6238_v20 = vld [vmem:[#allocation19_spill] sm:$0xff] }
 0x313   : > { %v3121_v29 = vadd.f32 %v3089_v44, %v3024_v42 }
 0x314   : > { %v3438_v2 = vadd.f32 %v3375_v30, %v5074_v24  ;;  %v3236_v60 = vpack.c.bf16 %v3219_v38, %v3218_v31  ;;  %v3188_v24 = vmax.f32 %v3156_v61, 0.0  ;;  %v6239_v30 = vld [vmem:[#allocation20_spill] sm:$0xff] }
 0x315   : > { %v3157_v35 = vadd.f32 %v5778_v52, %v3121_v29 }
 0x316   : > { %3470 = vst.msk [vmem:[%s5839_s18 + $0x58] sm:$0xff] %vm522_vm0, %v3438_v2  ;;  %3707 = vmatmul.msk.bf16.gmra.mxu3 %vm2194_vm4, %v3236_v60  ;;  %v3220_v48 = vmin.f32 %v3188_v24, 6.0  ;;  %v6240_v2 = vld [vmem:[#allocation21_spill] sm:$0xff] }
 0x317   : > { %v3189_v46 = vmax.f32 %v3157_v35, 0.0  ;;  %v6241_v35 = vld [vmem:[#allocation22_spill] sm:$0xff] }
 0x319   : > { %v3377_v63 = vpop.f32.mrf.mxu3  ;;  %v3221_v41 = vmin.f32 %v3189_v46, 6.0 }
 0x31a   : > { %v3378_v23 = vadd.f32 %v5812_v4, %v3377_v63 }
 0x31b   : > { %v3237_v57 = vpack.c.bf16 %v3221_v41, %v3220_v48 }
 0x31c   : > { %v3439_v39 = vadd.f32 %v3378_v23, %v5088_v40 }
 0x31e   : > { %3471 = vst.msk [vmem:[%s5839_s18 + $0x60] sm:$0xff] %vm522_vm0, %v3439_v39  ;;  %v6242_v39 = vld [vmem:[#allocation23_spill] sm:$0xff] }
 0x321   : > { %v3379_v22 = vpop.f32.mrf.mxu3 }
 0x322   : > { %v3380_v6 = vadd.f32 %v5812_v4, %v3379_v22  ;;  %v6243_v22 = vld [vmem:[#allocation24_spill] sm:$0xff] }
 0x324   : > { %v3440_v19 = vadd.f32 %v3380_v6, %v5091_v9 }
 0x326   : > { %3472 = vst.msk [vmem:[%s5839_s18 + $0x68] sm:$0xff] %vm522_vm0, %v3440_v19  ;;  %3708 = vmatmul.msk.bf16.gmra.mxu3 %vm2194_vm4, %v3237_v57  ;;  %v6246_v57 = vld [vmem:[#allocation25_spill] sm:$0xff] }
 0x329   : > { %v3382_v40 = vpop.f32.mrf.mxu3 }
 0x32a   : > { %v3383_v52 = vadd.f32 %v5812_v4, %v3382_v40 }
 0x32c   : > { %v3441_v11 = vadd.f32 %v3383_v52, %v5106_v28 }
 0x32e   : > { %3473 = vst.msk [vmem:[%s5839_s18 + $0x70] sm:$0xff] %vm522_vm0, %v3441_v11 }
 0x331   : > { %v3384_v21 = vpop.f32.mrf.mxu3 }
 0x332   : > { %v3385_v34 = vadd.f32 %v5812_v4, %v3384_v21 }
 0x334   : > { %v3442_v47 = vadd.f32 %v3385_v34, %v5109_v43 }
 0x336   : > { %3474 = vst.msk [vmem:[%s5839_s18 + $0x78] sm:$0xff] %vm522_vm0, %v3442_v47 }
 0x339   : > { %v3387_v9 = vpop.f32.mrf.mxu3 }
 0x33a   : > { %v3388_v25 = vadd.f32 %v5812_v4, %v3387_v9 }
 0x33c   : > { %v3443_v17 = vadd.f32 %v3388_v25, %v5143_v53 }
 0x33e   : > { %3475 = vst.msk [vmem:[%s5839_s18 + $0x80] sm:$0xff] %vm522_vm0, %v3443_v17 }
 0x341   : > { %v3389_v28 = vpop.f32.mrf.mxu3 }
 0x342   : > { %v3390_v33 = vadd.f32 %v5812_v4, %v3389_v28 }
 0x344   : > { %v3444_v32 = vadd.f32 %v3390_v33, %v5146_v45 }
 0x346   : > { %3476 = vst.msk [vmem:[%s5839_s18 + $0x88] sm:$0xff] %vm522_vm0, %v3444_v32 }
 0x349   : > { %v3392_v43 = vpop.f32.mrf.mxu3 }
 0x34a   : > { %v3393_v8 = vadd.f32 %v5812_v4, %v3392_v43 }
 0x34c   : > { %v3445_v49 = vadd.f32 %v3393_v8, %v5197_v50 }
 0x34e   : > { %3477 = vst.msk [vmem:[%s5839_s18 + $0x90] sm:$0xff] %vm522_vm0, %v3445_v49 }
 0x351   : > { %v3394_v53 = vpop.f32.mrf.mxu3 }
 0x352   : > { %v3395_v55 = vadd.f32 %v5812_v4, %v3394_v53 }
 0x354   : > { %v3446_v56 = vadd.f32 %v3395_v55, %v5200_v10 }
 0x356   : > { %3478 = vst.msk [vmem:[%s5839_s18 + $0x98] sm:$0xff] %vm522_vm0, %v3446_v56 }
 0x359   : > { %v3397_v45 = vpop.f32.mrf.mxu3 }
 0x35a   : > { %v3398_v5 = vadd.f32 %v5812_v4, %v3397_v45 }
 0x35c   : > { %v3447_v27 = vadd.f32 %v3398_v5, %v6235_v54 }
 0x35e   : > { %3479 = vst.msk [vmem:[%s5839_s18 + $0xa0] sm:$0xff] %vm522_vm0, %v3447_v27 }
 0x361   : > { %v3399_v50 = vpop.f32.mrf.mxu3 }
 0x362   : > { %v3400_v59 = vadd.f32 %v5812_v4, %v3399_v50 }
 0x364   : > { %v3448_v12 = vadd.f32 %v3400_v59, %v6236_v0 }
 0x366   : > { %3480 = vst.msk [vmem:[%s5839_s18 + $0xa8] sm:$0xff] %vm522_vm0, %v3448_v12 }
 0x369   : > { %v3402_v10 = vpop.f32.mrf.mxu3 }
 0x36a   : > { %v3403_v37 = vadd.f32 %v5812_v4, %v3402_v10 }
 0x36c   : > { %v3449_v3 = vadd.f32 %v3403_v37, %v5338_v1 }
 0x36e   : > { %3481 = vst.msk [vmem:[%s5839_s18 + $0xb0] sm:$0xff] %vm522_vm0, %v3449_v3 }
 0x371   : > { %v3404_v15 = vpop.f32.mrf.mxu3 }
 0x372   : > { %v3405_v7 = vadd.f32 %v5812_v4, %v3404_v15 }
 0x374   : > { %v3450_v13 = vadd.f32 %v3405_v7, %v5344_v26 }
 0x376   : > { %3482 = vst.msk [vmem:[%s5839_s18 + $0xb8] sm:$0xff] %vm522_vm0, %v3450_v13 }
 0x379   : > { %v3407_v18 = vpop.f32.mrf.mxu3 }
 0x37a   : > { %v3408_v36 = vadd.f32 %v5812_v4, %v3407_v18 }
 0x37c   : > { %v3451_v62 = vadd.f32 %v3408_v36, %v6237_v16 }
 0x37e   : > { %3483 = vst.msk [vmem:[%s5839_s18 + $0xc0] sm:$0xff] %vm522_vm0, %v3451_v62 }
 0x381   : > { %v3409_v1 = vpop.f32.mrf.mxu3 }
 0x382   : > { %v3410_v44 = vadd.f32 %v5812_v4, %v3409_v1 }
 0x384   : > { %v3452_v42 = vadd.f32 %v3410_v44, %v6238_v20 }
 0x386   : > { %3484 = vst.msk [vmem:[%s5839_s18 + $0xc8] sm:$0xff] %vm522_vm0, %v3452_v42 }
 0x389   : > { %v3412_v26 = vpop.f32.mrf.mxu3 }
 0x38a   : > { %v3413_v51 = vadd.f32 %v5812_v4, %v3412_v26 }
 0x38c   : > { %v3453_v31 = vadd.f32 %v3413_v51, %v6239_v30 }
 0x38e   : > { %3485 = vst.msk [vmem:[%s5839_s18 + $0xd0] sm:$0xff] %vm522_vm0, %v3453_v31 }
 0x391   : > { %v3414_v38 = vpop.f32.mrf.mxu3 }
 0x392   : > { %v3415_v58 = vadd.f32 %v5812_v4, %v3414_v38 }
 0x394   : > { %v3454_v60 = vadd.f32 %v3415_v58, %v6240_v2 }
 0x396   : > { %3486 = vst.msk [vmem:[%s5839_s18 + $0xd8] sm:$0xff] %vm522_vm0, %v3454_v60 }
 0x399   : > { %v3417_v29 = vpop.f32.mrf.mxu3 }
 0x39a   : > { %v3418_v14 = vadd.f32 %v5812_v4, %v3417_v29 }
 0x39c   : > { %v3455_v63 = vadd.f32 %v3418_v14, %v6241_v35 }
 0x39e   : > { %3487 = vst.msk [vmem:[%s5839_s18 + $0xe0] sm:$0xff] %vm522_vm0, %v3455_v63 }
 0x3a1   : > { %v3419_v23 = vpop.f32.mrf.mxu3 }
 0x3a2   : > { %v3420_v61 = vadd.f32 %v5812_v4, %v3419_v23 }
 0x3a4   : > { %v3456_v46 = vadd.f32 %v3420_v61, %v6242_v39 }
 0x3a6   : > { %3488 = vst.msk [vmem:[%s5839_s18 + $0xe8] sm:$0xff] %vm522_vm0, %v3456_v46 }
 0x3a9   : > { %v3422_v24 = vpop.f32.mrf.mxu3 }
 0x3aa   : > { %v3423_v41 = vadd.f32 %v5812_v4, %v3422_v24 }
 0x3ac   : > { %v3457_v6 = vadd.f32 %v3423_v41, %v6243_v22 }
 0x3ae   : > { %3489 = vst.msk [vmem:[%s5839_s18 + $0xf0] sm:$0xff] %vm522_vm0, %v3457_v6 }
 0x3b1   : > { %v3424_v48 = vpop.f32.mrf.mxu3 }
 0x3b2   : > { %v3425_v19 = vadd.f32 %v5812_v4, %v3424_v48 }
 0x3b4   : > { %v3458_v40 = vadd.f32 %v3425_v19, %v6246_v57 }
 0x3b6   : > { %3490 = vst.msk [vmem:[%s5839_s18 + $0xf8] sm:$0xff] %vm522_vm0, %v3458_v40 }
 0x3b7   : > { %3914 = shalt.err (!%p3911_p4)
}
 0x3b8   : > { %s3958_s30 = smov 128   ;;  %s3959_s18 = smov 8  }
 0x3b9   : > { %3729 = dma.vmem_to_hbm [thread:$0]  (%p4080_p11), %s3505_s21, 4096, %s3507_s13, %s3492_s29, %s3958_s30, %s3958_s30, %s3959_s18  }
 0x3ba PF: > { %s6247_s17 = sld [smem:[#allocation10_spill]]  ;;  %p6249_p7 = scmp.ge.s32.totalorder %s3953_s28, 2 }
 0x3bc   : > { %p3736_p5 = pnand %p6249_p7, %p4084_p12 }
 0x3be   : > { %p3737_p8 = pneg %p3736_p5 }
 0x3c0   : > { %s3521_s0 = sand.u32 1, %s6247_s17  }
 0x3c1   : > { %s3522_s14 = scalar_lea.sflag [#allocation6], %s3521_s0 }
 0x3c2   : > { %3936 = dma.done.wait (%p3737_p8), %s3522_s14, 4096  }
 0x3c3   : > { %3938 = vsyncadd (%p3737_p8), %s3522_s14, 4294963200  ;;  %s6250_s28 = sld [smem:[#allocation12_spill]]  ;;  %s6253_s25 = smov %s3945_s26 }
 0x3c4   : > { %s6251_s27 = sld [smem:[#allocation11_spill]] }
 0x3c5   : > { %s6252_s19 = sld [smem:[#allocation13_spill]] }
 0x3c9   : > { %p26_p10 = scmp.ge.s32.totalorder %s6250_s28, 4  }
 0x3ca   : > { %s6254_s26 = smov %s6251_s27 }
 0x3cb   : > { %s6255_s27 = smov %s6252_s19  ;;  %28 = sbr.rel (!%p26_p10) target bundleno = 8 (0x8), region = 127 }
 0x3d0   :  { %3528 = vsyncpa [#allocation5], 1 }
 0x3d1   :  { %3530 = vsyncpa [#allocation5 + $0x1], 1 }
 0x3d2   :  { %3531 = vsyncpa [#allocation6], 1 }
 0x3d3   :  { %3533 = vsyncpa [#allocation6 + $0x1], 1 }

</bundles_post_ra>
